<compile_context>
chip_gen: v5e
topology: v5e:2x2
jax: 0.10.0
libtpu: 0.0.40
codegen_flags: <defaults>
</compile_context>

<pallas_src>
import functools

import numpy as np
import jax
import jax.numpy as jnp
from jax.experimental import pallas as pl
from jax.experimental.pallas import tpu as pltpu

BN_EPS = 1e-5


def _round_up(x, m):
    return (x + m - 1) // m * m


def _const_spec(shape):
    zeros = (0,) * len(shape)
    return pl.BlockSpec(shape, lambda n, _z=zeros: _z)


# ----------------------------------------------------------------------------
# Fused whole-chain kernel
# ----------------------------------------------------------------------------
def _make_chain_kernel(H, W, Cout, block_has_ds):
    HW = H * W
    # Static (roll shift, dh, dw) for the 9 taps of a padding=1 3x3 conv:
    # tap[p] = x_flat[p + dh*W + dw]  ==  roll(x_flat, -(dh*W + dw))[p].
    tap_meta = [((-(dh * W + dw)) % HW, dh, dw)
                for dh in (-1, 0, 1) for dw in (-1, 0, 1)]

    def kernel(*refs):
        x_ref, idx_ref = refs[0], refs[1]
        o_ref = refs[-1]
        w_refs = refs[2:-1]
        cdtype = x_ref.dtype

        # Per-position (h, w) indices (precomputed constant input) -> 9 tap
        # validity masks, shared by every conv of every block.
        idx = idx_ref[...]                               # (2, HW) int32
        h_idx = idx[0:1, :]
        w_idx = idx[1:2, :]
        taps = []
        for shift, dh, dw in tap_meta:
            valid = ((h_idx + dh >= 0) & (h_idx + dh < H) &
                     (w_idx + dw >= 0) & (w_idx + dw < W))
            taps.append((shift, valid))

        def conv3x3(a32, w_ref, b_ref):
            """a32: (C, HW) f32 activation; w_ref: (9, Cout, C); -> (Cout, HW) f32."""
            acc = jnp.zeros((Cout, HW), jnp.float32)
            for t, (shift, valid) in enumerate(taps):
                if shift == 0:
                    tap = a32                            # centre tap: no shift, no mask
                else:
                    tap = jnp.where(valid, pltpu.roll(a32, shift, axis=1), 0.0)
                acc = acc + jnp.dot(w_ref[t], tap.astype(cdtype),
                                    preferred_element_type=jnp.float32)
            return acc + b_ref[...]                      # per-channel f32 bias

        # Activation stays in f32 vregs across the whole chain.
        x_cur = x_ref[0].astype(jnp.float32)             # (C, HW)
        i = 0
        for has_ds in block_has_ds:
            w1, b1, w2, b2 = w_refs[i:i + 4]
            i += 4
            h1 = jnp.maximum(conv3x3(x_cur, w1, b1), 0.0)     # conv1 + bn1 + ReLU
            y = conv3x3(h1, w2, b2)                           # conv2 + bn2 (+ bnd bias)
            if has_ds:
                wd = w_refs[i]
                i += 1
                y = y + jnp.dot(wd[...], x_cur.astype(cdtype),  # 1x1 downsample + bnd
                                preferred_element_type=jnp.float32)
            else:
                y = y + x_cur                                 # identity residual
            x_cur = jnp.maximum(y, 0.0)                       # final ReLU
        o_ref[0] = x_cur.astype(o_ref.dtype)

    return kernel


# ----------------------------------------------------------------------------
# Wrapper: BN folding, weight repacking, BlockSpecs, pallas_call
# ----------------------------------------------------------------------------
def _fold_bn(gamma, beta, mean, var):
    scale = gamma / jnp.sqrt(var + BN_EPS)
    return scale, beta - mean * scale


def _conv_w_to_taps(w_oihw, scale, k_pad):
    """OIHW conv weight * per-Cout BN scale -> tap-major (9, Cout, k_pad)."""
    cout, cin = w_oihw.shape[:2]
    wf = w_oihw * scale[:, None, None, None]
    wt = jnp.transpose(wf, (2, 3, 0, 1)).reshape(9, cout, cin)
    if k_pad != cin:
        wt = jnp.pad(wt, ((0, 0), (0, 0), (0, k_pad - cin)))
    return wt


def chain_forward(x_nchw, params, compute_dtype=jnp.bfloat16):
    """ChainOfBasicBlocks forward: (N, Cin, H, W) f32 -> (N, Cout, H, W) f32."""
    N, Cin, H, W = x_nchw.shape
    HW = H * W
    Cout = params[0]["w1"].shape[0]
    Cin_p = _round_up(Cin, 8)

    # NCHW-flat, channel-major, lane-dense input (metadata-only reshape); pad
    # the input channel dim to a sublane multiple so every dot is 8-aligned.
    x = x_nchw.reshape(N, Cin, HW)
    if Cin_p != Cin:
        x = jnp.pad(x, ((0, 0), (0, Cin_p - Cin), (0, 0)))
    x = x.astype(compute_dtype)

    # (h, w) index of every flattened spatial position (compile-time constant).
    pos = np.arange(HW, dtype=np.int32)
    hw_idx = jnp.asarray(np.stack([pos // W, pos % W], axis=0))   # (2, HW) int32

    args = [x, hw_idx]
    in_specs = [pl.BlockSpec((1, Cin_p, HW), lambda n: (n, 0, 0)),
                _const_spec((2, HW))]
    block_has_ds = []
    flops = 0
    for b, p in enumerate(params):
        cout_b, cin_b = p["w1"].shape[:2]
        assert cout_b == Cout
        has_ds = "wd" in p
        if not has_ds:
            # Identity residual reinterprets the block input as Cout channels;
            # only valid when cin == cout (true for all non-first blocks).
            assert cin_b == Cout, "identity residual requires cin == cout"
        cin_pad = Cin_p if b == 0 else cin_b

        s1, b1 = _fold_bn(*p["bn1"])
        s2, b2 = _fold_bn(*p["bn2"])
        w1 = _conv_w_to_taps(p["w1"], s1, cin_pad)        # (9, Cout, cin_pad)
        w2 = _conv_w_to_taps(p["w2"], s2, Cout)           # (9, Cout, Cout)
        if has_ds:
            sd, bd = _fold_bn(*p["bnd"])
            wd = p["wd"] * sd[:, None]                    # (Cout, cin_b)
            if cin_pad != cin_b:
                wd = jnp.pad(wd, ((0, 0), (0, cin_pad - cin_b)))
            b2 = b2 + bd                                  # single conv2+downsample epilogue bias

        block_args = [w1.astype(compute_dtype),
                      b1.reshape(Cout, 1).astype(jnp.float32),
                      w2.astype(compute_dtype),
                      b2.reshape(Cout, 1).astype(jnp.float32)]
        block_specs = [_const_spec((9, Cout, cin_pad)),
                       _const_spec((Cout, 1)),
                       _const_spec((9, Cout, Cout)),
                       _const_spec((Cout, 1))]
        if has_ds:
            block_args.append(wd.astype(compute_dtype))
            block_specs.append(_const_spec((Cout, cin_pad)))

        args += block_args
        in_specs += block_specs
        block_has_ds.append(has_ds)
        flops += 2 * HW * Cout * (9 * cin_pad + 9 * Cout + (cin_pad if has_ds else 0))

    itemsize = jnp.dtype(compute_dtype).itemsize
    bytes_accessed = (N * Cin_p * HW * itemsize
                      + N * Cout * HW * itemsize
                      + N * sum(int(np.prod(a.shape)) * a.dtype.itemsize
                                for a in args[1:]))

    out = pl.pallas_call(
        _make_chain_kernel(H, W, Cout, tuple(block_has_ds)),
        out_shape=jax.ShapeDtypeStruct((N, Cout, HW), compute_dtype),
        grid=(N,),
        in_specs=in_specs,
        out_specs=pl.BlockSpec((1, Cout, HW), lambda n: (n, 0, 0)),
        compiler_params=pltpu.CompilerParams(
            dimension_semantics=("parallel",)),
        cost_estimate=pl.CostEstimate(
            flops=N * flops, transcendentals=0,
            bytes_accessed=int(bytes_accessed)),
    )(*args)
    # Metadata-only: output is already NCHW-flat.
    return out.reshape(N, Cout, H, W).astype(jnp.float32)


# ----------------------------------------------------------------------------
# Parameters (deterministic init, PyTorch OIHW layout)
# ----------------------------------------------------------------------------
def _init_bn(key, c):
    k1, k2, k3, k4 = jax.random.split(key, 4)
    gamma = 1.0 + 0.1 * jax.random.normal(k1, (c,), jnp.float32)
    beta = 0.1 * jax.random.normal(k2, (c,), jnp.float32)
    mean = 0.1 * jax.random.normal(k3, (c,), jnp.float32)
    var = 1.0 + 0.5 * jax.random.uniform(k4, (c,), jnp.float32)
    return gamma, beta, mean, var


def init_chain_params(key, cin, cout, num_blocks):
    params = []
    for b in range(num_blocks):
        c_in_b = cin if b == 0 else cout
        key, k1, k2, k3, k4, k5, k6 = jax.random.split(key, 7)
        p = {
            "w1": 0.1 * jax.random.normal(k1, (cout, c_in_b, 3, 3), jnp.float32),
            "bn1": _init_bn(k2, cout),
            "w2": 0.1 * jax.random.normal(k3, (cout, cout, 3, 3), jnp.float32),
            "bn2": _init_bn(k4, cout),
        }
        if b == 0:          # downsample (1x1 conv + BN) only on the first block
            p["wd"] = 0.1 * jax.random.normal(k5, (cout, c_in_b), jnp.float32)
            p["bnd"] = _init_bn(k6, cout)
        params.append(p)
    return params


# ----------------------------------------------------------------------------
# Pure-JAX reference (lax.conv, accurate f32) for correctness check
# ----------------------------------------------------------------------------
def _ref_conv3x3(x, w):
    return jax.lax.conv_general_dilated(
        x, w, window_strides=(1, 1), padding=((1, 1), (1, 1)),
        dimension_numbers=("NCHW", "OIHW", "NCHW"),
        precision=jax.lax.Precision.HIGHEST)


def _ref_block(x, p):
    s1, b1 = _fold_bn(*p["bn1"])
    s2, b2 = _fold_bn(*p["bn2"])
    out = _ref_conv3x3(x, p["w1"]) * s1[None, :, None, None] + b1[None, :, None, None]
    out = jnp.maximum(out, 0.0)
    out = _ref_conv3x3(out, p["w2"]) * s2[None, :, None, None] + b2[None, :, None, None]
    if "wd" in p:
        sd, bd = _fold_bn(*p["bnd"])
        res = (jnp.einsum("oi,nihw->nohw", p["wd"], x,
                          precision=jax.lax.Precision.HIGHEST)
               * sd[None, :, None, None] + bd[None, :, None, None])
    else:
        res = x
    return jnp.maximum(out + res, 0.0)


def chain_forward_ref(x_nchw, params):
    x = x_nchw
    for p in params:
        x = _ref_block(x, p)
    return x


# ----------------------------------------------------------------------------
if __name__ == "__main__":
    key = jax.random.PRNGKey(0)
    kx, kp = jax.random.split(key)

    N, Cin, H, W = 2, 4, 16, 16
    Cout, num_blocks = 8, 2

    x_nchw = jax.random.normal(kx, (N, Cin, H, W), jnp.float32)
    params = init_chain_params(kp, Cin, Cout, num_blocks)

    fwd_bf16 = jax.jit(functools.partial(chain_forward, compute_dtype=jnp.bfloat16))
    fwd_f32 = jax.jit(functools.partial(chain_forward, compute_dtype=jnp.float32))

    out_bf16 = jax.block_until_ready(fwd_bf16(x_nchw, params))
    out_f32 = jax.block_until_ready(fwd_f32(x_nchw, params))

    ref = np.asarray(chain_forward_ref(x_nchw, params))

    # Tight structural check with the f32-compute path of the same kernel.
    np.testing.assert_allclose(np.asarray(out_f32), ref, rtol=2e-4, atol=2e-4)
    # bf16 MXU operands across a 4-conv chain: intentionally loose tolerance
    # (structural equivalence is already asserted in f32 above).
    np.testing.assert_allclose(np.asarray(out_bf16), ref, rtol=1e-1, atol=1e-1)

    print("KERNEL_OK")
</pallas_src>

<mosaic_0001>
module attributes {stable_mosaic.version = 11 : i64} {
  func.func @kernel(%arg0: i32, %arg1: memref<1x8x256xbf16, #tpu.memory_space<vmem>>, %arg2: memref<2x256xi32, #tpu.memory_space<vmem>>, %arg3: memref<9x8x8xbf16, #tpu.memory_space<vmem>>, %arg4: memref<8x1xf32, #tpu.memory_space<vmem>>, %arg5: memref<9x8x8xbf16, #tpu.memory_space<vmem>>, %arg6: memref<8x1xf32, #tpu.memory_space<vmem>>, %arg7: memref<8x8xbf16, #tpu.memory_space<vmem>>, %arg8: memref<9x8x8xbf16, #tpu.memory_space<vmem>>, %arg9: memref<8x1xf32, #tpu.memory_space<vmem>>, %arg10: memref<9x8x8xbf16, #tpu.memory_space<vmem>>, %arg11: memref<8x1xf32, #tpu.memory_space<vmem>>, %arg12: memref<1x8x256xbf16, #tpu.memory_space<vmem>>) attributes {dimension_semantics = [#tpu.dimension_semantics<parallel>], iteration_bounds = array<i64: 2>, scalar_prefetch = 0 : i64, scratch_operands = 0 : i64, tpu.core_type = #tpu.core_type<tc>, window_params = [{transform_indices = @transform_0, window_bounds = array<i64: 1, 8, 256>}, {pipeline_mode = #tpu.pipeline_mode<synchronous>, transform_indices = @transform_1, window_bounds = array<i64: 2, 256>}, {pipeline_mode = #tpu.pipeline_mode<synchronous>, transform_indices = @transform_2, window_bounds = array<i64: 9, 8, 8>}, {pipeline_mode = #tpu.pipeline_mode<synchronous>, transform_indices = @transform_3, window_bounds = array<i64: 8, 1>}, {pipeline_mode = #tpu.pipeline_mode<synchronous>, transform_indices = @transform_4, window_bounds = array<i64: 9, 8, 8>}, {pipeline_mode = #tpu.pipeline_mode<synchronous>, transform_indices = @transform_5, window_bounds = array<i64: 8, 1>}, {pipeline_mode = #tpu.pipeline_mode<synchronous>, transform_indices = @transform_6, window_bounds = array<i64: 8, 8>}, {pipeline_mode = #tpu.pipeline_mode<synchronous>, transform_indices = @transform_7, window_bounds = array<i64: 9, 8, 8>}, {pipeline_mode = #tpu.pipeline_mode<synchronous>, transform_indices = @transform_8, window_bounds = array<i64: 8, 1>}, {pipeline_mode = #tpu.pipeline_mode<synchronous>, transform_indices = @transform_9, window_bounds = array<i64: 9, 8, 8>}, {pipeline_mode = #tpu.pipeline_mode<synchronous>, transform_indices = @transform_10, window_bounds = array<i64: 8, 1>}, {transform_indices = @transform_11, window_bounds = array<i64: 1, 8, 256>}]} {
    %c0 = arith.constant 0 : index
    %c0_0 = arith.constant 0 : index
    %0 = vector.load %arg2[%c0, %c0_0] : memref<2x256xi32, #tpu.memory_space<vmem>>, vector<2x256xi32>
    %1 = vector.extract_strided_slice %0 {offsets = [0, 0], sizes = [1, 256], strides = [1, 1]} : vector<2x256xi32> to vector<1x256xi32>
    %2 = vector.extract_strided_slice %0 {offsets = [1, 0], sizes = [1, 256], strides = [1, 1]} : vector<2x256xi32> to vector<1x256xi32>
    %c-1_i32 = arith.constant -1 : i32
    %3 = vector.broadcast %c-1_i32 : i32 to vector<1x256xi32>
    %4 = arith.addi %1, %3 : vector<1x256xi32>
    %c0_i32 = arith.constant 0 : i32
    %5 = vector.broadcast %c0_i32 : i32 to vector<1x256xi32>
    %6 = arith.cmpi sge, %4, %5 : vector<1x256xi32>
    %c-1_i32_1 = arith.constant -1 : i32
    %7 = vector.broadcast %c-1_i32_1 : i32 to vector<1x256xi32>
    %8 = arith.addi %1, %7 : vector<1x256xi32>
    %c16_i32 = arith.constant 16 : i32
    %9 = vector.broadcast %c16_i32 : i32 to vector<1x256xi32>
    %10 = arith.cmpi slt, %8, %9 : vector<1x256xi32>
    %11 = arith.andi %6, %10 : vector<1x256xi1>
    %c-1_i32_2 = arith.constant -1 : i32
    %12 = vector.broadcast %c-1_i32_2 : i32 to vector<1x256xi32>
    %13 = arith.addi %2, %12 : vector<1x256xi32>
    %c0_i32_3 = arith.constant 0 : i32
    %14 = vector.broadcast %c0_i32_3 : i32 to vector<1x256xi32>
    %15 = arith.cmpi sge, %13, %14 : vector<1x256xi32>
    %16 = arith.andi %11, %15 : vector<1x256xi1>
    %c-1_i32_4 = arith.constant -1 : i32
    %17 = vector.broadcast %c-1_i32_4 : i32 to vector<1x256xi32>
    %18 = arith.addi %2, %17 : vector<1x256xi32>
    %c16_i32_5 = arith.constant 16 : i32
    %19 = vector.broadcast %c16_i32_5 : i32 to vector<1x256xi32>
    %20 = arith.cmpi slt, %18, %19 : vector<1x256xi32>
    %21 = arith.andi %16, %20 : vector<1x256xi1>
    %c-1_i32_6 = arith.constant -1 : i32
    %22 = vector.broadcast %c-1_i32_6 : i32 to vector<1x256xi32>
    %23 = arith.addi %1, %22 : vector<1x256xi32>
    %c0_i32_7 = arith.constant 0 : i32
    %24 = vector.broadcast %c0_i32_7 : i32 to vector<1x256xi32>
    %25 = arith.cmpi sge, %23, %24 : vector<1x256xi32>
    %c-1_i32_8 = arith.constant -1 : i32
    %26 = vector.broadcast %c-1_i32_8 : i32 to vector<1x256xi32>
    %27 = arith.addi %1, %26 : vector<1x256xi32>
    %c16_i32_9 = arith.constant 16 : i32
    %28 = vector.broadcast %c16_i32_9 : i32 to vector<1x256xi32>
    %29 = arith.cmpi slt, %27, %28 : vector<1x256xi32>
    %30 = arith.andi %25, %29 : vector<1x256xi1>
    %c0_i32_10 = arith.constant 0 : i32
    %31 = vector.broadcast %c0_i32_10 : i32 to vector<1x256xi32>
    %32 = arith.addi %2, %31 : vector<1x256xi32>
    %c0_i32_11 = arith.constant 0 : i32
    %33 = vector.broadcast %c0_i32_11 : i32 to vector<1x256xi32>
    %34 = arith.cmpi sge, %32, %33 : vector<1x256xi32>
    %35 = arith.andi %30, %34 : vector<1x256xi1>
    %c0_i32_12 = arith.constant 0 : i32
    %36 = vector.broadcast %c0_i32_12 : i32 to vector<1x256xi32>
    %37 = arith.addi %2, %36 : vector<1x256xi32>
    %c16_i32_13 = arith.constant 16 : i32
    %38 = vector.broadcast %c16_i32_13 : i32 to vector<1x256xi32>
    %39 = arith.cmpi slt, %37, %38 : vector<1x256xi32>
    %40 = arith.andi %35, %39 : vector<1x256xi1>
    %c-1_i32_14 = arith.constant -1 : i32
    %41 = vector.broadcast %c-1_i32_14 : i32 to vector<1x256xi32>
    %42 = arith.addi %1, %41 : vector<1x256xi32>
    %c0_i32_15 = arith.constant 0 : i32
    %43 = vector.broadcast %c0_i32_15 : i32 to vector<1x256xi32>
    %44 = arith.cmpi sge, %42, %43 : vector<1x256xi32>
    %c-1_i32_16 = arith.constant -1 : i32
    %45 = vector.broadcast %c-1_i32_16 : i32 to vector<1x256xi32>
    %46 = arith.addi %1, %45 : vector<1x256xi32>
    %c16_i32_17 = arith.constant 16 : i32
    %47 = vector.broadcast %c16_i32_17 : i32 to vector<1x256xi32>
    %48 = arith.cmpi slt, %46, %47 : vector<1x256xi32>
    %49 = arith.andi %44, %48 : vector<1x256xi1>
    %c1_i32 = arith.constant 1 : i32
    %50 = vector.broadcast %c1_i32 : i32 to vector<1x256xi32>
    %51 = arith.addi %2, %50 : vector<1x256xi32>
    %c0_i32_18 = arith.constant 0 : i32
    %52 = vector.broadcast %c0_i32_18 : i32 to vector<1x256xi32>
    %53 = arith.cmpi sge, %51, %52 : vector<1x256xi32>
    %54 = arith.andi %49, %53 : vector<1x256xi1>
    %c1_i32_19 = arith.constant 1 : i32
    %55 = vector.broadcast %c1_i32_19 : i32 to vector<1x256xi32>
    %56 = arith.addi %2, %55 : vector<1x256xi32>
    %c16_i32_20 = arith.constant 16 : i32
    %57 = vector.broadcast %c16_i32_20 : i32 to vector<1x256xi32>
    %58 = arith.cmpi slt, %56, %57 : vector<1x256xi32>
    %59 = arith.andi %54, %58 : vector<1x256xi1>
    %c0_i32_21 = arith.constant 0 : i32
    %60 = vector.broadcast %c0_i32_21 : i32 to vector<1x256xi32>
    %61 = arith.addi %1, %60 : vector<1x256xi32>
    %c0_i32_22 = arith.constant 0 : i32
    %62 = vector.broadcast %c0_i32_22 : i32 to vector<1x256xi32>
    %63 = arith.cmpi sge, %61, %62 : vector<1x256xi32>
    %c0_i32_23 = arith.constant 0 : i32
    %64 = vector.broadcast %c0_i32_23 : i32 to vector<1x256xi32>
    %65 = arith.addi %1, %64 : vector<1x256xi32>
    %c16_i32_24 = arith.constant 16 : i32
    %66 = vector.broadcast %c16_i32_24 : i32 to vector<1x256xi32>
    %67 = arith.cmpi slt, %65, %66 : vector<1x256xi32>
    %68 = arith.andi %63, %67 : vector<1x256xi1>
    %c-1_i32_25 = arith.constant -1 : i32
    %69 = vector.broadcast %c-1_i32_25 : i32 to vector<1x256xi32>
    %70 = arith.addi %2, %69 : vector<1x256xi32>
    %c0_i32_26 = arith.constant 0 : i32
    %71 = vector.broadcast %c0_i32_26 : i32 to vector<1x256xi32>
    %72 = arith.cmpi sge, %70, %71 : vector<1x256xi32>
    %73 = arith.andi %68, %72 : vector<1x256xi1>
    %c-1_i32_27 = arith.constant -1 : i32
    %74 = vector.broadcast %c-1_i32_27 : i32 to vector<1x256xi32>
    %75 = arith.addi %2, %74 : vector<1x256xi32>
    %c16_i32_28 = arith.constant 16 : i32
    %76 = vector.broadcast %c16_i32_28 : i32 to vector<1x256xi32>
    %77 = arith.cmpi slt, %75, %76 : vector<1x256xi32>
    %78 = arith.andi %73, %77 : vector<1x256xi1>
    %c0_i32_29 = arith.constant 0 : i32
    %79 = vector.broadcast %c0_i32_29 : i32 to vector<1x256xi32>
    %80 = arith.addi %1, %79 : vector<1x256xi32>
    %c0_i32_30 = arith.constant 0 : i32
    %81 = vector.broadcast %c0_i32_30 : i32 to vector<1x256xi32>
    %82 = arith.cmpi sge, %80, %81 : vector<1x256xi32>
    %c0_i32_31 = arith.constant 0 : i32
    %83 = vector.broadcast %c0_i32_31 : i32 to vector<1x256xi32>
    %84 = arith.addi %1, %83 : vector<1x256xi32>
    %c16_i32_32 = arith.constant 16 : i32
    %85 = vector.broadcast %c16_i32_32 : i32 to vector<1x256xi32>
    %86 = arith.cmpi slt, %84, %85 : vector<1x256xi32>
    %87 = arith.andi %82, %86 : vector<1x256xi1>
    %c1_i32_33 = arith.constant 1 : i32
    %88 = vector.broadcast %c1_i32_33 : i32 to vector<1x256xi32>
    %89 = arith.addi %2, %88 : vector<1x256xi32>
    %c0_i32_34 = arith.constant 0 : i32
    %90 = vector.broadcast %c0_i32_34 : i32 to vector<1x256xi32>
    %91 = arith.cmpi sge, %89, %90 : vector<1x256xi32>
    %92 = arith.andi %87, %91 : vector<1x256xi1>
    %c1_i32_35 = arith.constant 1 : i32
    %93 = vector.broadcast %c1_i32_35 : i32 to vector<1x256xi32>
    %94 = arith.addi %2, %93 : vector<1x256xi32>
    %c16_i32_36 = arith.constant 16 : i32
    %95 = vector.broadcast %c16_i32_36 : i32 to vector<1x256xi32>
    %96 = arith.cmpi slt, %94, %95 : vector<1x256xi32>
    %97 = arith.andi %92, %96 : vector<1x256xi1>
    %c1_i32_37 = arith.constant 1 : i32
    %98 = vector.broadcast %c1_i32_37 : i32 to vector<1x256xi32>
    %99 = arith.addi %1, %98 : vector<1x256xi32>
    %c0_i32_38 = arith.constant 0 : i32
    %100 = vector.broadcast %c0_i32_38 : i32 to vector<1x256xi32>
    %101 = arith.cmpi sge, %99, %100 : vector<1x256xi32>
    %c1_i32_39 = arith.constant 1 : i32
    %102 = vector.broadcast %c1_i32_39 : i32 to vector<1x256xi32>
    %103 = arith.addi %1, %102 : vector<1x256xi32>
    %c16_i32_40 = arith.constant 16 : i32
    %104 = vector.broadcast %c16_i32_40 : i32 to vector<1x256xi32>
    %105 = arith.cmpi slt, %103, %104 : vector<1x256xi32>
    %106 = arith.andi %101, %105 : vector<1x256xi1>
    %c-1_i32_41 = arith.constant -1 : i32
    %107 = vector.broadcast %c-1_i32_41 : i32 to vector<1x256xi32>
    %108 = arith.addi %2, %107 : vector<1x256xi32>
    %c0_i32_42 = arith.constant 0 : i32
    %109 = vector.broadcast %c0_i32_42 : i32 to vector<1x256xi32>
    %110 = arith.cmpi sge, %108, %109 : vector<1x256xi32>
    %111 = arith.andi %106, %110 : vector<1x256xi1>
    %c-1_i32_43 = arith.constant -1 : i32
    %112 = vector.broadcast %c-1_i32_43 : i32 to vector<1x256xi32>
    %113 = arith.addi %2, %112 : vector<1x256xi32>
    %c16_i32_44 = arith.constant 16 : i32
    %114 = vector.broadcast %c16_i32_44 : i32 to vector<1x256xi32>
    %115 = arith.cmpi slt, %113, %114 : vector<1x256xi32>
    %116 = arith.andi %111, %115 : vector<1x256xi1>
    %c1_i32_45 = arith.constant 1 : i32
    %117 = vector.broadcast %c1_i32_45 : i32 to vector<1x256xi32>
    %118 = arith.addi %1, %117 : vector<1x256xi32>
    %c0_i32_46 = arith.constant 0 : i32
    %119 = vector.broadcast %c0_i32_46 : i32 to vector<1x256xi32>
    %120 = arith.cmpi sge, %118, %119 : vector<1x256xi32>
    %c1_i32_47 = arith.constant 1 : i32
    %121 = vector.broadcast %c1_i32_47 : i32 to vector<1x256xi32>
    %122 = arith.addi %1, %121 : vector<1x256xi32>
    %c16_i32_48 = arith.constant 16 : i32
    %123 = vector.broadcast %c16_i32_48 : i32 to vector<1x256xi32>
    %124 = arith.cmpi slt, %122, %123 : vector<1x256xi32>
    %125 = arith.andi %120, %124 : vector<1x256xi1>
    %c0_i32_49 = arith.constant 0 : i32
    %126 = vector.broadcast %c0_i32_49 : i32 to vector<1x256xi32>
    %127 = arith.addi %2, %126 : vector<1x256xi32>
    %c0_i32_50 = arith.constant 0 : i32
    %128 = vector.broadcast %c0_i32_50 : i32 to vector<1x256xi32>
    %129 = arith.cmpi sge, %127, %128 : vector<1x256xi32>
    %130 = arith.andi %125, %129 : vector<1x256xi1>
    %c0_i32_51 = arith.constant 0 : i32
    %131 = vector.broadcast %c0_i32_51 : i32 to vector<1x256xi32>
    %132 = arith.addi %2, %131 : vector<1x256xi32>
    %c16_i32_52 = arith.constant 16 : i32
    %133 = vector.broadcast %c16_i32_52 : i32 to vector<1x256xi32>
    %134 = arith.cmpi slt, %132, %133 : vector<1x256xi32>
    %135 = arith.andi %130, %134 : vector<1x256xi1>
    %c1_i32_53 = arith.constant 1 : i32
    %136 = vector.broadcast %c1_i32_53 : i32 to vector<1x256xi32>
    %137 = arith.addi %1, %136 : vector<1x256xi32>
    %c0_i32_54 = arith.constant 0 : i32
    %138 = vector.broadcast %c0_i32_54 : i32 to vector<1x256xi32>
    %139 = arith.cmpi sge, %137, %138 : vector<1x256xi32>
    %c1_i32_55 = arith.constant 1 : i32
    %140 = vector.broadcast %c1_i32_55 : i32 to vector<1x256xi32>
    %141 = arith.addi %1, %140 : vector<1x256xi32>
    %c16_i32_56 = arith.constant 16 : i32
    %142 = vector.broadcast %c16_i32_56 : i32 to vector<1x256xi32>
    %143 = arith.cmpi slt, %141, %142 : vector<1x256xi32>
    %144 = arith.andi %139, %143 : vector<1x256xi1>
    %c1_i32_57 = arith.constant 1 : i32
    %145 = vector.broadcast %c1_i32_57 : i32 to vector<1x256xi32>
    %146 = arith.addi %2, %145 : vector<1x256xi32>
    %c0_i32_58 = arith.constant 0 : i32
    %147 = vector.broadcast %c0_i32_58 : i32 to vector<1x256xi32>
    %148 = arith.cmpi sge, %146, %147 : vector<1x256xi32>
    %149 = arith.andi %144, %148 : vector<1x256xi1>
    %c1_i32_59 = arith.constant 1 : i32
    %150 = vector.broadcast %c1_i32_59 : i32 to vector<1x256xi32>
    %151 = arith.addi %2, %150 : vector<1x256xi32>
    %c16_i32_60 = arith.constant 16 : i32
    %152 = vector.broadcast %c16_i32_60 : i32 to vector<1x256xi32>
    %153 = arith.cmpi slt, %151, %152 : vector<1x256xi32>
    %154 = arith.andi %149, %153 : vector<1x256xi1>
    %c0_61 = arith.constant 0 : index
    %c0_62 = arith.constant 0 : index
    %c0_63 = arith.constant 0 : index
    %155 = vector.load %arg1[%c0_61, %c0_62, %c0_63] : memref<1x8x256xbf16, #tpu.memory_space<vmem>>, vector<1x8x256xbf16>
    %156 = vector.shape_cast %155 : vector<1x8x256xbf16> to vector<8x256xbf16>
    %157 = arith.extf %156 : vector<8x256xbf16> to vector<8x256xf32>
    %cst = arith.constant 0.000000e+00 : f32
    %158 = vector.broadcast %cst : f32 to vector<8x256xf32>
    %c17_i32 = arith.constant 17 : i32
    %159 = tpu.dynamic_rotate %157 by %c17_i32 dim 1 : vector<8x256xf32>, i32 -> vector<8x256xf32>
    %cst_64 = arith.constant 0.000000e+00 : f32
    %160 = vector.shape_cast %21 : vector<1x256xi1> to vector<1x256xi1>
    %161 = vector.broadcast %160 : vector<1x256xi1> to vector<8x256xi1>
    %162 = vector.broadcast %cst_64 : f32 to vector<8x256xf32>
    %163 = arith.select %161, %159, %162 : vector<8x256xi1>, vector<8x256xf32>
    %c0_65 = arith.constant 0 : index
    %c0_66 = arith.constant 0 : index
    %c0_67 = arith.constant 0 : index
    %164 = vector.load %arg3[%c0_65, %c0_66, %c0_67] : memref<9x8x8xbf16, #tpu.memory_space<vmem>>, vector<1x8x8xbf16>
    %165 = vector.shape_cast %164 : vector<1x8x8xbf16> to vector<8x8xbf16>
    %166 = arith.truncf %163 : vector<8x256xf32> to vector<8x256xbf16>
    %cst_68 = arith.constant dense<0.000000e+00> : vector<8x256xf32>
    %167 = tpu.matmul %165, %166, %cst_68 {dimension_numbers = #tpu.dot_dimension_numbers<[1], [0], [0], [1], [0, 0, 1, 1], [], []>} : vector<8x8xbf16>, vector<8x256xbf16>, vector<8x256xf32> -> vector<8x256xf32>
    %168 = arith.addf %158, %167 : vector<8x256xf32>
    %c16_i32_69 = arith.constant 16 : i32
    %169 = tpu.dynamic_rotate %157 by %c16_i32_69 dim 1 : vector<8x256xf32>, i32 -> vector<8x256xf32>
    %cst_70 = arith.constant 0.000000e+00 : f32
    %170 = vector.shape_cast %40 : vector<1x256xi1> to vector<1x256xi1>
    %171 = vector.broadcast %170 : vector<1x256xi1> to vector<8x256xi1>
    %172 = vector.broadcast %cst_70 : f32 to vector<8x256xf32>
    %173 = arith.select %171, %169, %172 : vector<8x256xi1>, vector<8x256xf32>
    %c1 = arith.constant 1 : index
    %c0_71 = arith.constant 0 : index
    %c0_72 = arith.constant 0 : index
    %174 = vector.load %arg3[%c1, %c0_71, %c0_72] : memref<9x8x8xbf16, #tpu.memory_space<vmem>>, vector<1x8x8xbf16>
    %175 = vector.shape_cast %174 : vector<1x8x8xbf16> to vector<8x8xbf16>
    %176 = arith.truncf %173 : vector<8x256xf32> to vector<8x256xbf16>
    %cst_73 = arith.constant dense<0.000000e+00> : vector<8x256xf32>
    %177 = tpu.matmul %175, %176, %cst_73 {dimension_numbers = #tpu.dot_dimension_numbers<[1], [0], [0], [1], [0, 0, 1, 1], [], []>} : vector<8x8xbf16>, vector<8x256xbf16>, vector<8x256xf32> -> vector<8x256xf32>
    %178 = arith.addf %168, %177 : vector<8x256xf32>
    %c15_i32 = arith.constant 15 : i32
    %179 = tpu.dynamic_rotate %157 by %c15_i32 dim 1 : vector<8x256xf32>, i32 -> vector<8x256xf32>
    %cst_74 = arith.constant 0.000000e+00 : f32
    %180 = vector.shape_cast %59 : vector<1x256xi1> to vector<1x256xi1>
    %181 = vector.broadcast %180 : vector<1x256xi1> to vector<8x256xi1>
    %182 = vector.broadcast %cst_74 : f32 to vector<8x256xf32>
    %183 = arith.select %181, %179, %182 : vector<8x256xi1>, vector<8x256xf32>
    %c2 = arith.constant 2 : index
    %c0_75 = arith.constant 0 : index
    %c0_76 = arith.constant 0 : index
    %184 = vector.load %arg3[%c2, %c0_75, %c0_76] : memref<9x8x8xbf16, #tpu.memory_space<vmem>>, vector<1x8x8xbf16>
    %185 = vector.shape_cast %184 : vector<1x8x8xbf16> to vector<8x8xbf16>
    %186 = arith.truncf %183 : vector<8x256xf32> to vector<8x256xbf16>
    %cst_77 = arith.constant dense<0.000000e+00> : vector<8x256xf32>
    %187 = tpu.matmul %185, %186, %cst_77 {dimension_numbers = #tpu.dot_dimension_numbers<[1], [0], [0], [1], [0, 0, 1, 1], [], []>} : vector<8x8xbf16>, vector<8x256xbf16>, vector<8x256xf32> -> vector<8x256xf32>
    %188 = arith.addf %178, %187 : vector<8x256xf32>
    %c1_i32_78 = arith.constant 1 : i32
    %189 = tpu.dynamic_rotate %157 by %c1_i32_78 dim 1 : vector<8x256xf32>, i32 -> vector<8x256xf32>
    %cst_79 = arith.constant 0.000000e+00 : f32
    %190 = vector.shape_cast %78 : vector<1x256xi1> to vector<1x256xi1>
    %191 = vector.broadcast %190 : vector<1x256xi1> to vector<8x256xi1>
    %192 = vector.broadcast %cst_79 : f32 to vector<8x256xf32>
    %193 = arith.select %191, %189, %192 : vector<8x256xi1>, vector<8x256xf32>
    %c3 = arith.constant 3 : index
    %c0_80 = arith.constant 0 : index
    %c0_81 = arith.constant 0 : index
    %194 = vector.load %arg3[%c3, %c0_80, %c0_81] : memref<9x8x8xbf16, #tpu.memory_space<vmem>>, vector<1x8x8xbf16>
    %195 = vector.shape_cast %194 : vector<1x8x8xbf16> to vector<8x8xbf16>
    %196 = arith.truncf %193 : vector<8x256xf32> to vector<8x256xbf16>
    %cst_82 = arith.constant dense<0.000000e+00> : vector<8x256xf32>
    %197 = tpu.matmul %195, %196, %cst_82 {dimension_numbers = #tpu.dot_dimension_numbers<[1], [0], [0], [1], [0, 0, 1, 1], [], []>} : vector<8x8xbf16>, vector<8x256xbf16>, vector<8x256xf32> -> vector<8x256xf32>
    %198 = arith.addf %188, %197 : vector<8x256xf32>
    %c4 = arith.constant 4 : index
    %c0_83 = arith.constant 0 : index
    %c0_84 = arith.constant 0 : index
    %199 = vector.load %arg3[%c4, %c0_83, %c0_84] : memref<9x8x8xbf16, #tpu.memory_space<vmem>>, vector<1x8x8xbf16>
    %200 = vector.shape_cast %199 : vector<1x8x8xbf16> to vector<8x8xbf16>
    %201 = arith.truncf %157 : vector<8x256xf32> to vector<8x256xbf16>
    %cst_85 = arith.constant dense<0.000000e+00> : vector<8x256xf32>
    %202 = tpu.matmul %200, %201, %cst_85 {dimension_numbers = #tpu.dot_dimension_numbers<[1], [0], [0], [1], [0, 0, 1, 1], [], []>} : vector<8x8xbf16>, vector<8x256xbf16>, vector<8x256xf32> -> vector<8x256xf32>
    %203 = arith.addf %198, %202 : vector<8x256xf32>
    %c255_i32 = arith.constant 255 : i32
    %204 = tpu.dynamic_rotate %157 by %c255_i32 dim 1 : vector<8x256xf32>, i32 -> vector<8x256xf32>
    %cst_86 = arith.constant 0.000000e+00 : f32
    %205 = vector.shape_cast %97 : vector<1x256xi1> to vector<1x256xi1>
    %206 = vector.broadcast %205 : vector<1x256xi1> to vector<8x256xi1>
    %207 = vector.broadcast %cst_86 : f32 to vector<8x256xf32>
    %208 = arith.select %206, %204, %207 : vector<8x256xi1>, vector<8x256xf32>
    %c5 = arith.constant 5 : index
    %c0_87 = arith.constant 0 : index
    %c0_88 = arith.constant 0 : index
    %209 = vector.load %arg3[%c5, %c0_87, %c0_88] : memref<9x8x8xbf16, #tpu.memory_space<vmem>>, vector<1x8x8xbf16>
    %210 = vector.shape_cast %209 : vector<1x8x8xbf16> to vector<8x8xbf16>
    %211 = arith.truncf %208 : vector<8x256xf32> to vector<8x256xbf16>
    %cst_89 = arith.constant dense<0.000000e+00> : vector<8x256xf32>
    %212 = tpu.matmul %210, %211, %cst_89 {dimension_numbers = #tpu.dot_dimension_numbers<[1], [0], [0], [1], [0, 0, 1, 1], [], []>} : vector<8x8xbf16>, vector<8x256xbf16>, vector<8x256xf32> -> vector<8x256xf32>
    %213 = arith.addf %203, %212 : vector<8x256xf32>
    %c241_i32 = arith.constant 241 : i32
    %214 = tpu.dynamic_rotate %157 by %c241_i32 dim 1 : vector<8x256xf32>, i32 -> vector<8x256xf32>
    %cst_90 = arith.constant 0.000000e+00 : f32
    %215 = vector.shape_cast %116 : vector<1x256xi1> to vector<1x256xi1>
    %216 = vector.broadcast %215 : vector<1x256xi1> to vector<8x256xi1>
    %217 = vector.broadcast %cst_90 : f32 to vector<8x256xf32>
    %218 = arith.select %216, %214, %217 : vector<8x256xi1>, vector<8x256xf32>
    %c6 = arith.constant 6 : index
    %c0_91 = arith.constant 0 : index
    %c0_92 = arith.constant 0 : index
    %219 = vector.load %arg3[%c6, %c0_91, %c0_92] : memref<9x8x8xbf16, #tpu.memory_space<vmem>>, vector<1x8x8xbf16>
    %220 = vector.shape_cast %219 : vector<1x8x8xbf16> to vector<8x8xbf16>
    %221 = arith.truncf %218 : vector<8x256xf32> to vector<8x256xbf16>
    %cst_93 = arith.constant dense<0.000000e+00> : vector<8x256xf32>
    %222 = tpu.matmul %220, %221, %cst_93 {dimension_numbers = #tpu.dot_dimension_numbers<[1], [0], [0], [1], [0, 0, 1, 1], [], []>} : vector<8x8xbf16>, vector<8x256xbf16>, vector<8x256xf32> -> vector<8x256xf32>
    %223 = arith.addf %213, %222 : vector<8x256xf32>
    %c240_i32 = arith.constant 240 : i32
    %224 = tpu.dynamic_rotate %157 by %c240_i32 dim 1 : vector<8x256xf32>, i32 -> vector<8x256xf32>
    %cst_94 = arith.constant 0.000000e+00 : f32
    %225 = vector.shape_cast %135 : vector<1x256xi1> to vector<1x256xi1>
    %226 = vector.broadcast %225 : vector<1x256xi1> to vector<8x256xi1>
    %227 = vector.broadcast %cst_94 : f32 to vector<8x256xf32>
    %228 = arith.select %226, %224, %227 : vector<8x256xi1>, vector<8x256xf32>
    %c7 = arith.constant 7 : index
    %c0_95 = arith.constant 0 : index
    %c0_96 = arith.constant 0 : index
    %229 = vector.load %arg3[%c7, %c0_95, %c0_96] : memref<9x8x8xbf16, #tpu.memory_space<vmem>>, vector<1x8x8xbf16>
    %230 = vector.shape_cast %229 : vector<1x8x8xbf16> to vector<8x8xbf16>
    %231 = arith.truncf %228 : vector<8x256xf32> to vector<8x256xbf16>
    %cst_97 = arith.constant dense<0.000000e+00> : vector<8x256xf32>
    %232 = tpu.matmul %230, %231, %cst_97 {dimension_numbers = #tpu.dot_dimension_numbers<[1], [0], [0], [1], [0, 0, 1, 1], [], []>} : vector<8x8xbf16>, vector<8x256xbf16>, vector<8x256xf32> -> vector<8x256xf32>
    %233 = arith.addf %223, %232 : vector<8x256xf32>
    %c239_i32 = arith.constant 239 : i32
    %234 = tpu.dynamic_rotate %157 by %c239_i32 dim 1 : vector<8x256xf32>, i32 -> vector<8x256xf32>
    %cst_98 = arith.constant 0.000000e+00 : f32
    %235 = vector.shape_cast %154 : vector<1x256xi1> to vector<1x256xi1>
    %236 = vector.broadcast %235 : vector<1x256xi1> to vector<8x256xi1>
    %237 = vector.broadcast %cst_98 : f32 to vector<8x256xf32>
    %238 = arith.select %236, %234, %237 : vector<8x256xi1>, vector<8x256xf32>
    %c8 = arith.constant 8 : index
    %c0_99 = arith.constant 0 : index
    %c0_100 = arith.constant 0 : index
    %239 = vector.load %arg3[%c8, %c0_99, %c0_100] : memref<9x8x8xbf16, #tpu.memory_space<vmem>>, vector<1x8x8xbf16>
    %240 = vector.shape_cast %239 : vector<1x8x8xbf16> to vector<8x8xbf16>
    %241 = arith.truncf %238 : vector<8x256xf32> to vector<8x256xbf16>
    %cst_101 = arith.constant dense<0.000000e+00> : vector<8x256xf32>
    %242 = tpu.matmul %240, %241, %cst_101 {dimension_numbers = #tpu.dot_dimension_numbers<[1], [0], [0], [1], [0, 0, 1, 1], [], []>} : vector<8x8xbf16>, vector<8x256xbf16>, vector<8x256xf32> -> vector<8x256xf32>
    %243 = arith.addf %233, %242 : vector<8x256xf32>
    %c0_102 = arith.constant 0 : index
    %c0_103 = arith.constant 0 : index
    %244 = vector.load %arg4[%c0_102, %c0_103] : memref<8x1xf32, #tpu.memory_space<vmem>>, vector<8x1xf32>
    %245 = vector.broadcast %244 : vector<8x1xf32> to vector<8x256xf32>
    %246 = arith.addf %243, %245 : vector<8x256xf32>
    %cst_104 = arith.constant 0.000000e+00 : f32
    %247 = vector.broadcast %cst_104 : f32 to vector<8x256xf32>
    %248 = arith.maximumf %246, %247 : vector<8x256xf32>
    %cst_105 = arith.constant 0.000000e+00 : f32
    %249 = vector.broadcast %cst_105 : f32 to vector<8x256xf32>
    %c17_i32_106 = arith.constant 17 : i32
    %250 = tpu.dynamic_rotate %248 by %c17_i32_106 dim 1 : vector<8x256xf32>, i32 -> vector<8x256xf32>
    %cst_107 = arith.constant 0.000000e+00 : f32
    %251 = vector.shape_cast %21 : vector<1x256xi1> to vector<1x256xi1>
    %252 = vector.broadcast %251 : vector<1x256xi1> to vector<8x256xi1>
    %253 = vector.broadcast %cst_107 : f32 to vector<8x256xf32>
    %254 = arith.select %252, %250, %253 : vector<8x256xi1>, vector<8x256xf32>
    %c0_108 = arith.constant 0 : index
    %c0_109 = arith.constant 0 : index
    %c0_110 = arith.constant 0 : index
    %255 = vector.load %arg5[%c0_108, %c0_109, %c0_110] : memref<9x8x8xbf16, #tpu.memory_space<vmem>>, vector<1x8x8xbf16>
    %256 = vector.shape_cast %255 : vector<1x8x8xbf16> to vector<8x8xbf16>
    %257 = arith.truncf %254 : vector<8x256xf32> to vector<8x256xbf16>
    %cst_111 = arith.constant dense<0.000000e+00> : vector<8x256xf32>
    %258 = tpu.matmul %256, %257, %cst_111 {dimension_numbers = #tpu.dot_dimension_numbers<[1], [0], [0], [1], [0, 0, 1, 1], [], []>} : vector<8x8xbf16>, vector<8x256xbf16>, vector<8x256xf32> -> vector<8x256xf32>
    %259 = arith.addf %249, %258 : vector<8x256xf32>
    %c16_i32_112 = arith.constant 16 : i32
    %260 = tpu.dynamic_rotate %248 by %c16_i32_112 dim 1 : vector<8x256xf32>, i32 -> vector<8x256xf32>
    %cst_113 = arith.constant 0.000000e+00 : f32
    %261 = vector.shape_cast %40 : vector<1x256xi1> to vector<1x256xi1>
    %262 = vector.broadcast %261 : vector<1x256xi1> to vector<8x256xi1>
    %263 = vector.broadcast %cst_113 : f32 to vector<8x256xf32>
    %264 = arith.select %262, %260, %263 : vector<8x256xi1>, vector<8x256xf32>
    %c1_114 = arith.constant 1 : index
    %c0_115 = arith.constant 0 : index
    %c0_116 = arith.constant 0 : index
    %265 = vector.load %arg5[%c1_114, %c0_115, %c0_116] : memref<9x8x8xbf16, #tpu.memory_space<vmem>>, vector<1x8x8xbf16>
    %266 = vector.shape_cast %265 : vector<1x8x8xbf16> to vector<8x8xbf16>
    %267 = arith.truncf %264 : vector<8x256xf32> to vector<8x256xbf16>
    %cst_117 = arith.constant dense<0.000000e+00> : vector<8x256xf32>
    %268 = tpu.matmul %266, %267, %cst_117 {dimension_numbers = #tpu.dot_dimension_numbers<[1], [0], [0], [1], [0, 0, 1, 1], [], []>} : vector<8x8xbf16>, vector<8x256xbf16>, vector<8x256xf32> -> vector<8x256xf32>
    %269 = arith.addf %259, %268 : vector<8x256xf32>
    %c15_i32_118 = arith.constant 15 : i32
    %270 = tpu.dynamic_rotate %248 by %c15_i32_118 dim 1 : vector<8x256xf32>, i32 -> vector<8x256xf32>
    %cst_119 = arith.constant 0.000000e+00 : f32
    %271 = vector.shape_cast %59 : vector<1x256xi1> to vector<1x256xi1>
    %272 = vector.broadcast %271 : vector<1x256xi1> to vector<8x256xi1>
    %273 = vector.broadcast %cst_119 : f32 to vector<8x256xf32>
    %274 = arith.select %272, %270, %273 : vector<8x256xi1>, vector<8x256xf32>
    %c2_120 = arith.constant 2 : index
    %c0_121 = arith.constant 0 : index
    %c0_122 = arith.constant 0 : index
    %275 = vector.load %arg5[%c2_120, %c0_121, %c0_122] : memref<9x8x8xbf16, #tpu.memory_space<vmem>>, vector<1x8x8xbf16>
    %276 = vector.shape_cast %275 : vector<1x8x8xbf16> to vector<8x8xbf16>
    %277 = arith.truncf %274 : vector<8x256xf32> to vector<8x256xbf16>
    %cst_123 = arith.constant dense<0.000000e+00> : vector<8x256xf32>
    %278 = tpu.matmul %276, %277, %cst_123 {dimension_numbers = #tpu.dot_dimension_numbers<[1], [0], [0], [1], [0, 0, 1, 1], [], []>} : vector<8x8xbf16>, vector<8x256xbf16>, vector<8x256xf32> -> vector<8x256xf32>
    %279 = arith.addf %269, %278 : vector<8x256xf32>
    %c1_i32_124 = arith.constant 1 : i32
    %280 = tpu.dynamic_rotate %248 by %c1_i32_124 dim 1 : vector<8x256xf32>, i32 -> vector<8x256xf32>
    %cst_125 = arith.constant 0.000000e+00 : f32
    %281 = vector.shape_cast %78 : vector<1x256xi1> to vector<1x256xi1>
    %282 = vector.broadcast %281 : vector<1x256xi1> to vector<8x256xi1>
    %283 = vector.broadcast %cst_125 : f32 to vector<8x256xf32>
    %284 = arith.select %282, %280, %283 : vector<8x256xi1>, vector<8x256xf32>
    %c3_126 = arith.constant 3 : index
    %c0_127 = arith.constant 0 : index
    %c0_128 = arith.constant 0 : index
    %285 = vector.load %arg5[%c3_126, %c0_127, %c0_128] : memref<9x8x8xbf16, #tpu.memory_space<vmem>>, vector<1x8x8xbf16>
    %286 = vector.shape_cast %285 : vector<1x8x8xbf16> to vector<8x8xbf16>
    %287 = arith.truncf %284 : vector<8x256xf32> to vector<8x256xbf16>
    %cst_129 = arith.constant dense<0.000000e+00> : vector<8x256xf32>
    %288 = tpu.matmul %286, %287, %cst_129 {dimension_numbers = #tpu.dot_dimension_numbers<[1], [0], [0], [1], [0, 0, 1, 1], [], []>} : vector<8x8xbf16>, vector<8x256xbf16>, vector<8x256xf32> -> vector<8x256xf32>
    %289 = arith.addf %279, %288 : vector<8x256xf32>
    %c4_130 = arith.constant 4 : index
    %c0_131 = arith.constant 0 : index
    %c0_132 = arith.constant 0 : index
    %290 = vector.load %arg5[%c4_130, %c0_131, %c0_132] : memref<9x8x8xbf16, #tpu.memory_space<vmem>>, vector<1x8x8xbf16>
    %291 = vector.shape_cast %290 : vector<1x8x8xbf16> to vector<8x8xbf16>
    %292 = arith.truncf %248 : vector<8x256xf32> to vector<8x256xbf16>
    %cst_133 = arith.constant dense<0.000000e+00> : vector<8x256xf32>
    %293 = tpu.matmul %291, %292, %cst_133 {dimension_numbers = #tpu.dot_dimension_numbers<[1], [0], [0], [1], [0, 0, 1, 1], [], []>} : vector<8x8xbf16>, vector<8x256xbf16>, vector<8x256xf32> -> vector<8x256xf32>
    %294 = arith.addf %289, %293 : vector<8x256xf32>
    %c255_i32_134 = arith.constant 255 : i32
    %295 = tpu.dynamic_rotate %248 by %c255_i32_134 dim 1 : vector<8x256xf32>, i32 -> vector<8x256xf32>
    %cst_135 = arith.constant 0.000000e+00 : f32
    %296 = vector.shape_cast %97 : vector<1x256xi1> to vector<1x256xi1>
    %297 = vector.broadcast %296 : vector<1x256xi1> to vector<8x256xi1>
    %298 = vector.broadcast %cst_135 : f32 to vector<8x256xf32>
    %299 = arith.select %297, %295, %298 : vector<8x256xi1>, vector<8x256xf32>
    %c5_136 = arith.constant 5 : index
    %c0_137 = arith.constant 0 : index
    %c0_138 = arith.constant 0 : index
    %300 = vector.load %arg5[%c5_136, %c0_137, %c0_138] : memref<9x8x8xbf16, #tpu.memory_space<vmem>>, vector<1x8x8xbf16>
    %301 = vector.shape_cast %300 : vector<1x8x8xbf16> to vector<8x8xbf16>
    %302 = arith.truncf %299 : vector<8x256xf32> to vector<8x256xbf16>
    %cst_139 = arith.constant dense<0.000000e+00> : vector<8x256xf32>
    %303 = tpu.matmul %301, %302, %cst_139 {dimension_numbers = #tpu.dot_dimension_numbers<[1], [0], [0], [1], [0, 0, 1, 1], [], []>} : vector<8x8xbf16>, vector<8x256xbf16>, vector<8x256xf32> -> vector<8x256xf32>
    %304 = arith.addf %294, %303 : vector<8x256xf32>
    %c241_i32_140 = arith.constant 241 : i32
    %305 = tpu.dynamic_rotate %248 by %c241_i32_140 dim 1 : vector<8x256xf32>, i32 -> vector<8x256xf32>
    %cst_141 = arith.constant 0.000000e+00 : f32
    %306 = vector.shape_cast %116 : vector<1x256xi1> to vector<1x256xi1>
    %307 = vector.broadcast %306 : vector<1x256xi1> to vector<8x256xi1>
    %308 = vector.broadcast %cst_141 : f32 to vector<8x256xf32>
    %309 = arith.select %307, %305, %308 : vector<8x256xi1>, vector<8x256xf32>
    %c6_142 = arith.constant 6 : index
    %c0_143 = arith.constant 0 : index
    %c0_144 = arith.constant 0 : index
    %310 = vector.load %arg5[%c6_142, %c0_143, %c0_144] : memref<9x8x8xbf16, #tpu.memory_space<vmem>>, vector<1x8x8xbf16>
    %311 = vector.shape_cast %310 : vector<1x8x8xbf16> to vector<8x8xbf16>
    %312 = arith.truncf %309 : vector<8x256xf32> to vector<8x256xbf16>
    %cst_145 = arith.constant dense<0.000000e+00> : vector<8x256xf32>
    %313 = tpu.matmul %311, %312, %cst_145 {dimension_numbers = #tpu.dot_dimension_numbers<[1], [0], [0], [1], [0, 0, 1, 1], [], []>} : vector<8x8xbf16>, vector<8x256xbf16>, vector<8x256xf32> -> vector<8x256xf32>
    %314 = arith.addf %304, %313 : vector<8x256xf32>
    %c240_i32_146 = arith.constant 240 : i32
    %315 = tpu.dynamic_rotate %248 by %c240_i32_146 dim 1 : vector<8x256xf32>, i32 -> vector<8x256xf32>
    %cst_147 = arith.constant 0.000000e+00 : f32
    %316 = vector.shape_cast %135 : vector<1x256xi1> to vector<1x256xi1>
    %317 = vector.broadcast %316 : vector<1x256xi1> to vector<8x256xi1>
    %318 = vector.broadcast %cst_147 : f32 to vector<8x256xf32>
    %319 = arith.select %317, %315, %318 : vector<8x256xi1>, vector<8x256xf32>
    %c7_148 = arith.constant 7 : index
    %c0_149 = arith.constant 0 : index
    %c0_150 = arith.constant 0 : index
    %320 = vector.load %arg5[%c7_148, %c0_149, %c0_150] : memref<9x8x8xbf16, #tpu.memory_space<vmem>>, vector<1x8x8xbf16>
    %321 = vector.shape_cast %320 : vector<1x8x8xbf16> to vector<8x8xbf16>
    %322 = arith.truncf %319 : vector<8x256xf32> to vector<8x256xbf16>
    %cst_151 = arith.constant dense<0.000000e+00> : vector<8x256xf32>
    %323 = tpu.matmul %321, %322, %cst_151 {dimension_numbers = #tpu.dot_dimension_numbers<[1], [0], [0], [1], [0, 0, 1, 1], [], []>} : vector<8x8xbf16>, vector<8x256xbf16>, vector<8x256xf32> -> vector<8x256xf32>
    %324 = arith.addf %314, %323 : vector<8x256xf32>
    %c239_i32_152 = arith.constant 239 : i32
    %325 = tpu.dynamic_rotate %248 by %c239_i32_152 dim 1 : vector<8x256xf32>, i32 -> vector<8x256xf32>
    %cst_153 = arith.constant 0.000000e+00 : f32
    %326 = vector.shape_cast %154 : vector<1x256xi1> to vector<1x256xi1>
    %327 = vector.broadcast %326 : vector<1x256xi1> to vector<8x256xi1>
    %328 = vector.broadcast %cst_153 : f32 to vector<8x256xf32>
    %329 = arith.select %327, %325, %328 : vector<8x256xi1>, vector<8x256xf32>
    %c8_154 = arith.constant 8 : index
    %c0_155 = arith.constant 0 : index
    %c0_156 = arith.constant 0 : index
    %330 = vector.load %arg5[%c8_154, %c0_155, %c0_156] : memref<9x8x8xbf16, #tpu.memory_space<vmem>>, vector<1x8x8xbf16>
    %331 = vector.shape_cast %330 : vector<1x8x8xbf16> to vector<8x8xbf16>
    %332 = arith.truncf %329 : vector<8x256xf32> to vector<8x256xbf16>
    %cst_157 = arith.constant dense<0.000000e+00> : vector<8x256xf32>
    %333 = tpu.matmul %331, %332, %cst_157 {dimension_numbers = #tpu.dot_dimension_numbers<[1], [0], [0], [1], [0, 0, 1, 1], [], []>} : vector<8x8xbf16>, vector<8x256xbf16>, vector<8x256xf32> -> vector<8x256xf32>
    %334 = arith.addf %324, %333 : vector<8x256xf32>
    %c0_158 = arith.constant 0 : index
    %c0_159 = arith.constant 0 : index
    %335 = vector.load %arg6[%c0_158, %c0_159] : memref<8x1xf32, #tpu.memory_space<vmem>>, vector<8x1xf32>
    %336 = vector.broadcast %335 : vector<8x1xf32> to vector<8x256xf32>
    %337 = arith.addf %334, %336 : vector<8x256xf32>
    %c0_160 = arith.constant 0 : index
    %c0_161 = arith.constant 0 : index
    %338 = vector.load %arg7[%c0_160, %c0_161] : memref<8x8xbf16, #tpu.memory_space<vmem>>, vector<8x8xbf16>
    %339 = arith.truncf %157 : vector<8x256xf32> to vector<8x256xbf16>
    %cst_162 = arith.constant dense<0.000000e+00> : vector<8x256xf32>
    %340 = tpu.matmul %338, %339, %cst_162 {dimension_numbers = #tpu.dot_dimension_numbers<[1], [0], [0], [1], [0, 0, 1, 1], [], []>} : vector<8x8xbf16>, vector<8x256xbf16>, vector<8x256xf32> -> vector<8x256xf32>
    %341 = arith.addf %337, %340 : vector<8x256xf32>
    %cst_163 = arith.constant 0.000000e+00 : f32
    %342 = vector.broadcast %cst_163 : f32 to vector<8x256xf32>
    %343 = arith.maximumf %341, %342 : vector<8x256xf32>
    %cst_164 = arith.constant 0.000000e+00 : f32
    %344 = vector.broadcast %cst_164 : f32 to vector<8x256xf32>
    %c17_i32_165 = arith.constant 17 : i32
    %345 = tpu.dynamic_rotate %343 by %c17_i32_165 dim 1 : vector<8x256xf32>, i32 -> vector<8x256xf32>
    %cst_166 = arith.constant 0.000000e+00 : f32
    %346 = vector.shape_cast %21 : vector<1x256xi1> to vector<1x256xi1>
    %347 = vector.broadcast %346 : vector<1x256xi1> to vector<8x256xi1>
    %348 = vector.broadcast %cst_166 : f32 to vector<8x256xf32>
    %349 = arith.select %347, %345, %348 : vector<8x256xi1>, vector<8x256xf32>
    %c0_167 = arith.constant 0 : index
    %c0_168 = arith.constant 0 : index
    %c0_169 = arith.constant 0 : index
    %350 = vector.load %arg8[%c0_167, %c0_168, %c0_169] : memref<9x8x8xbf16, #tpu.memory_space<vmem>>, vector<1x8x8xbf16>
    %351 = vector.shape_cast %350 : vector<1x8x8xbf16> to vector<8x8xbf16>
    %352 = arith.truncf %349 : vector<8x256xf32> to vector<8x256xbf16>
    %cst_170 = arith.constant dense<0.000000e+00> : vector<8x256xf32>
    %353 = tpu.matmul %351, %352, %cst_170 {dimension_numbers = #tpu.dot_dimension_numbers<[1], [0], [0], [1], [0, 0, 1, 1], [], []>} : vector<8x8xbf16>, vector<8x256xbf16>, vector<8x256xf32> -> vector<8x256xf32>
    %354 = arith.addf %344, %353 : vector<8x256xf32>
    %c16_i32_171 = arith.constant 16 : i32
    %355 = tpu.dynamic_rotate %343 by %c16_i32_171 dim 1 : vector<8x256xf32>, i32 -> vector<8x256xf32>
    %cst_172 = arith.constant 0.000000e+00 : f32
    %356 = vector.shape_cast %40 : vector<1x256xi1> to vector<1x256xi1>
    %357 = vector.broadcast %356 : vector<1x256xi1> to vector<8x256xi1>
    %358 = vector.broadcast %cst_172 : f32 to vector<8x256xf32>
    %359 = arith.select %357, %355, %358 : vector<8x256xi1>, vector<8x256xf32>
    %c1_173 = arith.constant 1 : index
    %c0_174 = arith.constant 0 : index
    %c0_175 = arith.constant 0 : index
    %360 = vector.load %arg8[%c1_173, %c0_174, %c0_175] : memref<9x8x8xbf16, #tpu.memory_space<vmem>>, vector<1x8x8xbf16>
    %361 = vector.shape_cast %360 : vector<1x8x8xbf16> to vector<8x8xbf16>
    %362 = arith.truncf %359 : vector<8x256xf32> to vector<8x256xbf16>
    %cst_176 = arith.constant dense<0.000000e+00> : vector<8x256xf32>
    %363 = tpu.matmul %361, %362, %cst_176 {dimension_numbers = #tpu.dot_dimension_numbers<[1], [0], [0], [1], [0, 0, 1, 1], [], []>} : vector<8x8xbf16>, vector<8x256xbf16>, vector<8x256xf32> -> vector<8x256xf32>
    %364 = arith.addf %354, %363 : vector<8x256xf32>
    %c15_i32_177 = arith.constant 15 : i32
    %365 = tpu.dynamic_rotate %343 by %c15_i32_177 dim 1 : vector<8x256xf32>, i32 -> vector<8x256xf32>
    %cst_178 = arith.constant 0.000000e+00 : f32
    %366 = vector.shape_cast %59 : vector<1x256xi1> to vector<1x256xi1>
    %367 = vector.broadcast %366 : vector<1x256xi1> to vector<8x256xi1>
    %368 = vector.broadcast %cst_178 : f32 to vector<8x256xf32>
    %369 = arith.select %367, %365, %368 : vector<8x256xi1>, vector<8x256xf32>
    %c2_179 = arith.constant 2 : index
    %c0_180 = arith.constant 0 : index
    %c0_181 = arith.constant 0 : index
    %370 = vector.load %arg8[%c2_179, %c0_180, %c0_181] : memref<9x8x8xbf16, #tpu.memory_space<vmem>>, vector<1x8x8xbf16>
    %371 = vector.shape_cast %370 : vector<1x8x8xbf16> to vector<8x8xbf16>
    %372 = arith.truncf %369 : vector<8x256xf32> to vector<8x256xbf16>
    %cst_182 = arith.constant dense<0.000000e+00> : vector<8x256xf32>
    %373 = tpu.matmul %371, %372, %cst_182 {dimension_numbers = #tpu.dot_dimension_numbers<[1], [0], [0], [1], [0, 0, 1, 1], [], []>} : vector<8x8xbf16>, vector<8x256xbf16>, vector<8x256xf32> -> vector<8x256xf32>
    %374 = arith.addf %364, %373 : vector<8x256xf32>
    %c1_i32_183 = arith.constant 1 : i32
    %375 = tpu.dynamic_rotate %343 by %c1_i32_183 dim 1 : vector<8x256xf32>, i32 -> vector<8x256xf32>
    %cst_184 = arith.constant 0.000000e+00 : f32
    %376 = vector.shape_cast %78 : vector<1x256xi1> to vector<1x256xi1>
    %377 = vector.broadcast %376 : vector<1x256xi1> to vector<8x256xi1>
    %378 = vector.broadcast %cst_184 : f32 to vector<8x256xf32>
    %379 = arith.select %377, %375, %378 : vector<8x256xi1>, vector<8x256xf32>
    %c3_185 = arith.constant 3 : index
    %c0_186 = arith.constant 0 : index
    %c0_187 = arith.constant 0 : index
    %380 = vector.load %arg8[%c3_185, %c0_186, %c0_187] : memref<9x8x8xbf16, #tpu.memory_space<vmem>>, vector<1x8x8xbf16>
    %381 = vector.shape_cast %380 : vector<1x8x8xbf16> to vector<8x8xbf16>
    %382 = arith.truncf %379 : vector<8x256xf32> to vector<8x256xbf16>
    %cst_188 = arith.constant dense<0.000000e+00> : vector<8x256xf32>
    %383 = tpu.matmul %381, %382, %cst_188 {dimension_numbers = #tpu.dot_dimension_numbers<[1], [0], [0], [1], [0, 0, 1, 1], [], []>} : vector<8x8xbf16>, vector<8x256xbf16>, vector<8x256xf32> -> vector<8x256xf32>
    %384 = arith.addf %374, %383 : vector<8x256xf32>
    %c4_189 = arith.constant 4 : index
    %c0_190 = arith.constant 0 : index
    %c0_191 = arith.constant 0 : index
    %385 = vector.load %arg8[%c4_189, %c0_190, %c0_191] : memref<9x8x8xbf16, #tpu.memory_space<vmem>>, vector<1x8x8xbf16>
    %386 = vector.shape_cast %385 : vector<1x8x8xbf16> to vector<8x8xbf16>
    %387 = arith.truncf %343 : vector<8x256xf32> to vector<8x256xbf16>
    %cst_192 = arith.constant dense<0.000000e+00> : vector<8x256xf32>
    %388 = tpu.matmul %386, %387, %cst_192 {dimension_numbers = #tpu.dot_dimension_numbers<[1], [0], [0], [1], [0, 0, 1, 1], [], []>} : vector<8x8xbf16>, vector<8x256xbf16>, vector<8x256xf32> -> vector<8x256xf32>
    %389 = arith.addf %384, %388 : vector<8x256xf32>
    %c255_i32_193 = arith.constant 255 : i32
    %390 = tpu.dynamic_rotate %343 by %c255_i32_193 dim 1 : vector<8x256xf32>, i32 -> vector<8x256xf32>
    %cst_194 = arith.constant 0.000000e+00 : f32
    %391 = vector.shape_cast %97 : vector<1x256xi1> to vector<1x256xi1>
    %392 = vector.broadcast %391 : vector<1x256xi1> to vector<8x256xi1>
    %393 = vector.broadcast %cst_194 : f32 to vector<8x256xf32>
    %394 = arith.select %392, %390, %393 : vector<8x256xi1>, vector<8x256xf32>
    %c5_195 = arith.constant 5 : index
    %c0_196 = arith.constant 0 : index
    %c0_197 = arith.constant 0 : index
    %395 = vector.load %arg8[%c5_195, %c0_196, %c0_197] : memref<9x8x8xbf16, #tpu.memory_space<vmem>>, vector<1x8x8xbf16>
    %396 = vector.shape_cast %395 : vector<1x8x8xbf16> to vector<8x8xbf16>
    %397 = arith.truncf %394 : vector<8x256xf32> to vector<8x256xbf16>
    %cst_198 = arith.constant dense<0.000000e+00> : vector<8x256xf32>
    %398 = tpu.matmul %396, %397, %cst_198 {dimension_numbers = #tpu.dot_dimension_numbers<[1], [0], [0], [1], [0, 0, 1, 1], [], []>} : vector<8x8xbf16>, vector<8x256xbf16>, vector<8x256xf32> -> vector<8x256xf32>
    %399 = arith.addf %389, %398 : vector<8x256xf32>
    %c241_i32_199 = arith.constant 241 : i32
    %400 = tpu.dynamic_rotate %343 by %c241_i32_199 dim 1 : vector<8x256xf32>, i32 -> vector<8x256xf32>
    %cst_200 = arith.constant 0.000000e+00 : f32
    %401 = vector.shape_cast %116 : vector<1x256xi1> to vector<1x256xi1>
    %402 = vector.broadcast %401 : vector<1x256xi1> to vector<8x256xi1>
    %403 = vector.broadcast %cst_200 : f32 to vector<8x256xf32>
    %404 = arith.select %402, %400, %403 : vector<8x256xi1>, vector<8x256xf32>
    %c6_201 = arith.constant 6 : index
    %c0_202 = arith.constant 0 : index
    %c0_203 = arith.constant 0 : index
    %405 = vector.load %arg8[%c6_201, %c0_202, %c0_203] : memref<9x8x8xbf16, #tpu.memory_space<vmem>>, vector<1x8x8xbf16>
    %406 = vector.shape_cast %405 : vector<1x8x8xbf16> to vector<8x8xbf16>
    %407 = arith.truncf %404 : vector<8x256xf32> to vector<8x256xbf16>
    %cst_204 = arith.constant dense<0.000000e+00> : vector<8x256xf32>
    %408 = tpu.matmul %406, %407, %cst_204 {dimension_numbers = #tpu.dot_dimension_numbers<[1], [0], [0], [1], [0, 0, 1, 1], [], []>} : vector<8x8xbf16>, vector<8x256xbf16>, vector<8x256xf32> -> vector<8x256xf32>
    %409 = arith.addf %399, %408 : vector<8x256xf32>
    %c240_i32_205 = arith.constant 240 : i32
    %410 = tpu.dynamic_rotate %343 by %c240_i32_205 dim 1 : vector<8x256xf32>, i32 -> vector<8x256xf32>
    %cst_206 = arith.constant 0.000000e+00 : f32
    %411 = vector.shape_cast %135 : vector<1x256xi1> to vector<1x256xi1>
    %412 = vector.broadcast %411 : vector<1x256xi1> to vector<8x256xi1>
    %413 = vector.broadcast %cst_206 : f32 to vector<8x256xf32>
    %414 = arith.select %412, %410, %413 : vector<8x256xi1>, vector<8x256xf32>
    %c7_207 = arith.constant 7 : index
    %c0_208 = arith.constant 0 : index
    %c0_209 = arith.constant 0 : index
    %415 = vector.load %arg8[%c7_207, %c0_208, %c0_209] : memref<9x8x8xbf16, #tpu.memory_space<vmem>>, vector<1x8x8xbf16>
    %416 = vector.shape_cast %415 : vector<1x8x8xbf16> to vector<8x8xbf16>
    %417 = arith.truncf %414 : vector<8x256xf32> to vector<8x256xbf16>
    %cst_210 = arith.constant dense<0.000000e+00> : vector<8x256xf32>
    %418 = tpu.matmul %416, %417, %cst_210 {dimension_numbers = #tpu.dot_dimension_numbers<[1], [0], [0], [1], [0, 0, 1, 1], [], []>} : vector<8x8xbf16>, vector<8x256xbf16>, vector<8x256xf32> -> vector<8x256xf32>
    %419 = arith.addf %409, %418 : vector<8x256xf32>
    %c239_i32_211 = arith.constant 239 : i32
    %420 = tpu.dynamic_rotate %343 by %c239_i32_211 dim 1 : vector<8x256xf32>, i32 -> vector<8x256xf32>
    %cst_212 = arith.constant 0.000000e+00 : f32
    %421 = vector.shape_cast %154 : vector<1x256xi1> to vector<1x256xi1>
    %422 = vector.broadcast %421 : vector<1x256xi1> to vector<8x256xi1>
    %423 = vector.broadcast %cst_212 : f32 to vector<8x256xf32>
    %424 = arith.select %422, %420, %423 : vector<8x256xi1>, vector<8x256xf32>
    %c8_213 = arith.constant 8 : index
    %c0_214 = arith.constant 0 : index
    %c0_215 = arith.constant 0 : index
    %425 = vector.load %arg8[%c8_213, %c0_214, %c0_215] : memref<9x8x8xbf16, #tpu.memory_space<vmem>>, vector<1x8x8xbf16>
    %426 = vector.shape_cast %425 : vector<1x8x8xbf16> to vector<8x8xbf16>
    %427 = arith.truncf %424 : vector<8x256xf32> to vector<8x256xbf16>
    %cst_216 = arith.constant dense<0.000000e+00> : vector<8x256xf32>
    %428 = tpu.matmul %426, %427, %cst_216 {dimension_numbers = #tpu.dot_dimension_numbers<[1], [0], [0], [1], [0, 0, 1, 1], [], []>} : vector<8x8xbf16>, vector<8x256xbf16>, vector<8x256xf32> -> vector<8x256xf32>
    %429 = arith.addf %419, %428 : vector<8x256xf32>
    %c0_217 = arith.constant 0 : index
    %c0_218 = arith.constant 0 : index
    %430 = vector.load %arg9[%c0_217, %c0_218] : memref<8x1xf32, #tpu.memory_space<vmem>>, vector<8x1xf32>
    %431 = vector.broadcast %430 : vector<8x1xf32> to vector<8x256xf32>
    %432 = arith.addf %429, %431 : vector<8x256xf32>
    %cst_219 = arith.constant 0.000000e+00 : f32
    %433 = vector.broadcast %cst_219 : f32 to vector<8x256xf32>
    %434 = arith.maximumf %432, %433 : vector<8x256xf32>
    %cst_220 = arith.constant 0.000000e+00 : f32
    %435 = vector.broadcast %cst_220 : f32 to vector<8x256xf32>
    %c17_i32_221 = arith.constant 17 : i32
    %436 = tpu.dynamic_rotate %434 by %c17_i32_221 dim 1 : vector<8x256xf32>, i32 -> vector<8x256xf32>
    %cst_222 = arith.constant 0.000000e+00 : f32
    %437 = vector.shape_cast %21 : vector<1x256xi1> to vector<1x256xi1>
    %438 = vector.broadcast %437 : vector<1x256xi1> to vector<8x256xi1>
    %439 = vector.broadcast %cst_222 : f32 to vector<8x256xf32>
    %440 = arith.select %438, %436, %439 : vector<8x256xi1>, vector<8x256xf32>
    %c0_223 = arith.constant 0 : index
    %c0_224 = arith.constant 0 : index
    %c0_225 = arith.constant 0 : index
    %441 = vector.load %arg10[%c0_223, %c0_224, %c0_225] : memref<9x8x8xbf16, #tpu.memory_space<vmem>>, vector<1x8x8xbf16>
    %442 = vector.shape_cast %441 : vector<1x8x8xbf16> to vector<8x8xbf16>
    %443 = arith.truncf %440 : vector<8x256xf32> to vector<8x256xbf16>
    %cst_226 = arith.constant dense<0.000000e+00> : vector<8x256xf32>
    %444 = tpu.matmul %442, %443, %cst_226 {dimension_numbers = #tpu.dot_dimension_numbers<[1], [0], [0], [1], [0, 0, 1, 1], [], []>} : vector<8x8xbf16>, vector<8x256xbf16>, vector<8x256xf32> -> vector<8x256xf32>
    %445 = arith.addf %435, %444 : vector<8x256xf32>
    %c16_i32_227 = arith.constant 16 : i32
    %446 = tpu.dynamic_rotate %434 by %c16_i32_227 dim 1 : vector<8x256xf32>, i32 -> vector<8x256xf32>
    %cst_228 = arith.constant 0.000000e+00 : f32
    %447 = vector.shape_cast %40 : vector<1x256xi1> to vector<1x256xi1>
    %448 = vector.broadcast %447 : vector<1x256xi1> to vector<8x256xi1>
    %449 = vector.broadcast %cst_228 : f32 to vector<8x256xf32>
    %450 = arith.select %448, %446, %449 : vector<8x256xi1>, vector<8x256xf32>
    %c1_229 = arith.constant 1 : index
    %c0_230 = arith.constant 0 : index
    %c0_231 = arith.constant 0 : index
    %451 = vector.load %arg10[%c1_229, %c0_230, %c0_231] : memref<9x8x8xbf16, #tpu.memory_space<vmem>>, vector<1x8x8xbf16>
    %452 = vector.shape_cast %451 : vector<1x8x8xbf16> to vector<8x8xbf16>
    %453 = arith.truncf %450 : vector<8x256xf32> to vector<8x256xbf16>
    %cst_232 = arith.constant dense<0.000000e+00> : vector<8x256xf32>
    %454 = tpu.matmul %452, %453, %cst_232 {dimension_numbers = #tpu.dot_dimension_numbers<[1], [0], [0], [1], [0, 0, 1, 1], [], []>} : vector<8x8xbf16>, vector<8x256xbf16>, vector<8x256xf32> -> vector<8x256xf32>
    %455 = arith.addf %445, %454 : vector<8x256xf32>
    %c15_i32_233 = arith.constant 15 : i32
    %456 = tpu.dynamic_rotate %434 by %c15_i32_233 dim 1 : vector<8x256xf32>, i32 -> vector<8x256xf32>
    %cst_234 = arith.constant 0.000000e+00 : f32
    %457 = vector.shape_cast %59 : vector<1x256xi1> to vector<1x256xi1>
    %458 = vector.broadcast %457 : vector<1x256xi1> to vector<8x256xi1>
    %459 = vector.broadcast %cst_234 : f32 to vector<8x256xf32>
    %460 = arith.select %458, %456, %459 : vector<8x256xi1>, vector<8x256xf32>
    %c2_235 = arith.constant 2 : index
    %c0_236 = arith.constant 0 : index
    %c0_237 = arith.constant 0 : index
    %461 = vector.load %arg10[%c2_235, %c0_236, %c0_237] : memref<9x8x8xbf16, #tpu.memory_space<vmem>>, vector<1x8x8xbf16>
    %462 = vector.shape_cast %461 : vector<1x8x8xbf16> to vector<8x8xbf16>
    %463 = arith.truncf %460 : vector<8x256xf32> to vector<8x256xbf16>
    %cst_238 = arith.constant dense<0.000000e+00> : vector<8x256xf32>
    %464 = tpu.matmul %462, %463, %cst_238 {dimension_numbers = #tpu.dot_dimension_numbers<[1], [0], [0], [1], [0, 0, 1, 1], [], []>} : vector<8x8xbf16>, vector<8x256xbf16>, vector<8x256xf32> -> vector<8x256xf32>
    %465 = arith.addf %455, %464 : vector<8x256xf32>
    %c1_i32_239 = arith.constant 1 : i32
    %466 = tpu.dynamic_rotate %434 by %c1_i32_239 dim 1 : vector<8x256xf32>, i32 -> vector<8x256xf32>
    %cst_240 = arith.constant 0.000000e+00 : f32
    %467 = vector.shape_cast %78 : vector<1x256xi1> to vector<1x256xi1>
    %468 = vector.broadcast %467 : vector<1x256xi1> to vector<8x256xi1>
    %469 = vector.broadcast %cst_240 : f32 to vector<8x256xf32>
    %470 = arith.select %468, %466, %469 : vector<8x256xi1>, vector<8x256xf32>
    %c3_241 = arith.constant 3 : index
    %c0_242 = arith.constant 0 : index
    %c0_243 = arith.constant 0 : index
    %471 = vector.load %arg10[%c3_241, %c0_242, %c0_243] : memref<9x8x8xbf16, #tpu.memory_space<vmem>>, vector<1x8x8xbf16>
    %472 = vector.shape_cast %471 : vector<1x8x8xbf16> to vector<8x8xbf16>
    %473 = arith.truncf %470 : vector<8x256xf32> to vector<8x256xbf16>
    %cst_244 = arith.constant dense<0.000000e+00> : vector<8x256xf32>
    %474 = tpu.matmul %472, %473, %cst_244 {dimension_numbers = #tpu.dot_dimension_numbers<[1], [0], [0], [1], [0, 0, 1, 1], [], []>} : vector<8x8xbf16>, vector<8x256xbf16>, vector<8x256xf32> -> vector<8x256xf32>
    %475 = arith.addf %465, %474 : vector<8x256xf32>
    %c4_245 = arith.constant 4 : index
    %c0_246 = arith.constant 0 : index
    %c0_247 = arith.constant 0 : index
    %476 = vector.load %arg10[%c4_245, %c0_246, %c0_247] : memref<9x8x8xbf16, #tpu.memory_space<vmem>>, vector<1x8x8xbf16>
    %477 = vector.shape_cast %476 : vector<1x8x8xbf16> to vector<8x8xbf16>
    %478 = arith.truncf %434 : vector<8x256xf32> to vector<8x256xbf16>
    %cst_248 = arith.constant dense<0.000000e+00> : vector<8x256xf32>
    %479 = tpu.matmul %477, %478, %cst_248 {dimension_numbers = #tpu.dot_dimension_numbers<[1], [0], [0], [1], [0, 0, 1, 1], [], []>} : vector<8x8xbf16>, vector<8x256xbf16>, vector<8x256xf32> -> vector<8x256xf32>
    %480 = arith.addf %475, %479 : vector<8x256xf32>
    %c255_i32_249 = arith.constant 255 : i32
    %481 = tpu.dynamic_rotate %434 by %c255_i32_249 dim 1 : vector<8x256xf32>, i32 -> vector<8x256xf32>
    %cst_250 = arith.constant 0.000000e+00 : f32
    %482 = vector.shape_cast %97 : vector<1x256xi1> to vector<1x256xi1>
    %483 = vector.broadcast %482 : vector<1x256xi1> to vector<8x256xi1>
    %484 = vector.broadcast %cst_250 : f32 to vector<8x256xf32>
    %485 = arith.select %483, %481, %484 : vector<8x256xi1>, vector<8x256xf32>
    %c5_251 = arith.constant 5 : index
    %c0_252 = arith.constant 0 : index
    %c0_253 = arith.constant 0 : index
    %486 = vector.load %arg10[%c5_251, %c0_252, %c0_253] : memref<9x8x8xbf16, #tpu.memory_space<vmem>>, vector<1x8x8xbf16>
    %487 = vector.shape_cast %486 : vector<1x8x8xbf16> to vector<8x8xbf16>
    %488 = arith.truncf %485 : vector<8x256xf32> to vector<8x256xbf16>
    %cst_254 = arith.constant dense<0.000000e+00> : vector<8x256xf32>
    %489 = tpu.matmul %487, %488, %cst_254 {dimension_numbers = #tpu.dot_dimension_numbers<[1], [0], [0], [1], [0, 0, 1, 1], [], []>} : vector<8x8xbf16>, vector<8x256xbf16>, vector<8x256xf32> -> vector<8x256xf32>
    %490 = arith.addf %480, %489 : vector<8x256xf32>
    %c241_i32_255 = arith.constant 241 : i32
    %491 = tpu.dynamic_rotate %434 by %c241_i32_255 dim 1 : vector<8x256xf32>, i32 -> vector<8x256xf32>
    %cst_256 = arith.constant 0.000000e+00 : f32
    %492 = vector.shape_cast %116 : vector<1x256xi1> to vector<1x256xi1>
    %493 = vector.broadcast %492 : vector<1x256xi1> to vector<8x256xi1>
    %494 = vector.broadcast %cst_256 : f32 to vector<8x256xf32>
    %495 = arith.select %493, %491, %494 : vector<8x256xi1>, vector<8x256xf32>
    %c6_257 = arith.constant 6 : index
    %c0_258 = arith.constant 0 : index
    %c0_259 = arith.constant 0 : index
    %496 = vector.load %arg10[%c6_257, %c0_258, %c0_259] : memref<9x8x8xbf16, #tpu.memory_space<vmem>>, vector<1x8x8xbf16>
    %497 = vector.shape_cast %496 : vector<1x8x8xbf16> to vector<8x8xbf16>
    %498 = arith.truncf %495 : vector<8x256xf32> to vector<8x256xbf16>
    %cst_260 = arith.constant dense<0.000000e+00> : vector<8x256xf32>
    %499 = tpu.matmul %497, %498, %cst_260 {dimension_numbers = #tpu.dot_dimension_numbers<[1], [0], [0], [1], [0, 0, 1, 1], [], []>} : vector<8x8xbf16>, vector<8x256xbf16>, vector<8x256xf32> -> vector<8x256xf32>
    %500 = arith.addf %490, %499 : vector<8x256xf32>
    %c240_i32_261 = arith.constant 240 : i32
    %501 = tpu.dynamic_rotate %434 by %c240_i32_261 dim 1 : vector<8x256xf32>, i32 -> vector<8x256xf32>
    %cst_262 = arith.constant 0.000000e+00 : f32
    %502 = vector.shape_cast %135 : vector<1x256xi1> to vector<1x256xi1>
    %503 = vector.broadcast %502 : vector<1x256xi1> to vector<8x256xi1>
    %504 = vector.broadcast %cst_262 : f32 to vector<8x256xf32>
    %505 = arith.select %503, %501, %504 : vector<8x256xi1>, vector<8x256xf32>
    %c7_263 = arith.constant 7 : index
    %c0_264 = arith.constant 0 : index
    %c0_265 = arith.constant 0 : index
    %506 = vector.load %arg10[%c7_263, %c0_264, %c0_265] : memref<9x8x8xbf16, #tpu.memory_space<vmem>>, vector<1x8x8xbf16>
    %507 = vector.shape_cast %506 : vector<1x8x8xbf16> to vector<8x8xbf16>
    %508 = arith.truncf %505 : vector<8x256xf32> to vector<8x256xbf16>
    %cst_266 = arith.constant dense<0.000000e+00> : vector<8x256xf32>
    %509 = tpu.matmul %507, %508, %cst_266 {dimension_numbers = #tpu.dot_dimension_numbers<[1], [0], [0], [1], [0, 0, 1, 1], [], []>} : vector<8x8xbf16>, vector<8x256xbf16>, vector<8x256xf32> -> vector<8x256xf32>
    %510 = arith.addf %500, %509 : vector<8x256xf32>
    %c239_i32_267 = arith.constant 239 : i32
    %511 = tpu.dynamic_rotate %434 by %c239_i32_267 dim 1 : vector<8x256xf32>, i32 -> vector<8x256xf32>
    %cst_268 = arith.constant 0.000000e+00 : f32
    %512 = vector.shape_cast %154 : vector<1x256xi1> to vector<1x256xi1>
    %513 = vector.broadcast %512 : vector<1x256xi1> to vector<8x256xi1>
    %514 = vector.broadcast %cst_268 : f32 to vector<8x256xf32>
    %515 = arith.select %513, %511, %514 : vector<8x256xi1>, vector<8x256xf32>
    %c8_269 = arith.constant 8 : index
    %c0_270 = arith.constant 0 : index
    %c0_271 = arith.constant 0 : index
    %516 = vector.load %arg10[%c8_269, %c0_270, %c0_271] : memref<9x8x8xbf16, #tpu.memory_space<vmem>>, vector<1x8x8xbf16>
    %517 = vector.shape_cast %516 : vector<1x8x8xbf16> to vector<8x8xbf16>
    %518 = arith.truncf %515 : vector<8x256xf32> to vector<8x256xbf16>
    %cst_272 = arith.constant dense<0.000000e+00> : vector<8x256xf32>
    %519 = tpu.matmul %517, %518, %cst_272 {dimension_numbers = #tpu.dot_dimension_numbers<[1], [0], [0], [1], [0, 0, 1, 1], [], []>} : vector<8x8xbf16>, vector<8x256xbf16>, vector<8x256xf32> -> vector<8x256xf32>
    %520 = arith.addf %510, %519 : vector<8x256xf32>
    %c0_273 = arith.constant 0 : index
    %c0_274 = arith.constant 0 : index
    %521 = vector.load %arg11[%c0_273, %c0_274] : memref<8x1xf32, #tpu.memory_space<vmem>>, vector<8x1xf32>
    %522 = vector.broadcast %521 : vector<8x1xf32> to vector<8x256xf32>
    %523 = arith.addf %520, %522 : vector<8x256xf32>
    %524 = arith.addf %523, %343 : vector<8x256xf32>
    %cst_275 = arith.constant 0.000000e+00 : f32
    %525 = vector.broadcast %cst_275 : f32 to vector<8x256xf32>
    %526 = arith.maximumf %524, %525 : vector<8x256xf32>
    %527 = arith.truncf %526 : vector<8x256xf32> to vector<8x256xbf16>
    %c0_276 = arith.constant 0 : index
    %c0_277 = arith.constant 0 : index
    %c0_278 = arith.constant 0 : index
    %528 = vector.load %arg12[%c0_276, %c0_277, %c0_278] : memref<1x8x256xbf16, #tpu.memory_space<vmem>>, vector<1x8x256xbf16>
    %529 = vector.shape_cast %528 : vector<1x8x256xbf16> to vector<8x256xbf16>
    %530 = vector.shape_cast %527 : vector<8x256xbf16> to vector<1x8x256xbf16>
    tpu.vector_store %arg12[%c0_276, %c0_277, %c0_278], %530 {strides = array<i32>} : memref<1x8x256xbf16, #tpu.memory_space<vmem>>, vector<1x8x256xbf16>,
    return
  }
  func.func @transform_0(%arg0: i32) -> (i32, i32, i32) {
    %c0_i32 = arith.constant 0 : i32
    %c0_i32_0 = arith.constant 0 : i32
    %c0_i32_1 = arith.constant 0 : i32
    return %arg0, %c0_i32, %c0_i32_0 : i32, i32, i32
  }
  func.func @transform_1(%arg0: i32) -> (i32, i32) {
    %c0_i32 = arith.constant 0 : i32
    %c0_i32_0 = arith.constant 0 : i32
    %c0_i32_1 = arith.constant 0 : i32
    return %c0_i32, %c0_i32_0 : i32, i32
  }
  func.func @transform_2(%arg0: i32) -> (i32, i32, i32) {
    %c0_i32 = arith.constant 0 : i32
    %c0_i32_0 = arith.constant 0 : i32
    %c0_i32_1 = arith.constant 0 : i32
    %c0_i32_2 = arith.constant 0 : i32
    return %c0_i32, %c0_i32_0, %c0_i32_1 : i32, i32, i32
  }
  func.func @transform_3(%arg0: i32) -> (i32, i32) {
    %c0_i32 = arith.constant 0 : i32
    %c0_i32_0 = arith.constant 0 : i32
    %c0_i32_1 = arith.constant 0 : i32
    return %c0_i32, %c0_i32_0 : i32, i32
  }
  func.func @transform_4(%arg0: i32) -> (i32, i32, i32) {
    %c0_i32 = arith.constant 0 : i32
    %c0_i32_0 = arith.constant 0 : i32
    %c0_i32_1 = arith.constant 0 : i32
    %c0_i32_2 = arith.constant 0 : i32
    return %c0_i32, %c0_i32_0, %c0_i32_1 : i32, i32, i32
  }
  func.func @transform_5(%arg0: i32) -> (i32, i32) {
    %c0_i32 = arith.constant 0 : i32
    %c0_i32_0 = arith.constant 0 : i32
    %c0_i32_1 = arith.constant 0 : i32
    return %c0_i32, %c0_i32_0 : i32, i32
  }
  func.func @transform_6(%arg0: i32) -> (i32, i32) {
    %c0_i32 = arith.constant 0 : i32
    %c0_i32_0 = arith.constant 0 : i32
    %c0_i32_1 = arith.constant 0 : i32
    return %c0_i32, %c0_i32_0 : i32, i32
  }
  func.func @transform_7(%arg0: i32) -> (i32, i32, i32) {
    %c0_i32 = arith.constant 0 : i32
    %c0_i32_0 = arith.constant 0 : i32
    %c0_i32_1 = arith.constant 0 : i32
    %c0_i32_2 = arith.constant 0 : i32
    return %c0_i32, %c0_i32_0, %c0_i32_1 : i32, i32, i32
  }
  func.func @transform_8(%arg0: i32) -> (i32, i32) {
    %c0_i32 = arith.constant 0 : i32
    %c0_i32_0 = arith.constant 0 : i32
    %c0_i32_1 = arith.constant 0 : i32
    return %c0_i32, %c0_i32_0 : i32, i32
  }
  func.func @transform_9(%arg0: i32) -> (i32, i32, i32) {
    %c0_i32 = arith.constant 0 : i32
    %c0_i32_0 = arith.constant 0 : i32
    %c0_i32_1 = arith.constant 0 : i32
    %c0_i32_2 = arith.constant 0 : i32
    return %c0_i32, %c0_i32_0, %c0_i32_1 : i32, i32, i32
  }
  func.func @transform_10(%arg0: i32) -> (i32, i32) {
    %c0_i32 = arith.constant 0 : i32
    %c0_i32_0 = arith.constant 0 : i32
    %c0_i32_1 = arith.constant 0 : i32
    return %c0_i32, %c0_i32_0 : i32, i32
  }
  func.func @transform_11(%arg0: i32) -> (i32, i32, i32) {
    %c0_i32 = arith.constant 0 : i32
    %c0_i32_0 = arith.constant 0 : i32
    %c0_i32_1 = arith.constant 0 : i32
    return %arg0, %c0_i32, %c0_i32_0 : i32, i32, i32
  }
}

</mosaic_0001>

<bundles_post_ra>
// kernel: chain_forward.1
= control target key start
LH: loop header
LB: loop body
LE: loop exit
PB: predicated region body
PF: predicated region fallthrough
CT: control target
= control target key end

     0   :  { %s2738_s17 = smov 0   ;;  %s3574_s0 = inlined_call_operand.vmem [shape: bf16[2,8,256], index: 0, kind: input, shape index: {}]   ;;  %s3575_s1 = inlined_call_operand.vmem [shape: s32[2,256], index: 1, kind: input, shape index: {}]   ;;  %s3576_s2 = inlined_call_operand.vmem [shape: bf16[9,8,8], index: 2, kind: input, shape index: {}]   ;;  %s3577_s3 = inlined_call_operand.vmem [shape: f32[8,1], index: 3, kind: input, shape index: {}]   ;;  %s3578_s4 = inlined_call_operand.vmem [shape: bf16[9,8,8], index: 4, kind: input, shape index: {}]   ;;  %s3579_s5 = inlined_call_operand.vmem [shape: f32[8,1], index: 5, kind: input, shape index: {}]   ;;  %s3580_s6 = inlined_call_operand.vmem [shape: bf16[8,8], index: 6, kind: input, shape index: {}]   ;;  %s3581_s7 = inlined_call_operand.vmem [shape: bf16[9,8,8], index: 7, kind: input, shape index: {}]   ;;  %s3582_s8 = inlined_call_operand.vmem [shape: f32[8,1], index: 8, kind: input, shape index: {}]   ;;  %s3583_s9 = inlined_call_operand.vmem [shape: bf16[9,8,8], index: 9, kind: input, shape index: {}]   ;;  %s3584_s10 = inlined_call_operand.vmem [shape: f32[8,1], index: 10, kind: input, shape index: {}]   ;;  %s3585_s11 = inlined_call_operand.vmem [shape: bf16[2,8,256], index: 11, kind: output, shape index: {}]  }
   0x1 LB: > { %s2357_s18 = sadd.s32 4294967295, %s2667_s17   ;;  %p2361_p0 = scmp.ge.s32.totalorder %s2667_s17, 1  ;;  %s2667_s17 = sphi %s2738_s17, %s21_s17  }
   0x2   : > { %p337_p1 = scmp.lt.s32.totalorder %s2667_s17, 3 }
   0x4   : > { %p338_p2 = pnand %p2361_p0, %p337_p1 }
   0x5   : > { %p377_p3 = scmp.lt.s32.totalorder (!%p338_p2), %s2357_s18, 1  ;;  %s2669_s23 = smov (!%p338_p2), 16  }
   0x6   : > { %341 = sbr.rel (%p338_p2) target bundleno = 1341 (0x53d), region = 64  ;;  %s2670_s24 = smov (!%p338_p2), 15  }
   0x7   : > { %s2671_s25 = smov (!%p338_p2), 127   ;;  %s2672_s26 = smov (!%p338_p2), 17  }
   0x8   : > { %s2673_s27 = smov (!%p338_p2), 1   ;;  %s2674_s28 = smov (!%p338_p2), 113  }
   0x9   : > { %s2675_s29 = smov (!%p338_p2), 112   ;;  %s2676_s30 = smov (!%p338_p2), 111  }
   0xb   : > { %s3818_s18 = smov (!%p377_p3, %s2357_s18), 1  ;;  %v2677_v4 = vmov 0   ;;  %v388_v5 = vld [vmem:[%s3575_s1] sm:$0xf]  ;;  %v447_v30 = vlaneseq  ;;  %v2380_v21 = vld [vmem:[%s3576_s2 + $0xc] sm:$0xf] }
   0xc   : > { %s2480_s19 = sshll.u32 %s3818_s18, 3  ;;  %2539 = vset.pattern.permute.xlu2 %v2677_v4  ;;  %2660 = vset.pattern.permute.xlu0 %v2677_v4  ;;  %vm403_vm0 = vcmp.ge.s32.totalorder %v388_v5, 0  ;;  %v389_v6 = vadd.s32 4294967295, %v388_v5  ;;  %vm409_vm1 = vcmp.lt.s32.totalorder %v388_v5, 16  ;;  %v2773_v8 = vadd.s32 1, %v388_v5 }
   0xd   : > { %s381_s22 = scalar_lea.vmem %s3574_s0, %s2480_s19  ;;  %v404_v7 = vsel %vm403_vm0, 1, %v2677_v4  ;;  %v410_v10 = vsel %vm409_vm1, 1, %v2677_v4  ;;  %v2848_v37 = vand.u32 127, %v447_v30  ;;  %v461_v26 = vld [vmem:[%s3576_s2] sm:$0xf] }
   0xe   : > { %v2754_v0 = vld [vmem:[%s381_s22] sm:$0xff]  ;;  %vm390_vm2 = vcmp.ge.s32.totalorder %v389_v6, 0  ;;  %v2368_v9 = vrot.slane %v404_v7, 9  ;;  %vm391_vm3 = vcmp.lt.s32.totalorder %v389_v6, 16  ;;  %vm3586_vm4 = vcmp.ge.s32.totalorder %v2773_v8, 0 }
   0xf   : > { %v441_v1 = vunpack.c.l.bf16 %v2754_v0  ;;  %v442_v2 = vunpack.c.h.bf16 %v2754_v0  ;;  %v393_v11 = vsel %vm390_vm2, 1, %v2677_v4  ;;  %vm3587_vm5 = vcmp.lt.s32.totalorder %v2773_v8, 16  ;;  %vm2783_vm6 = vmand %vm390_vm2, %vm391_vm3 }
  0x10   : > { %v417_v12 = vsel %vm3586_vm4, 1, %v2677_v4  ;;  %v2369_v13 = vrot.slane %v410_v10, 9  ;;  %vm2787_vm7 = vcmp.ne.s32.totalorder %v2368_v9, 0  ;;  %v2366_v17 = vrot.slane %v393_v11, 9  ;;  %vm2833_vm4 = vmand %vm403_vm0, %vm409_vm1 }
  0x11   : > { %v2499_v3 = vpack.i.bf16 %v442_v2, %v441_v1  ;;  %v2370_v14 = vrot.slane %v417_v12, 9  ;;  %v398_v18 = vsel %vm391_vm3, 1, %v2677_v4  ;;  %v423_v19 = vsel %vm3587_vm5, 1, %v2677_v4  ;;  %vm408_vm9 = vmand %vm2783_vm6, %vm2787_vm7 }
  0x12   : > { %v2371_v20 = vrot.slane %v423_v19, 9  ;;  %vm2803_vm10 = vcmp.ne.s32.totalorder %v2369_v13, 0  ;;  %v2367_v23 = vrot.slane %v398_v18, 9  ;;  %vm2807_vm11 = vcmp.ne.s32.totalorder %v2366_v17, 0 }
  0x13   : > { %2500 = vrot.lane.b32.xlu0 %v2499_v3, %s2669_s23  ;;  %2510 = vrot.lane.b32.xlu1 %v2499_v3, %s2670_s24  ;;  %vm2795_vm8 = vcmp.ne.s32.totalorder %v2370_v14, 0  ;;  %vm414_vm14 = vmand %vm408_vm9, %vm2803_vm10  ;;  %vm3588_vm1 = vcmp.lt.s32.totalorder %v2848_v37, 16  ;;  %v673_v7 = vunpack.c.l.b16 %v2754_v0  ;;  %v2372_v14 = vld [vmem:[%s3576_s2 + $0x4] sm:$0xf]  ;;  %v674_v18 = vunpack.c.h.b16 %v2754_v0 }
  0x14   : > { %2520 = vrot.lane.b32.xlu2 %v2499_v3, %s2671_s25  ;;  %vm421_vm12 = vmand %vm2783_vm6, %vm2795_vm8  ;;  %vm2815_vm13 = vcmp.ne.s32.totalorder %v2371_v20, 0  ;;  %vm2825_vm2 = vcmp.ne.s32.totalorder %v2367_v23, 0  ;;  %v471_v28 = vsel %vm414_vm14, 1, %v2677_v4 }
  0x15   : > { %vm397_vm15 = vmand %vm2783_vm6, %vm2807_vm11  ;;  %v472_v31 = vperm.slane %v471_v28, 0  ;;  %v473_v32 = vperm.slane %v471_v28, 2  ;;  %v675_v17 = vpack.c.b16 %v673_v7, %v673_v7 }
  0x16   : > { %vm427_vm3 = vmand %vm421_vm12, %vm2815_vm13 }
  0x17   : > { %vm402_vm9 = vmand %vm397_vm15, %vm2825_vm2  ;;  %v563_v29 = vsel %vm427_vm3, 1, %v2677_v4  ;;  %v2850_v38 = vperm.slane %v472_v31, 0  ;;  %v2852_v39 = vperm.slane %v473_v32, 0  ;;  %vm3594_vm3 = vcmask 64512  }
  0x18   : > { %vm429_vm6 = vmand %vm2833_vm4, %vm2807_vm11  ;;  %v452_v33 = vsel %vm402_vm9, 1, %v2677_v4  ;;  %v564_v34 = vperm.slane %v563_v29, 0  ;;  %v565_v35 = vperm.slane %v563_v29, 2  ;;  %vm3590_vm9 = vcmp.lt.s32.totalorder %v2848_v37, 15 }
  0x19   : > { %vm430_vm0 = vmand %vm429_vm6, %vm2825_vm2  ;;  %v453_v36 = vperm.slane %v452_v33, 0  ;;  %v454_v41 = vperm.slane %v452_v33, 2  ;;  %vm3589_vm12 = vcmp.eq.s32.totalorder %v2850_v38, 1  ;;  %vm3591_vm15 = vcmp.eq.s32.totalorder %v2852_v39, 1 }
  0x1a   : > { %v620_v40 = vsel %vm430_vm0, 1, %v2677_v4  ;;  %v2855_v42 = vperm.slane %v564_v34, 0  ;;  %v2857_v43 = vperm.slane %v565_v35, 0  ;;  %v676_v32 = vpack.c.b16 %v674_v18, %v674_v18 }
  0x1b   : > { %2505 = vrot.lane.b32.xlu0 %v2499_v3, %s2672_s26  ;;  %2515 = vrot.lane.b32.xlu1 %v2499_v3, %s2673_s27  ;;  %v2859_v44 = vperm.slane %v453_v36, 0  ;;  %v621_v45 = vperm.slane %v620_v40, 0  ;;  %v622_v46 = vperm.slane %v620_v40, 2  ;;  %v2864_v49 = vperm.slane %v454_v41, 0 }
  0x1c   : > { %2525 = vrot.lane.b32.xlu2 %v2499_v3, %s2674_s28  ;;  %vm3592_vm6 = vcmp.eq.s32.totalorder %v2855_v42, 1  ;;  %vm3593_vm0 = vcmp.eq.s32.totalorder %v2857_v43, 1 }
  0x1d   : > { %v2871_v54 = vperm.slane %v621_v45, 0  ;;  %v2873_v55 = vperm.slane %v622_v46, 0 }
  0x23   : > { %2530 = vrot.lane.b32.xlu0 %v2499_v3, %s2675_s29  ;;  %2535 = vrot.lane.b32.xlu1 %v2499_v3, %s2676_s30 }
  0x6e   : > { %v2883_v60 = vpop.permute.xlu2 %2520 }
  0x6f   : > { %v2523_v27 = vunpack.i.h.bf16 %v2883_v60  ;;  %v2522_v30 = vunpack.i.l.bf16 %v2883_v60 }
  0x76   : > { %v2526_v35 = vpop.permute.xlu2 %2525 }
  0x85   : > { %v2501_v47 = vpop.permute.xlu0 %2500  ;;  %v2511_v48 = vpop.permute.xlu1 %2510 }
  0x86   : > { %v2503_v50 = vunpack.i.h.bf16 %v2501_v47  ;;  %v2502_v51 = vunpack.i.l.bf16 %v2501_v47  ;;  %v2513_v52 = vunpack.i.h.bf16 %v2511_v48  ;;  %v2512_v53 = vunpack.i.l.bf16 %v2511_v48 }
  0x88   : > { %v470_v56 = vsel %vm3588_vm1, %v2503_v50, %v2502_v51  ;;  %v469_v57 = vsel %vm3588_vm1, %v2502_v51, %v2503_v50  ;;  %v562_v58 = vsel %vm3590_vm9, %v2513_v52, %v2512_v53  ;;  %v561_v59 = vsel %vm3590_vm9, %v2512_v53, %v2513_v52  ;;  %vm431_vm1 = vmand %vm2833_vm4, %vm2795_vm8 }
  0x89   : > { %v478_v61 = vsel %vm3589_vm12, %v470_v56, 0.0  ;;  %v479_v62 = vsel %vm3591_vm15, %v469_v57, 0.0  ;;  %v570_v63 = vsel %vm3592_vm6, %v562_v58, 0.0  ;;  %v571_v1 = vsel %vm3593_vm0, %v561_v59, 0.0 }
  0x8a   : > { %v482_v2 = vpack.c.bf16 %v478_v61, %v478_v61  ;;  %v483_v3 = vpack.c.bf16 %v479_v62, %v479_v62  ;;  %v574_v5 = vpack.c.bf16 %v570_v63, %v570_v63  ;;  %v575_v6 = vpack.c.bf16 %v571_v1, %v571_v1 }
  0x8b   : > { %vm617_vm9 = vcmp.lt.s32.totalorder %v2848_v37, 1  ;;  %vm3617_vm6 = vcmask 1043456   ;;  %vm626_vm15 = vcmp.eq.s32.totalorder %v2873_v55, 1  ;;  %vm718_vm12 = vcmp.lt.s32.totalorder %v2848_v37, 127 }
  0x8c   : > { %v490_v9 = vsel %vm3617_vm6, %v482_v2, 0  ;;  %vm3618_vm0 = vmmov %vm3617_vm6  ;;  %vm3624_vm6 = vcmp.ge.s32.totalorder %v2773_v8, 0  ;;  %vm3627_vm4 = vcmask 1043456   ;;  %v2528_v56 = vunpack.i.h.bf16 %v2526_v35 }
  0x8d   : > { %v493_v10 = vsel %vm3618_vm0, %v483_v3, 0  ;;  %vm3619_vm14 = vmmov %vm3618_vm0  ;;  %v2506_v13 = vpop.permute.xlu0 %2505  ;;  %502 = vmatpush.bf16.msra.mxu0 %v490_v9  ;;  %v2516_v15 = vpop.permute.xlu1 %2515  ;;  %v2933_v31 = vsel %vm3627_vm4, %v675_v17, 0  ;;  %vm3631_vm4 = vcmp.eq.s32.totalorder %v2864_v49, 1  ;;  %v2527_v57 = vunpack.i.l.bf16 %v2526_v35 }
  0x8e   : > { %v580_v11 = vsel %vm3619_vm14, %v574_v5, 0  ;;  %vm3620_vm5 = vmmov %vm3618_vm0  ;;  %515 = vmatpush.bf16.msra.mxu1 %v493_v10  ;;  %v2508_v20 = vunpack.i.h.bf16 %v2506_v13  ;;  %v2507_v23 = vunpack.i.l.bf16 %v2506_v13  ;;  %vm3623_vm14 = vcmp.lt.s32.totalorder %v2773_v8, 16 }
  0x8f   : > { %v583_v12 = vsel %vm3620_vm5, %v575_v6, 0  ;;  %vm2918_vm5 = vmand %vm431_vm1, %vm2815_vm13  ;;  %v2518_v0 = vunpack.i.h.bf16 %v2516_v15  ;;  %v2517_v29 = vunpack.i.l.bf16 %v2516_v15  ;;  %vm3628_vm1 = vcmp.lt.s32.totalorder %v2848_v37, 17 }
  0x90   : > { %vm2926_vm0 = vmand %vm3624_vm6, %vm3623_vm14  ;;  %2373 = vmatmul.msk.bf16.vlgmr.msra.gmra.mxu0 %vm3594_vm3, %v2372_v14  ;;  %v451_v8 = vsel %vm3628_vm1, %v2508_v20, %v2507_v23  ;;  %v721_v36 = vsel %vm2918_vm5, 1, %v2677_v4  ;;  %vm3630_vm6 = vcmp.eq.s32.totalorder %v2859_v44, 1  ;;  %vm3633_vm5 = vcmask 1043456  }
  0x91   : > { %592 = vmatpush.bf16.msrb.mxu0 %v580_v11  ;;  %2374 = vmatmul.msk.bf16.vlgmr.msra.gmra.mxu1 %vm3594_vm3, %v2372_v14  ;;  %vm3629_vm14 = vmmov %vm3628_vm1  ;;  %v619_v34 = vsel %vm617_vm9, %v2518_v0, %v2517_v29  ;;  %v459_v40 = vsel %vm3630_vm6, %v451_v8, 0.0  ;;  %vm3632_vm3 = vcmp.eq.s32.totalorder %v2871_v54, 1  ;;  %v618_v46 = vsel %vm617_vm9, %v2517_v29, %v2518_v0 }
  0x92   : > { %605 = vmatpush.bf16.msrb.mxu1 %v583_v12  ;;  %v450_v33 = vsel %vm3629_vm14, %v2507_v23, %v2508_v20  ;;  %v627_v45 = vsel %vm3632_vm3, %v619_v34, 0.0  ;;  %vm434_vm1 = vmand %vm2926_vm0, %vm2807_vm11  ;;  %v462_v47 = vpack.c.bf16 %v459_v40, %v459_v40  ;;  %v628_v51 = vsel %vm626_vm15, %v618_v46, 0.0 }
  0x93   : > { %v460_v41 = vsel %vm3631_vm4, %v450_v33, 0.0  ;;  %v631_v50 = vpack.c.bf16 %v627_v45, %v627_v45  ;;  %v632_v52 = vpack.c.bf16 %v628_v51, %v628_v51  ;;  %v2962_v53 = vsel %vm3633_vm5, %v676_v32, 0  ;;  %vm2966_vm3 = vmand %vm434_vm1, %vm2825_vm2 }
  0x94   : > { %v463_v48 = vpack.c.bf16 %v460_v41, %v460_v41  ;;  %vm3636_vm14 = vmmov %vm3633_vm5  ;;  %v722_v61 = vperm.slane %v721_v36, 0  ;;  %vm775_vm1 = vcmp.lt.s32.totalorder %v2848_v37, 113  ;;  %v723_v63 = vperm.slane %v721_v36, 2 }
  0x95   : > { %693 = vmatpush.bf16.msra.mxu0 %v2933_v31  ;;  %v525_v24 = vsel %vm3636_vm14, %v462_v47, 0  ;;  %vm3637_vm11 = vmmov %vm3633_vm5  ;;  %v719_v1 = vsel %vm718_vm12, %v2522_v30, %v2523_v27  ;;  %v778_v3 = vsel %vm2966_vm3, 1, %v2677_v4  ;;  %v720_v5 = vsel %vm718_vm12, %v2523_v27, %v2522_v30  ;;  %v2531_v22 = vpop.permute.xlu0 %2530  ;;  %v2377_v27 = vld [vmem:[%s3576_s2 + $0x8] sm:$0xf] }
  0x96   : > { %v528_v59 = vsel %vm3637_vm11, %v463_v48, 0  ;;  %vm3638_vm6 = vmmov %vm3633_vm5  ;;  %706 = vmatpush.bf16.msra.mxu1 %v2962_v53  ;;  %537 = vmatpush.bf16.msra.mxu2 %v525_v24  ;;  %v2985_v2 = vperm.slane %v722_v61, 0  ;;  %v2992_v6 = vperm.slane %v723_v63, 0  ;;  %v779_v7 = vperm.slane %v778_v3, 0  ;;  %v2536_v48 = vpop.permute.xlu1 %2535 }
  0x97   : > { %v637_v60 = vsel %vm3638_vm6, %v631_v50, 0  ;;  %vm436_vm4 = vmand %vm2926_vm0, %vm2787_vm7  ;;  %550 = vmatpush.bf16.msra.mxu3 %v528_v59  ;;  %v780_v9 = vperm.slane %v778_v3, 2  ;;  %vm3642_vm14 = vcmask 64512   ;;  %v776_v11 = vsel %vm775_vm1, %v2527_v57, %v2528_v56 }
  0x98   : > { %vm3639_vm2 = vmmov %vm3633_vm5  ;;  %v777_v12 = vsel %vm775_vm1, %v2528_v56, %v2527_v57  ;;  %vm726_vm11 = vcmp.eq.s32.totalorder %v2985_v2, 1  ;;  %vm727_vm7 = vcmp.eq.s32.totalorder %v2992_v6, 1  ;;  %v2533_v13 = vunpack.i.h.bf16 %v2531_v22 }
  0x99   : > { %v640_v62 = vsel %vm3639_vm2, %v632_v52, 0  ;;  %vm3001_vm5 = vmand %vm436_vm4, %vm2803_vm10  ;;  %2375 = vmatmul.msk.bf16.vlgmr.msra.gmra.mxu2 %vm3642_vm14, %v461_v26  ;;  %v728_v16 = vsel %vm726_vm11, %v719_v1, 0.0  ;;  %v2532_v14 = vunpack.i.l.bf16 %v2531_v22  ;;  %v729_v17 = vsel %vm727_vm7, %v720_v5, 0.0  ;;  %v2389_v22 = vld [vmem:[%s3576_s2 + $0x18] sm:$0xf] }
  0x9a   : > { %649 = vmatpush.bf16.msrb.mxu2 %v637_v60  ;;  %vm3643_vm3 = vmmov %vm3642_vm14  ;;  %v732_v15 = vpack.c.bf16 %v728_v16, %v728_v16  ;;  %v3017_v18 = vperm.slane %v779_v7, 0  ;;  %v3019_v19 = vperm.slane %v780_v9, 0  ;;  %v733_v20 = vpack.c.bf16 %v729_v17, %v729_v17  ;;  %v2383_v7 = vld [vmem:[%s3576_s2 + $0x10] sm:$0xf]  ;;  %v2392_v16 = vld [vmem:[%s3576_s2 + $0x1c] sm:$0xf] }
  0x9b   : > { %662 = vmatpush.bf16.msrb.mxu3 %v640_v62  ;;  %vm832_vm10 = vcmp.lt.s32.totalorder %v2848_v37, 112  ;;  %v835_v23 = vsel %vm3001_vm5, 1, %v2677_v4  ;;  %vm3644_vm6 = vmmov %vm3639_vm2  ;;  %v2538_v50 = vunpack.i.h.bf16 %v2536_v48  ;;  %v2537_v51 = vunpack.i.l.bf16 %v2536_v48 }
  0x9c   : > { %2376 = vmatmul.msk.bf16.vlgmr.msra.gmra.mxu3 %vm3643_vm3, %v461_v26  ;;  %v738_v0 = vsel %vm3644_vm6, %v732_v15, 0  ;;  %vm3596_vm4 = vcmp.eq.s32.totalorder %v3017_v18, 1  ;;  %vm3595_vm2 = vcmp.eq.s32.totalorder %v3019_v19, 1  ;;  %v836_v29 = vperm.slane %v835_v23, 0  ;;  %vm3645_vm14 = vmmov %vm3644_vm6 }
  0x9d   : > { %v741_v30 = vsel %vm3645_vm14, %v733_v20, 0  ;;  %v785_v32 = vsel %vm3596_vm4, %v776_v11, 0.0  ;;  %v786_v8 = vsel %vm3595_vm2, %v777_v12, 0.0  ;;  %v837_v33 = vperm.slane %v835_v23, 2  ;;  %vm3646_vm5 = vmmov %vm3643_vm3  ;;  %v942_v11 = vld [vmem:[%s3577_s3] sm:$0xff] }
  0x9e   : > { %750 = vmatpush.bf16.msra.mxu2 %v738_v0  ;;  %v833_v34 = vsel %vm832_vm10, %v2532_v14, %v2533_v13  ;;  %v789_v35 = vpack.c.bf16 %v785_v32, %v785_v32  ;;  %v790_v36 = vpack.c.bf16 %v786_v8, %v786_v8  ;;  %v3038_v40 = vperm.slane %v836_v29, 0  ;;  %vm3647_vm14 = vmmov %vm3644_vm6  ;;  %945 = vperm.xlu2 %2539, %v942_v11   ;;  %v2386_v12 = vld [vmem:[%s3576_s2 + $0x14] sm:$0xf] }
  0x9f   : > { %763 = vmatpush.bf16.msra.mxu3 %v741_v30  ;;  %v834_v41 = vsel %vm832_vm10, %v2533_v13, %v2532_v14  ;;  %v3042_v45 = vperm.slane %v837_v33, 0  ;;  %v2395_v13 = vld [vmem:[%s3576_s2 + $0x20] sm:$0xf] }
  0xa0   : > { %2378 = vmatmul.msk.bf16.vlgmr.msrb.gmra.mxu0 %vm3646_vm5, %v2377_v27  ;;  %v795_v46 = vsel %vm3644_vm6, %v789_v35, 0  ;;  %v798_v47 = vsel %vm3647_vm14, %v790_v36, 0  ;;  %vm840_vm2 = vcmp.eq.s32.totalorder %v3038_v40, 1  ;;  %vm438_vm5 = vmand %vm2926_vm0, %vm2795_vm8 }
  0xa1   : > { %2379 = vmatmul.msk.bf16.vlgmr.msrb.gmra.mxu1 %vm3643_vm3, %v2377_v27  ;;  %807 = vmatpush.bf16.msrb.mxu0 %v795_v46  ;;  %v842_v52 = vsel %vm840_vm2, %v833_v34, 0.0  ;;  %vm3600_vm4 = vcmp.eq.s32.totalorder %v3042_v45, 1  ;;  %vm3599_vm3 = vcmp.lt.s32.totalorder %v2848_v37, 111  ;;  %vm439_vm6 = vmand %vm438_vm5, %vm2815_vm13  ;;  %vm3650_vm13 = vcmask 64512  }
  0xa2   : > { %820 = vmatpush.bf16.msrb.mxu1 %v798_v47  ;;  %v846_v56 = vpack.c.bf16 %v842_v52, %v842_v52  ;;  %v843_v57 = vsel %vm3600_vm4, %v834_v41, 0.0  ;;  %v892_v24 = vsel %vm439_vm6, 1, %v2677_v4  ;;  %v890_v28 = vsel %vm3599_vm3, %v2537_v51, %v2538_v50  ;;  %vm3648_vm8 = vmmov %vm3647_vm14 }
  0xa3   : > { %v847_v58 = vpack.c.bf16 %v843_v57, %v843_v57  ;;  %v893_v59 = vperm.slane %v892_v24, 0  ;;  %v894_v60 = vperm.slane %v892_v24, 2  ;;  %v891_v61 = vsel %vm3599_vm3, %v2538_v50, %v2537_v51  ;;  %vm3649_vm0 = vmmov %vm3648_vm8 }
  0xa4   : > { %v852_v26 = vsel %vm3648_vm8, %v846_v56, 0  ;;  %vm3651_vm14 = vmmov %vm3650_vm13 }
  0xa5   : > { %v855_v25 = vsel %vm3649_vm0, %v847_v58, 0  ;;  %v3071_v62 = vperm.slane %v893_v59, 0  ;;  %v3073_v63 = vperm.slane %v894_v60, 0  ;;  %vm3652_vm8 = vmmov %vm3649_vm0 }
  0xa7   : > { %vm3598_vm5 = vcmp.eq.s32.totalorder %v3071_v62, 1  ;;  %vm3597_vm6 = vcmp.eq.s32.totalorder %v3073_v63, 1 }
  0xa8   : > { %v899_v4 = vsel %vm3598_vm5, %v890_v28, 0.0  ;;  %v900_v1 = vsel %vm3597_vm6, %v891_v61, 0.0  ;;  %vm3654_vm6 = vmmov %vm3650_vm13 }
  0xa9   : > { %2381 = vmatmul.msk.bf16.vlgmr.msrb.gmra.mxu2 %vm3650_vm13, %v2380_v21  ;;  %v903_v3 = vpack.c.bf16 %v899_v4, %v899_v4  ;;  %v904_v5 = vpack.c.bf16 %v900_v1, %v900_v1 }
  0xaa   : > { %864 = vmatpush.bf16.msrb.mxu2 %v852_v26 }
  0xab   : > { %v909_v9 = vsel %vm3652_vm8, %v903_v3, 0  ;;  %v912_v10 = vsel %vm3649_vm0, %v904_v5, 0  ;;  %vm3655_vm8 = vmmov %vm3654_vm6 }
  0xac   : > { %2382 = vmatmul.msk.bf16.vlgmr.msrb.gmra.mxu3 %vm3651_vm14, %v2380_v21  ;;  %vm3653_vm14 = vmmov %vm3650_vm13 }
  0xad   : > { %877 = vmatpush.bf16.msrb.mxu3 %v855_v25  ;;  %vm3656_vm0 = vmmov %vm3654_vm6 }
  0xae   : > { %vm3659_vm5 = vmmov %vm3656_vm0 }
  0xb0   : > { %2384 = vmatmul.msk.bf16.vlgmr.msra.gmra.mxu0 %vm3650_vm13, %v2383_v7  ;;  %vm3657_vm13 = vmmov %vm3656_vm0 }
  0xb1   : > { %2385 = vmatmul.msk.bf16.vlgmr.msra.gmra.mxu1 %vm3653_vm14, %v2383_v7  ;;  %921 = vmatpush.bf16.msra.mxu0 %v909_v9  ;;  %vm3658_vm14 = vmmov %vm3656_vm0 }
  0xb2   : > { %934 = vmatpush.bf16.msra.mxu1 %v912_v10 }
  0xb9   : > { %2387 = vmatmul.msk.bf16.vlgmr.msra.gmra.mxu2 %vm3654_vm6, %v2386_v12  ;;  %vm3660_vm6 = vmmov %vm3656_vm0 }
  0xbc   : > { %2388 = vmatmul.msk.bf16.vlgmr.msra.gmra.mxu3 %vm3655_vm8, %v2386_v12  ;;  %vm3661_vm8 = vmmov %vm3656_vm0 }
  0xc0   : > { %2390 = vmatmul.msk.bf16.vlgmr.msrb.gmra.mxu0 %vm3656_vm0, %v2389_v22 }
  0xc1   : > { %2391 = vmatmul.msk.bf16.vlgmr.msrb.gmra.mxu1 %vm3657_vm13, %v2389_v22  ;;  %vm3664_vm13 = vcmp.eq.s32.totalorder %v2855_v42, 1 }
  0xc9   : > { %2393 = vmatmul.msk.bf16.vlgmr.msrb.gmra.mxu2 %vm3658_vm14, %v2392_v16  ;;  %vm3665_vm14 = vcmp.eq.s32.totalorder %v2857_v43, 1 }
  0xcc   : > { %2394 = vmatmul.msk.bf16.vlgmr.msrb.gmra.mxu3 %vm3659_vm5, %v2392_v16  ;;  %vm3662_vm5 = vcmp.lt.s32.totalorder %v2848_v37, 15 }
  0xcd   : > { %vm3663_vm0 = vmmov %vm3662_vm5 }
  0xd0   : > { %2396 = vmatmul.msk.bf16.vlgmr.msra.gmra.mxu0 %vm3660_vm6, %v2395_v13  ;;  %vm3666_vm6 = vcmp.lt.s32.totalorder %v2848_v37, 17 }
  0xd1   : > { %2397 = vmatmul.msk.bf16.vlgmr.msra.gmra.mxu1 %vm3661_vm8, %v2395_v13  ;;  %vm3667_vm8 = vmmov %vm3666_vm6 }
  0xf8   : > { %v946_v13 = vpop.permute.xlu2 %945 }
 0x10d   : > { %v504_v14 = vpop.f32.mrf.mxu0 }
 0x10e   : > { %v517_v15 = vpop.f32.mrf.mxu1 }
 0x115   : > { %v506_v17 = vpop.f32.mrf.mxu0 }
 0x116   : > { %v519_v20 = vpop.f32.mrf.mxu1 }
 0x11c   : > { %v539_v23 = vpop.f32.mrf.mxu2 }
 0x11d   : > { %v594_v29 = vpop.f32.mrf.mxu0  ;;  %v540_v51 = vadd.f32 %v539_v23, %v504_v14 }
 0x11e   : > { %v607_v27 = vpop.f32.mrf.mxu1 }
 0x11f   : > { %v552_v0 = vpop.f32.mrf.mxu3  ;;  %v611_v59 = vadd.f32 %v594_v29, %v540_v51 }
 0x120   : > { %v553_v52 = vadd.f32 %v552_v0, %v517_v15 }
 0x122   : > { %v612_v60 = vadd.f32 %v607_v27, %v553_v52 }
 0x124   : > { %v541_v30 = vpop.f32.mrf.mxu2 }
 0x125   : > { %v596_v8 = vpop.f32.mrf.mxu0 }
 0x126   : > { %v609_v33 = vpop.f32.mrf.mxu1 }
 0x127   : > { %v554_v32 = vpop.f32.mrf.mxu3 }
 0x12c   : > { %v651_v34 = vpop.f32.mrf.mxu2 }
 0x12d   : > { %v695_v36 = vpop.f32.mrf.mxu0  ;;  %v668_v21 = vadd.f32 %v651_v34, %v611_v59 }
 0x12e   : > { %v708_v41 = vpop.f32.mrf.mxu1 }
 0x12f   : > { %v664_v35 = vpop.f32.mrf.mxu3  ;;  %v712_v25 = vadd.f32 %v695_v36, %v668_v21 }
 0x130   : > { %v669_v28 = vadd.f32 %v664_v35, %v612_v60  ;;  %v1380_v35 = vld [vmem:[%s3579_s5] sm:$0xff] }
 0x132   : > { %v713_v4 = vadd.f32 %v708_v41, %v669_v28 }
 0x134   : > { %v653_v46 = vpop.f32.mrf.mxu2 }
 0x135   : > { %v697_v48 = vpop.f32.mrf.mxu0 }
 0x136   : > { %v710_v50 = vpop.f32.mrf.mxu1 }
 0x137   : > { %v666_v47 = vpop.f32.mrf.mxu3 }
 0x13c   : > { %v752_v56 = vpop.f32.mrf.mxu2 }
 0x13d   : > { %v809_v58 = vpop.f32.mrf.mxu0  ;;  %v769_v5 = vadd.f32 %v752_v56, %v712_v25 }
 0x13e   : > { %v822_v24 = vpop.f32.mrf.mxu1 }
 0x13f   : > { %v765_v57 = vpop.f32.mrf.mxu3  ;;  %v826_v9 = vadd.f32 %v809_v58, %v769_v5 }
 0x140   : > { %v770_v7 = vadd.f32 %v765_v57, %v713_v4 }
 0x142   : > { %v827_v10 = vadd.f32 %v822_v24, %v770_v7 }
 0x144   : > { %v754_v61 = vpop.f32.mrf.mxu2 }
 0x145   : > { %v811_v1 = vpop.f32.mrf.mxu0 }
 0x146   : > { %v824_v3 = vpop.f32.mrf.mxu1 }
 0x147   : > { %v767_v26 = vpop.f32.mrf.mxu3 }
 0x14c   : > { %v866_v11 = vpop.f32.mrf.mxu2 }
 0x14d   : > { %v883_v22 = vadd.f32 %v866_v11, %v826_v9  ;;  %v923_v14 = vpop.f32.mrf.mxu0 }
 0x14e   : > { %v936_v15 = vpop.f32.mrf.mxu1 }
 0x14f   : > { %v879_v12 = vpop.f32.mrf.mxu3  ;;  %v940_v17 = vadd.f32 %v923_v14, %v883_v22 }
 0x150   : > { %v884_v16 = vadd.f32 %v879_v12, %v827_v10 }
 0x151   : > { %v948_v23 = vadd.f32 %v946_v13, %v940_v17 }
 0x152   : > { %v941_v20 = vadd.f32 %v936_v15, %v884_v16 }
 0x153   : > { %v3113_v29 = vmax.f32 %v948_v23, 0.0 }
 0x154   : > { %v949_v0 = vadd.f32 %v946_v13, %v941_v20  ;;  %v868_v30 = vpop.f32.mrf.mxu2  ;;  %v960_v20 = vld [vmem:[%s3578_s4] sm:$0xf] }
 0x155   : > { %v925_v33 = vpop.f32.mrf.mxu0  ;;  %v1145_v16 = vpack.c.bf16 %v3113_v29, %v3113_v29 }
 0x156   : > { %v3115_v27 = vmax.f32 %v949_v0, 0.0  ;;  %v938_v34 = vpop.f32.mrf.mxu1 }
 0x157   : > { %v881_v32 = vpop.f32.mrf.mxu3 }
 0x158   : > { %v2550_v8 = vpack.i.bf16 %v3115_v27, %v3113_v29  ;;  %v1146_v13 = vpack.c.bf16 %v3115_v27, %v3115_v27  ;;  %v2398_v32 = vld [vmem:[%s3578_s4 + $0x4] sm:$0xf] }
 0x15a   : > { %2551 = vrot.lane.b32.xlu2 %v2550_v8, %s2670_s24  ;;  %2546 = vrot.lane.b32.xlu1 %v2550_v8, %s2672_s26 }
 0x15b   : > { %2541 = vrot.lane.b32.xlu0 %v2550_v8, %s2669_s23 }
 0x162   : > { %2566 = vrot.lane.b32.xlu2 %v2550_v8, %s2674_s28  ;;  %2561 = vrot.lane.b32.xlu1 %v2550_v8, %s2671_s25 }
 0x163   : > { %2556 = vrot.lane.b32.xlu0 %v2550_v8, %s2673_s27 }
 0x16a   : > { %1383 = vperm.xlu2 %2539, %v1380_v35   ;;  %2576 = vrot.lane.b32.xlu1 %v2550_v8, %s2676_s30 }
 0x16b   : > { %2571 = vrot.lane.b32.xlu0 %v2550_v8, %s2675_s29 }
 0x1b4   : > { %v2552_v36 = vpop.permute.xlu2 %2551 }
 0x1b5   : > { %v2554_v41 = vunpack.i.h.bf16 %v2552_v36  ;;  %v2553_v46 = vunpack.i.l.bf16 %v2552_v36 }
 0x1b7   : > { %v1049_v47 = vsel %vm3662_vm5, %v2553_v46, %v2554_v41  ;;  %v1050_v48 = vsel %vm3663_vm0, %v2554_v41, %v2553_v46  ;;  %vm3668_vm5 = vcmp.lt.s32.totalorder %v2848_v37, 16 }
 0x1b8   : > { %v1051_v51 = vsel %vm3664_vm13, %v1050_v48, 0.0  ;;  %v1052_v52 = vsel %vm3665_vm14, %v1049_v47, 0.0  ;;  %vm3669_vm0 = vmmov %vm3668_vm5  ;;  %vm3670_vm13 = vcmp.eq.s32.totalorder %v2859_v44, 1  ;;  %vm3671_vm14 = vcmp.eq.s32.totalorder %v2864_v49, 1 }
 0x1b9   : > { %v1055_v28 = vpack.c.bf16 %v1051_v51, %v1051_v51  ;;  %v1056_v61 = vpack.c.bf16 %v1052_v52, %v1052_v52 }
 0x1bc   : > { %v2567_v34 = vpop.permute.xlu2 %2566 }
 0x1cc   : > { %v2547_v50 = vpop.permute.xlu1 %2546 }
 0x1cd   : > { %v2549_v56 = vunpack.i.h.bf16 %v2547_v50  ;;  %v2548_v57 = vunpack.i.l.bf16 %v2547_v50  ;;  %v2542_v58 = vpop.permute.xlu0 %2541 }
 0x1ce   : > { %v2544_v24 = vunpack.i.h.bf16 %v2542_v58  ;;  %v2543_v59 = vunpack.i.l.bf16 %v2542_v58 }
 0x1cf   : > { %v956_v60 = vsel %vm3666_vm6, %v2548_v57, %v2549_v56  ;;  %v957_v21 = vsel %vm3667_vm8, %v2549_v56, %v2548_v57  ;;  %vm3672_vm6 = vcmp.eq.s32.totalorder %v2850_v38, 1  ;;  %vm3673_vm8 = vcmp.eq.s32.totalorder %v2852_v39, 1 }
 0x1d0   : > { %v967_v26 = vsel %vm3668_vm5, %v2543_v59, %v2544_v24  ;;  %v968_v25 = vsel %vm3669_vm0, %v2544_v24, %v2543_v59  ;;  %v958_v4 = vsel %vm3670_vm13, %v957_v21, 0.0  ;;  %v959_v1 = vsel %vm3671_vm14, %v956_v60, 0.0 }
 0x1d1   : > { %v961_v3 = vpack.c.bf16 %v958_v4, %v958_v4  ;;  %v962_v5 = vpack.c.bf16 %v959_v1, %v959_v1  ;;  %v969_v7 = vsel %vm3672_vm6, %v968_v25, 0.0  ;;  %v970_v9 = vsel %vm3673_vm8, %v967_v26, 0.0 }
 0x1d2   : > { %v973_v10 = vpack.c.bf16 %v969_v7, %v969_v7  ;;  %v974_v11 = vpack.c.bf16 %v970_v9, %v970_v9  ;;  %vm3674_vm5 = vcmask 1043456   ;;  %vm3680_vm6 = vcmask 64512  }
 0x1d3   : > { %v1014_v12 = vsel %vm3674_vm5, %v961_v3, 0  ;;  %vm3675_vm3 = vmmov %vm3674_vm5  ;;  %v2569_v24 = vunpack.i.h.bf16 %v2567_v34  ;;  %v2568_v59 = vunpack.i.l.bf16 %v2567_v34 }
 0x1d4   : > { %v1017_v22 = vsel %vm3675_vm3, %v962_v5, 0  ;;  %v2562_v14 = vpop.permute.xlu1 %2561  ;;  %1026 = vmatpush.bf16.msrb.mxu0 %v1014_v12  ;;  %vm3676_vm0 = vmmov %vm3675_vm3 }
 0x1d5   : > { %1039 = vmatpush.bf16.msrb.mxu1 %v1017_v22  ;;  %v979_v15 = vsel %vm3676_vm0, %v973_v10, 0  ;;  %vm3677_vm13 = vmmov %vm3676_vm0  ;;  %v2564_v23 = vunpack.i.h.bf16 %v2562_v14  ;;  %v2563_v0 = vunpack.i.l.bf16 %v2562_v14  ;;  %v2557_v30 = vpop.permute.xlu0 %2556  ;;  %v1154_v46 = vsel %vm3676_vm0, %v1146_v13, 0  ;;  %v2406_v13 = vld [vmem:[%s3578_s4 + $0xc] sm:$0xf] }
 0x1d6   : > { %v982_v17 = vsel %vm3677_vm13, %v974_v11, 0  ;;  %991 = vmatpush.bf16.msra.mxu2 %v979_v15  ;;  %vm3678_vm3 = vmmov %vm3676_vm0  ;;  %v2559_v8 = vunpack.i.h.bf16 %v2557_v30  ;;  %v2558_v33 = vunpack.i.l.bf16 %v2557_v30  ;;  %v1237_v1 = vsel %vm775_vm1, %v2568_v59, %v2569_v24 }
 0x1d7   : > { %1004 = vmatpush.bf16.msra.mxu3 %v982_v17  ;;  %v1061_v29 = vsel %vm3678_vm3, %v1055_v28, 0  ;;  %vm3679_vm14 = vmmov %vm3676_vm0  ;;  %v1188_v35 = vsel %vm718_vm12, %v2563_v0, %v2564_v23  ;;  %v1189_v36 = vsel %vm718_vm12, %v2564_v23, %v2563_v0  ;;  %2401 = vmatmul.msk.bf16.vlgmr.msrb.gmra.mxu0 %vm3680_vm6, %v960_v20  ;;  %v1238_v3 = vsel %vm775_vm1, %v2569_v24, %v2568_v59  ;;  %v2403_v17 = vld [vmem:[%s3578_s4 + $0x8] sm:$0xf] }
 0x1d8   : > { %v1064_v27 = vsel %vm3679_vm14, %v1056_v61, 0  ;;  %vm3681_vm8 = vmmov %vm3680_vm6  ;;  %v1098_v47 = vsel %vm617_vm9, %v2558_v33, %v2559_v8  ;;  %v1099_v48 = vsel %vm617_vm9, %v2559_v8, %v2558_v33  ;;  %v1190_v50 = vsel %vm726_vm11, %v1188_v35, 0.0 }
 0x1d9   : > { %2402 = vmatmul.msk.bf16.vlgmr.msrb.gmra.mxu1 %vm3681_vm8, %v960_v20  ;;  %vm3682_vm5 = vmmov %vm3676_vm0  ;;  %v1191_v51 = vsel %vm727_vm7, %v1189_v36, 0.0  ;;  %vm3685_vm14 = vcmp.eq.s32.totalorder %v2871_v54, 1  ;;  %v1101_v56 = vsel %vm626_vm15, %v1098_v47, 0.0  ;;  %v1194_v57 = vpack.c.bf16 %v1190_v50, %v1190_v50  ;;  %v2409_v50 = vld [vmem:[%s3578_s4 + $0x10] sm:$0xf] }
 0x1da   : > { %1073 = vmatpush.bf16.msrb.mxu2 %v1061_v29  ;;  %v1151_v41 = vsel %vm3682_vm5, %v1145_v16, 0  ;;  %vm3683_vm13 = vmmov %vm3680_vm6  ;;  %v1100_v52 = vsel %vm3685_vm14, %v1099_v48, 0.0  ;;  %v1195_v58 = vpack.c.bf16 %v1191_v51, %v1191_v51  ;;  %v1105_v21 = vpack.c.bf16 %v1101_v56, %v1101_v56  ;;  %v2412_v48 = vld [vmem:[%s3578_s4 + $0x14] sm:$0xf]  ;;  %v2418_v56 = vld [vmem:[%s3578_s4 + $0x1c] sm:$0xf] }
 0x1db   : > { %1086 = vmatpush.bf16.msrb.mxu3 %v1064_v27  ;;  %2399 = vmatmul.msk.bf16.vlgmr.msra.gmra.mxu2 %vm3683_vm13, %v2398_v32  ;;  %vm3684_vm3 = vmmov %vm3680_vm6  ;;  %v1104_v60 = vpack.c.bf16 %v1100_v52, %v1100_v52  ;;  %vm3689_vm13 = vcmp.eq.s32.totalorder %v3017_v18, 1  ;;  %vm3691_vm14 = vcmask 64512  }
 0x1dc   : > { %2400 = vmatmul.msk.bf16.vlgmr.msra.gmra.mxu3 %vm3684_vm3, %v2398_v32  ;;  %vm3686_vm6 = vmmov %vm3676_vm0  ;;  %v1113_v25 = vsel %vm3676_vm0, %v1105_v21, 0  ;;  %v1239_v11 = vsel %vm3689_vm13, %v1237_v1, 0.0  ;;  %vm3690_vm3 = vcmp.eq.s32.totalorder %v3019_v19, 1  ;;  %v2577_v0 = vpop.permute.xlu1 %2576 }
 0x1dd   : > { %v1200_v28 = vsel %vm3686_vm6, %v1194_v57, 0  ;;  %vm3687_vm8 = vmmov %vm3676_vm0  ;;  %v2572_v4 = vpop.permute.xlu0 %2571  ;;  %1135 = vmatpush.bf16.msra.mxu1 %v1113_v25  ;;  %v1240_v12 = vsel %vm3690_vm3, %v1238_v3, 0.0  ;;  %v1243_v14 = vpack.c.bf16 %v1239_v11, %v1239_v11  ;;  %v2579_v8 = vunpack.i.h.bf16 %v2577_v0  ;;  %v2415_v57 = vld [vmem:[%s3578_s4 + $0x18] sm:$0xf] }
 0x1de   : > { %1163 = vmatpush.bf16.msra.mxu2 %v1151_v41  ;;  %v1203_v61 = vsel %vm3687_vm8, %v1195_v58, 0  ;;  %vm3688_vm5 = vmmov %vm3676_vm0  ;;  %v2574_v5 = vunpack.i.h.bf16 %v2572_v4  ;;  %v2573_v7 = vunpack.i.l.bf16 %v2572_v4  ;;  %v1244_v15 = vpack.c.bf16 %v1240_v12, %v1240_v12 }
 0x1df   : > { %1176 = vmatpush.bf16.msra.mxu3 %v1154_v46  ;;  %v1110_v26 = vsel %vm3688_vm5, %v1104_v60, 0  ;;  %vm3692_vm6 = vmmov %vm3691_vm14  ;;  %v1249_v30 = vsel %vm3676_vm0, %v1243_v14, 0  ;;  %v2578_v33 = vunpack.i.l.bf16 %v2577_v0 }
 0x1e0   : > { %1122 = vmatpush.bf16.msra.mxu0 %v1110_v26  ;;  %v1286_v9 = vsel %vm832_vm10, %v2573_v7, %v2574_v5  ;;  %v1287_v10 = vsel %vm832_vm10, %v2574_v5, %v2573_v7  ;;  %vm3693_vm8 = vmmov %vm3692_vm6 }
 0x1e1   : > { %1225 = vmatpush.bf16.msrb.mxu1 %v1203_v61  ;;  %v1288_v22 = vsel %vm840_vm2, %v1286_v9, 0.0  ;;  %v1289_v16 = vsel %vm3600_vm4, %v1287_v10, 0.0  ;;  %vm3694_vm5 = vmmov %vm3692_vm6 }
 0x1e2   : > { %v1292_v20 = vpack.c.bf16 %v1288_v22, %v1288_v22  ;;  %v1293_v23 = vpack.c.bf16 %v1289_v16, %v1289_v16  ;;  %vm3695_vm13 = vmmov %vm3676_vm0 }
 0x1e3   : > { %v1252_v29 = vsel %vm3695_vm13, %v1244_v15, 0  ;;  %vm3696_vm3 = vmmov %vm3676_vm0 }
 0x1e4   : > { %1212 = vmatpush.bf16.msrb.mxu0 %v1200_v28  ;;  %v1298_v27 = vsel %vm3696_vm3, %v1292_v20, 0  ;;  %vm3697_vm4 = vmmov %vm3676_vm0 }
 0x1e5   : > { %v1301_v32 = vsel %vm3697_vm4, %v1293_v23, 0  ;;  %vm3702_vm4 = vcmask 64512  }
 0x1e6   : > { %vm3703_vm0 = vmmov %vm3702_vm4 }
 0x1e7   : > { %2407 = vmatmul.msk.bf16.vlgmr.msra.gmra.mxu0 %vm3691_vm14, %v2406_v13  ;;  %vm3698_vm14 = vcmp.lt.s32.totalorder %v2848_v37, 111  ;;  %vm3704_vm13 = vmmov %vm3703_vm0 }
 0x1e8   : > { %1310 = vmatpush.bf16.msra.mxu0 %v1298_v27  ;;  %v1335_v34 = vsel %vm3698_vm14, %v2578_v33, %v2579_v8  ;;  %vm3705_vm3 = vmmov %vm3703_vm0 }
 0x1e9   : > { %2408 = vmatmul.msk.bf16.vlgmr.msra.gmra.mxu1 %vm3692_vm6, %v2406_v13  ;;  %vm3699_vm6 = vmmov %vm3698_vm14  ;;  %vm3706_vm14 = vcmask 1043456  }
 0x1ea   : > { %1323 = vmatpush.bf16.msra.mxu1 %v1301_v32  ;;  %v1336_v35 = vsel %vm3699_vm6, %v2579_v8, %v2578_v33  ;;  %vm3707_vm6 = vmmov %vm3706_vm14 }
 0x1eb   : > { %2404 = vmatmul.msk.bf16.vlgmr.msrb.gmra.mxu2 %vm3693_vm8, %v2403_v17  ;;  %vm3700_vm8 = vcmp.eq.s32.totalorder %v3071_v62, 1 }
 0x1ec   : > { %2405 = vmatmul.msk.bf16.vlgmr.msrb.gmra.mxu3 %vm3694_vm5, %v2403_v17  ;;  %1261 = vmatpush.bf16.msrb.mxu2 %v1249_v30  ;;  %v1337_v36 = vsel %vm3700_vm8, %v1335_v34, 0.0  ;;  %vm3701_vm5 = vcmp.eq.s32.totalorder %v3073_v63, 1  ;;  %vm3708_vm8 = vmmov %vm3703_vm0 }
 0x1ed   : > { %1274 = vmatpush.bf16.msrb.mxu3 %v1252_v29  ;;  %v1338_v41 = vsel %vm3701_vm5, %v1336_v35, 0.0  ;;  %v1341_v46 = vpack.c.bf16 %v1337_v36, %v1337_v36  ;;  %vm3709_vm5 = vmmov %vm3703_vm0 }
 0x1ee   : > { %v1342_v47 = vpack.c.bf16 %v1338_v41, %v1338_v41 }
 0x1ef   : > { %v1347_v51 = vsel %vm3706_vm14, %v1341_v46, 0  ;;  %vm3713_vm14 = vmmov %vm3703_vm0 }
 0x1f0   : > { %v1350_v52 = vsel %vm3707_vm6, %v1342_v47, 0  ;;  %vm3714_vm6 = vmmov %vm3703_vm0 }
 0x1f7   : > { %2413 = vmatmul.msk.bf16.vlgmr.msrb.gmra.mxu0 %vm3702_vm4, %v2412_v48  ;;  %vm3710_vm4 = vmmov %vm3703_vm0 }
 0x1f8   : > { %1399 = vmatpush.bf16.msrb.mxu0 %v2933_v31  ;;  %v1388_v31 = vld [vmem:[%s3580_s6] sm:$0xf] }
 0x1f9   : > { %2414 = vmatmul.msk.bf16.vlgmr.msrb.gmra.mxu1 %vm3703_vm0, %v2412_v48 }
 0x1fa   : > { %1412 = vmatpush.bf16.msrb.mxu1 %v2962_v53  ;;  %v2421_v53 = vld [vmem:[%s3578_s4 + $0x20] sm:$0xf] }
 0x1fb   : > { %2410 = vmatmul.msk.bf16.vlgmr.msra.gmra.mxu2 %vm3704_vm13, %v2409_v50  ;;  %vm3711_vm13 = vmmov %vm3703_vm0 }
 0x1fc   : > { %2411 = vmatmul.msk.bf16.vlgmr.msra.gmra.mxu3 %vm3705_vm3, %v2409_v50  ;;  %1359 = vmatpush.bf16.msra.mxu2 %v1347_v51  ;;  %vm3712_vm3 = vmmov %vm3703_vm0 }
 0x1fd   : > { %1372 = vmatpush.bf16.msra.mxu3 %v1350_v52 }
 0x207   : > { %2419 = vmatmul.msk.bf16.vlgmr.msra.gmra.mxu0 %vm3708_vm8, %v2418_v56  ;;  %vm3715_vm8 = vcmp.lt.s32.totalorder %v2848_v37, 17 }
 0x209   : > { %2420 = vmatmul.msk.bf16.vlgmr.msra.gmra.mxu1 %vm3709_vm5, %v2418_v56  ;;  %vm3716_vm5 = vmmov %vm3715_vm8 }
 0x20b   : > { %2416 = vmatmul.msk.bf16.vlgmr.msrb.gmra.mxu2 %vm3710_vm4, %v2415_v57  ;;  %vm3717_vm4 = vcmp.eq.s32.totalorder %v2859_v44, 1 }
 0x20c   : > { %2417 = vmatmul.msk.bf16.vlgmr.msrb.gmra.mxu3 %vm3703_vm0, %v2415_v57  ;;  %vm3718_vm0 = vcmp.eq.s32.totalorder %v2864_v49, 1 }
 0x217   : > { %2424 = vmatmul.msk.bf16.vlgmr.msrb.gmra.mxu0 %vm3711_vm13, %v1388_v31  ;;  %vm3719_vm13 = vcmask 1043456  }
 0x219   : > { %2425 = vmatmul.msk.bf16.vlgmr.msrb.gmra.mxu1 %vm3712_vm3, %v1388_v31  ;;  %vm3720_vm3 = vmmov %vm3719_vm13 }
 0x21b   : > { %2422 = vmatmul.msk.bf16.vlgmr.msra.gmra.mxu2 %vm3713_vm14, %v2421_v53  ;;  %vm3721_vm14 = vmmov %vm3714_vm6 }
 0x21c   : > { %2423 = vmatmul.msk.bf16.vlgmr.msra.gmra.mxu3 %vm3714_vm6, %v2421_v53 }
 0x254   : > { %v1028_v58 = vpop.f32.mrf.mxu0 }
 0x256   : > { %v1041_v24 = vpop.f32.mrf.mxu1 }
 0x25c   : > { %v1030_v21 = vpop.f32.mrf.mxu0 }
 0x25e   : > { %v993_v59 = vpop.f32.mrf.mxu2  ;;  %v1043_v28 = vpop.f32.mrf.mxu1 }
 0x25f   : > { %v1006_v60 = vpop.f32.mrf.mxu3  ;;  %v1029_v0 = vadd.f32 %v1028_v58, %v993_v59 }
 0x260   : > { %v1042_v30 = vadd.f32 %v1041_v24, %v1006_v60 }
 0x264   : > { %v1124_v25 = vpop.f32.mrf.mxu0 }
 0x266   : > { %v995_v61 = vpop.f32.mrf.mxu2  ;;  %v1137_v4 = vpop.f32.mrf.mxu1 }
 0x267   : > { %v1008_v26 = vpop.f32.mrf.mxu3 }
 0x268   : > { %v1384_v26 = vpop.permute.xlu2 %1383 }
 0x26c   : > { %v1126_v5 = vpop.f32.mrf.mxu0 }
 0x26e   : > { %v1075_v1 = vpop.f32.mrf.mxu2  ;;  %v1139_v7 = vpop.f32.mrf.mxu1 }
 0x26f   : > { %v1088_v3 = vpop.f32.mrf.mxu3  ;;  %v1092_v29 = vadd.f32 %v1075_v1, %v1029_v0 }
 0x270   : > { %v1093_v27 = vadd.f32 %v1088_v3, %v1042_v30 }
 0x271   : > { %v1141_v35 = vadd.f32 %v1124_v25, %v1092_v29 }
 0x272   : > { %v1142_v36 = vadd.f32 %v1137_v4, %v1093_v27  ;;  %v1430_v27 = vld [vmem:[%s3581_s7] sm:$0xf] }
 0x274   : > { %v1214_v11 = vpop.f32.mrf.mxu0 }
 0x276   : > { %v1077_v9 = vpop.f32.mrf.mxu2  ;;  %v1227_v12 = vpop.f32.mrf.mxu1 }
 0x277   : > { %v1090_v10 = vpop.f32.mrf.mxu3 }
 0x27c   : > { %v1216_v13 = vpop.f32.mrf.mxu0 }
 0x27e   : > { %v1165_v22 = vpop.f32.mrf.mxu2  ;;  %v1229_v14 = vpop.f32.mrf.mxu1 }
 0x27f   : > { %v1178_v16 = vpop.f32.mrf.mxu3  ;;  %v1182_v41 = vadd.f32 %v1165_v22, %v1141_v35 }
 0x280   : > { %v1183_v46 = vadd.f32 %v1178_v16, %v1142_v36 }
 0x281   : > { %v1231_v50 = vadd.f32 %v1214_v11, %v1182_v41 }
 0x282   : > { %v1232_v51 = vadd.f32 %v1227_v12, %v1183_v46  ;;  %v1850_v12 = vld [vmem:[%s3582_s8] sm:$0xff] }
 0x284   : > { %v1312_v20 = vpop.f32.mrf.mxu0 }
 0x286   : > { %v1167_v15 = vpop.f32.mrf.mxu2  ;;  %v1325_v23 = vpop.f32.mrf.mxu1 }
 0x287   : > { %v1180_v17 = vpop.f32.mrf.mxu3 }
 0x28c   : > { %v1314_v33 = vpop.f32.mrf.mxu0 }
 0x28e   : > { %v1263_v32 = vpop.f32.mrf.mxu2  ;;  %v1327_v34 = vpop.f32.mrf.mxu1 }
 0x28f   : > { %v1276_v8 = vpop.f32.mrf.mxu3  ;;  %v1280_v57 = vadd.f32 %v1263_v32, %v1231_v50 }
 0x290   : > { %v1281_v31 = vadd.f32 %v1276_v8, %v1232_v51 }
 0x291   : > { %v1329_v53 = vadd.f32 %v1312_v20, %v1280_v57 }
 0x292   : > { %v1330_v58 = vadd.f32 %v1325_v23, %v1281_v31 }
 0x294   : > { %v1401_v52 = vpop.f32.mrf.mxu0 }
 0x296   : > { %v1265_v47 = vpop.f32.mrf.mxu2  ;;  %v1414_v56 = vpop.f32.mrf.mxu1 }
 0x297   : > { %v1278_v48 = vpop.f32.mrf.mxu3 }
 0x29c   : > { %v1403_v28 = vpop.f32.mrf.mxu0 }
 0x29e   : > { %v1361_v24 = vpop.f32.mrf.mxu2  ;;  %v1416_v61 = vpop.f32.mrf.mxu1 }
 0x29f   : > { %v1374_v59 = vpop.f32.mrf.mxu3  ;;  %v1378_v60 = vadd.f32 %v1361_v24, %v1329_v53 }
 0x2a0   : > { %v1379_v21 = vadd.f32 %v1374_v59, %v1330_v58 }
 0x2a1   : > { %v1386_v25 = vadd.f32 %v1384_v26, %v1378_v60 }
 0x2a2   : > { %v1387_v4 = vadd.f32 %v1384_v26, %v1379_v21 }
 0x2a3   : > { %v1418_v1 = vadd.f32 %v1401_v52, %v1386_v25 }
 0x2a4   : > { %v1419_v3 = vadd.f32 %v1414_v56, %v1387_v4 }
 0x2a5   : > { %v3268_v5 = vmax.f32 %v1418_v1, 0.0 }
 0x2a6   : > { %v3270_v7 = vmax.f32 %v1419_v3, 0.0  ;;  %v1363_v9 = vpop.f32.mrf.mxu2 }
 0x2a7   : > { %v1376_v10 = vpop.f32.mrf.mxu3  ;;  %v1615_v3 = vpack.c.bf16 %v3268_v5, %v3268_v5 }
 0x2a8   : > { %v2590_v11 = vpack.i.bf16 %v3270_v7, %v3268_v5  ;;  %v1616_v9 = vpack.c.bf16 %v3270_v7, %v3270_v7 }
 0x2aa   : > { %2591 = vrot.lane.b32.xlu2 %v2590_v11, %s2672_s26  ;;  %2586 = vrot.lane.b32.xlu1 %v2590_v11, %s2670_s24 }
 0x2ab   : > { %2581 = vrot.lane.b32.xlu0 %v2590_v11, %s2669_s23 }
 0x2b2   : > { %2606 = vrot.lane.b32.xlu2 %v2590_v11, %s2671_s25  ;;  %2601 = vrot.lane.b32.xlu1 %v2590_v11, %s2674_s28 }
 0x2b3   : > { %2596 = vrot.lane.b32.xlu0 %v2590_v11, %s2673_s27 }
 0x2ba   : > { %1853 = vperm.xlu2 %2539, %v1850_v12   ;;  %2616 = vrot.lane.b32.xlu1 %v2590_v11, %s2675_s29 }
 0x2bb   : > { %2611 = vrot.lane.b32.xlu0 %v2590_v11, %s2676_s30  ;;  %v2426_v11 = vld [vmem:[%s3581_s7 + $0x4] sm:$0xf] }
 0x304   : > { %v2592_v22 = vpop.permute.xlu2 %2591 }
 0x305   : > { %v2594_v16 = vunpack.i.h.bf16 %v2592_v22  ;;  %v2593_v13 = vunpack.i.l.bf16 %v2592_v22 }
 0x307   : > { %v1426_v14 = vsel %vm3715_vm8, %v2593_v13, %v2594_v16  ;;  %v1427_v15 = vsel %vm3716_vm5, %v2594_v16, %v2593_v13  ;;  %vm3722_vm8 = vcmp.lt.s32.totalorder %v2848_v37, 15 }
 0x308   : > { %v1428_v17 = vsel %vm3717_vm4, %v1427_v15, 0.0  ;;  %v1429_v20 = vsel %vm3718_vm0, %v1426_v14, 0.0  ;;  %vm3723_vm5 = vmmov %vm3722_vm8  ;;  %vm3724_vm4 = vcmp.lt.s32.totalorder %v2848_v37, 16 }
 0x309   : > { %v1431_v23 = vpack.c.bf16 %v1428_v17, %v1428_v17  ;;  %v1432_v0 = vpack.c.bf16 %v1429_v20, %v1429_v20  ;;  %vm3725_vm0 = vmmov %vm3724_vm4 }
 0x30b   : > { %v1484_v30 = vsel %vm3719_vm13, %v1431_v23, 0  ;;  %v1487_v29 = vsel %vm3720_vm3, %v1432_v0, 0  ;;  %vm3726_vm13 = vcmp.eq.s32.totalorder %v2855_v42, 1  ;;  %vm3727_vm3 = vcmp.eq.s32.totalorder %v2857_v43, 1 }
 0x30c   : > { %1496 = vmatpush.bf16.msra.mxu0 %v1484_v30  ;;  %1509 = vmatpush.bf16.msra.mxu1 %v1487_v29  ;;  %v2607_v32 = vpop.permute.xlu2 %2606 }
 0x30d   : > { %v2609_v46 = vunpack.i.h.bf16 %v2607_v32  ;;  %v2608_v47 = vunpack.i.l.bf16 %v2607_v32 }
 0x30f   : > { %2429 = vmatmul.msk.bf16.vlgmr.msra.gmra.mxu0 %vm3721_vm14, %v1430_v27  ;;  %2430 = vmatmul.msk.bf16.vlgmr.msra.gmra.mxu1 %vm3714_vm6, %v1430_v27  ;;  %vm3728_vm14 = vcmp.eq.s32.totalorder %v2850_v38, 1  ;;  %vm3729_vm6 = vcmp.eq.s32.totalorder %v2852_v39, 1  ;;  %v1658_v21 = vsel %vm718_vm12, %v2608_v47, %v2609_v46  ;;  %v1659_v28 = vsel %vm718_vm12, %v2609_v46, %v2608_v47 }
 0x310   : > { %v1660_v16 = vsel %vm726_vm11, %v1658_v21, 0.0  ;;  %v1661_v13 = vsel %vm727_vm7, %v1659_v28, 0.0 }
 0x311   : > { %v1664_v30 = vpack.c.bf16 %v1660_v16, %v1660_v16  ;;  %v1665_v29 = vpack.c.bf16 %v1661_v13, %v1661_v13 }
 0x31c   : > { %v2587_v8 = vpop.permute.xlu1 %2586 }
 0x31d   : > { %v2589_v33 = vunpack.i.h.bf16 %v2587_v8  ;;  %v2588_v34 = vunpack.i.l.bf16 %v2587_v8  ;;  %v2582_v35 = vpop.permute.xlu0 %2581 }
 0x31e   : > { %v2584_v36 = vunpack.i.h.bf16 %v2582_v35  ;;  %v2583_v41 = vunpack.i.l.bf16 %v2582_v35 }
 0x31f   : > { %v1519_v48 = vsel %vm3722_vm8, %v2588_v34, %v2589_v33  ;;  %v1520_v50 = vsel %vm3723_vm5, %v2589_v33, %v2588_v34  ;;  %vm3730_vm8 = vcmask 1043456  }
 0x320   : > { %v1437_v51 = vsel %vm3724_vm4, %v2583_v41, %v2584_v36  ;;  %v1438_v52 = vsel %vm3725_vm0, %v2584_v36, %v2583_v41  ;;  %v1521_v56 = vsel %vm3726_vm13, %v1520_v50, 0.0  ;;  %v1522_v57 = vsel %vm3727_vm3, %v1519_v48, 0.0  ;;  %vm3731_vm5 = vmmov %vm3730_vm8  ;;  %v2434_v50 = vld [vmem:[%s3581_s7 + $0xc] sm:$0xf] }
 0x321   : > { %v1439_v31 = vsel %vm3728_vm14, %v1438_v52, 0.0  ;;  %v1440_v53 = vsel %vm3729_vm6, %v1437_v51, 0.0  ;;  %v1525_v58 = vpack.c.bf16 %v1521_v56, %v1521_v56  ;;  %v1526_v24 = vpack.c.bf16 %v1522_v57, %v1522_v57  ;;  %vm3732_vm4 = vmmov %vm3731_vm5 }
 0x322   : > { %v1443_v59 = vpack.c.bf16 %v1439_v31, %v1439_v31  ;;  %v1444_v60 = vpack.c.bf16 %v1440_v53, %v1440_v53  ;;  %vm3733_vm0 = vmmov %vm3732_vm4  ;;  %vm3734_vm13 = vcmask 64512  }
 0x323   : > { %v1531_v61 = vsel %vm3730_vm8, %v1525_v58, 0  ;;  %v1534_v26 = vsel %vm3731_vm5, %v1526_v24, 0  ;;  %vm3735_vm3 = vmmov %vm3734_vm13  ;;  %vm3738_vm8 = vcmp.eq.s32.totalorder %v2871_v54, 1  ;;  %v1670_v47 = vsel %vm3733_vm0, %v1664_v30, 0  ;;  %v2443_v30 = vld [vmem:[%s3581_s7 + $0x18] sm:$0xf] }
 0x324   : > { %v2602_v25 = vpop.permute.xlu1 %2601  ;;  %v1449_v4 = vsel %vm3732_vm4, %v1443_v59, 0  ;;  %v1452_v1 = vsel %vm3733_vm0, %v1444_v60, 0  ;;  %vm3736_vm14 = vmmov %vm3733_vm0 }
 0x325   : > { %v2597_v10 = vpop.permute.xlu0 %2596  ;;  %1461 = vmatpush.bf16.msrb.mxu2 %v1449_v4  ;;  %1474 = vmatpush.bf16.msrb.mxu3 %v1452_v1  ;;  %v1621_v17 = vsel %vm3736_vm14, %v1615_v3, 0  ;;  %vm3737_vm6 = vmmov %vm3733_vm0  ;;  %v2604_v27 = vunpack.i.h.bf16 %v2602_v25  ;;  %v2603_v32 = vunpack.i.l.bf16 %v2602_v25  ;;  %v2431_v25 = vld [vmem:[%s3581_s7 + $0x8] sm:$0xf] }
 0x326   : > { %v2599_v12 = vunpack.i.h.bf16 %v2597_v10  ;;  %v2598_v22 = vunpack.i.l.bf16 %v2597_v10  ;;  %v1624_v20 = vsel %vm3737_vm6, %v1616_v9, 0  ;;  %vm3739_vm5 = vmmov %vm3733_vm0  ;;  %vm3743_vm6 = vcmp.eq.s32.totalorder %v3042_v45, 1 }
 0x327   : > { %vm3740_vm4 = vmmov %vm3733_vm0  ;;  %v1707_v51 = vsel %vm775_vm1, %v2603_v32, %v2604_v27  ;;  %v1708_v52 = vsel %vm775_vm1, %v2604_v27, %v2603_v32 }
 0x328   : > { %v1568_v14 = vsel %vm617_vm9, %v2598_v22, %v2599_v12  ;;  %v1569_v15 = vsel %vm617_vm9, %v2599_v12, %v2598_v22  ;;  %2427 = vmatmul.msk.bf16.vlgmr.msrb.gmra.mxu2 %vm3734_vm13, %v2426_v11  ;;  %2428 = vmatmul.msk.bf16.vlgmr.msrb.gmra.mxu3 %vm3735_vm3, %v2426_v11  ;;  %vm3741_vm13 = vmmov %vm3733_vm0  ;;  %v2440_v11 = vld [vmem:[%s3581_s7 + $0x14] sm:$0xf] }
 0x329   : > { %1543 = vmatpush.bf16.msra.mxu2 %v1531_v61  ;;  %1556 = vmatpush.bf16.msra.mxu3 %v1534_v26  ;;  %v1570_v23 = vsel %vm3738_vm8, %v1569_v15, 0.0  ;;  %v1571_v0 = vsel %vm626_vm15, %v1568_v14, 0.0  ;;  %v1673_v48 = vsel %vm3741_vm13, %v1665_v29, 0  ;;  %vm3742_vm14 = vmmov %vm3735_vm3  ;;  %vm3744_vm8 = vcmp.eq.s32.totalorder %v3017_v18, 1  ;;  %v2449_v29 = vld [vmem:[%s3581_s7 + $0x20] sm:$0xf] }
 0x32a   : > { %v1574_v8 = vpack.c.bf16 %v1570_v23, %v1570_v23  ;;  %v1575_v33 = vpack.c.bf16 %v1571_v0, %v1571_v0  ;;  %v1709_v59 = vsel %vm3744_vm8, %v1707_v51, 0.0  ;;  %vm3747_vm13 = vmmov %vm3735_vm3  ;;  %vm3750_vm8 = vcmp.lt.s32.totalorder %v2848_v37, 111  ;;  %v2446_v0 = vld [vmem:[%s3581_s7 + $0x1c] sm:$0xf] }
 0x32b   : > { %v1713_v61 = vpack.c.bf16 %v1709_v59, %v1709_v59 }
 0x32c   : > { %v2617_v34 = vpop.permute.xlu1 %2616  ;;  %v1580_v35 = vsel %vm3739_vm5, %v1574_v8, 0  ;;  %v1583_v36 = vsel %vm3740_vm4, %v1575_v33, 0  ;;  %vm3745_vm5 = vcmp.eq.s32.totalorder %v3019_v19, 1  ;;  %vm3746_vm4 = vmmov %vm3733_vm0 }
 0x32d   : > { %1633 = vmatpush.bf16.msrb.mxu2 %v1621_v17  ;;  %1646 = vmatpush.bf16.msrb.mxu3 %v1624_v20  ;;  %v2619_v41 = vunpack.i.h.bf16 %v2617_v34  ;;  %v2618_v46 = vunpack.i.l.bf16 %v2617_v34  ;;  %v1710_v60 = vsel %vm3745_vm5, %v1708_v52, 0.0  ;;  %v2612_v4 = vpop.permute.xlu0 %2611  ;;  %vm3751_vm5 = vmmov %vm3750_vm8  ;;  %v2437_v17 = vld [vmem:[%s3581_s7 + $0x10] sm:$0xf] }
 0x32e   : > { %1592 = vmatpush.bf16.msrb.mxu0 %v1580_v35  ;;  %1605 = vmatpush.bf16.msrb.mxu1 %v1583_v36  ;;  %v1714_v26 = vpack.c.bf16 %v1710_v60, %v1710_v60  ;;  %v2614_v9 = vunpack.i.h.bf16 %v2612_v4  ;;  %v2613_v10 = vunpack.i.l.bf16 %v2612_v4 }
 0x32f   : > { %v1756_v56 = vsel %vm832_vm10, %v2618_v46, %v2619_v41  ;;  %v1757_v57 = vsel %vm832_vm10, %v2619_v41, %v2618_v46 }
 0x330   : > { %v1758_v31 = vsel %vm840_vm2, %v1756_v56, 0.0  ;;  %v1759_v53 = vsel %vm3743_vm6, %v1757_v57, 0.0  ;;  %vm3749_vm6 = vmmov %vm3733_vm0  ;;  %v1805_v12 = vsel %vm3750_vm8, %v2613_v10, %v2614_v9  ;;  %v1806_v22 = vsel %vm3751_vm5, %v2614_v9, %v2613_v10 }
 0x331   : > { %2435 = vmatmul.msk.bf16.vlgmr.msrb.gmra.mxu0 %vm3735_vm3, %v2434_v50  ;;  %2436 = vmatmul.msk.bf16.vlgmr.msrb.gmra.mxu1 %vm3742_vm14, %v2434_v50  ;;  %v1762_v58 = vpack.c.bf16 %v1758_v31, %v1758_v31  ;;  %v1763_v24 = vpack.c.bf16 %v1759_v53, %v1759_v53  ;;  %vm3748_vm14 = vmmov %vm3733_vm0  ;;  %v1722_v3 = vsel %vm3749_vm6, %v1714_v26, 0  ;;  %vm3758_vm8 = vcmask 1043456  }
 0x332   : > { %1682 = vmatpush.bf16.msra.mxu0 %v1670_v47  ;;  %1695 = vmatpush.bf16.msra.mxu1 %v1673_v48  ;;  %v1719_v1 = vsel %vm3748_vm14, %v1713_v61, 0  ;;  %vm3759_vm5 = vmmov %vm3758_vm8 }
 0x333   : > { %v1768_v21 = vsel %vm3746_vm4, %v1762_v58, 0  ;;  %v1771_v28 = vsel %vm3733_vm0, %v1763_v24, 0  ;;  %vm3752_vm4 = vmmov %vm3735_vm3 }
 0x334   : > { %vm3753_vm0 = vmmov %vm3735_vm3 }
 0x335   : > { %vm3756_vm14 = vmmov %vm3753_vm0 }
 0x336   : > { %1780 = vmatpush.bf16.msrb.mxu0 %v1768_v21  ;;  %1793 = vmatpush.bf16.msrb.mxu1 %v1771_v28  ;;  %vm3757_vm6 = vmmov %vm3753_vm0 }
 0x338   : > { %2432 = vmatmul.msk.bf16.vlgmr.msra.gmra.mxu2 %vm3747_vm13, %v2431_v25  ;;  %2433 = vmatmul.msk.bf16.vlgmr.msra.gmra.mxu3 %vm3735_vm3, %v2431_v25  ;;  %vm3754_vm13 = vcmp.eq.s32.totalorder %v3071_v62, 1  ;;  %vm3755_vm3 = vcmp.eq.s32.totalorder %v3073_v63, 1 }
 0x339   : > { %1731 = vmatpush.bf16.msra.mxu2 %v1719_v1  ;;  %1744 = vmatpush.bf16.msra.mxu3 %v1722_v3  ;;  %v1807_v16 = vsel %vm3754_vm13, %v1805_v12, 0.0  ;;  %v1808_v13 = vsel %vm3755_vm3, %v1806_v22, 0.0  ;;  %vm3761_vm13 = vmmov %vm3753_vm0 }
 0x33a   : > { %v1811_v14 = vpack.c.bf16 %v1807_v16, %v1807_v16  ;;  %v1812_v15 = vpack.c.bf16 %v1808_v13, %v1808_v13  ;;  %vm3762_vm3 = vmmov %vm3753_vm0 }
 0x33c   : > { %v1817_v20 = vsel %vm3758_vm8, %v1811_v14, 0  ;;  %v1820_v23 = vsel %vm3759_vm5, %v1812_v15, 0  ;;  %vm3765_vm8 = vcmp.lt.s32.totalorder %v2848_v37, 15 }
 0x33d   : > { %vm3766_vm5 = vmmov %vm3765_vm8 }
 0x341   : > { %2441 = vmatmul.msk.bf16.vlgmr.msra.gmra.mxu0 %vm3752_vm4, %v2440_v11  ;;  %2442 = vmatmul.msk.bf16.vlgmr.msra.gmra.mxu1 %vm3753_vm0, %v2440_v11  ;;  %vm3760_vm4 = vmmov %vm3753_vm0 }
 0x348   : > { %2438 = vmatmul.msk.bf16.vlgmr.msrb.gmra.mxu2 %vm3756_vm14, %v2437_v17  ;;  %2439 = vmatmul.msk.bf16.vlgmr.msrb.gmra.mxu3 %vm3757_vm6, %v2437_v17  ;;  %vm3763_vm14 = vmmov %vm3753_vm0 }
 0x349   : > { %1829 = vmatpush.bf16.msrb.mxu2 %v1817_v20  ;;  %1842 = vmatpush.bf16.msrb.mxu3 %v1820_v23  ;;  %vm3764_vm6 = vmmov %vm3753_vm0 }
 0x351   : > { %2447 = vmatmul.msk.bf16.vlgmr.msrb.gmra.mxu0 %vm3760_vm4, %v2446_v0  ;;  %2448 = vmatmul.msk.bf16.vlgmr.msrb.gmra.mxu1 %vm3753_vm0, %v2446_v0  ;;  %vm3767_vm4 = vcmp.eq.s32.totalorder %v2855_v42, 1  ;;  %vm3768_vm0 = vcmp.eq.s32.totalorder %v2857_v43, 1 }
 0x358   : > { %2444 = vmatmul.msk.bf16.vlgmr.msra.gmra.mxu2 %vm3761_vm13, %v2443_v30  ;;  %2445 = vmatmul.msk.bf16.vlgmr.msra.gmra.mxu3 %vm3762_vm3, %v2443_v30  ;;  %vm3769_vm13 = vcmp.lt.s32.totalorder %v2848_v37, 17 }
 0x359   : > { %vm3770_vm3 = vmmov %vm3769_vm13 }
 0x368   : > { %2450 = vmatmul.msk.bf16.vlgmr.msrb.gmra.mxu2 %vm3763_vm14, %v2449_v29  ;;  %2451 = vmatmul.msk.bf16.vlgmr.msrb.gmra.mxu3 %vm3764_vm6, %v2449_v29  ;;  %vm3771_vm14 = vcmp.lt.s32.totalorder %v2848_v37, 16 }
 0x369   : > { %vm3772_vm6 = vmmov %vm3771_vm14 }
 0x38c   : > { %v1498_v27 = vpop.f32.mrf.mxu0  ;;  %v1511_v32 = vpop.f32.mrf.mxu1 }
 0x394   : > { %v1500_v8 = vpop.f32.mrf.mxu0  ;;  %v1513_v33 = vpop.f32.mrf.mxu1 }
 0x3ab   : > { %v1463_v34 = vpop.f32.mrf.mxu2  ;;  %v1476_v35 = vpop.f32.mrf.mxu3 }
 0x3ac   : > { %v1499_v1 = vadd.f32 %v1498_v27, %v1463_v34  ;;  %v1512_v3 = vadd.f32 %v1511_v32, %v1476_v35  ;;  %v1854_v34 = vpop.permute.xlu2 %1853 }
 0x3ae   : > { %v1594_v36 = vpop.f32.mrf.mxu0  ;;  %v1607_v41 = vpop.f32.mrf.mxu1 }
 0x3b3   : > { %v1465_v46 = vpop.f32.mrf.mxu2  ;;  %v1478_v47 = vpop.f32.mrf.mxu3 }
 0x3b6   : > { %v1596_v48 = vpop.f32.mrf.mxu0  ;;  %v1609_v50 = vpop.f32.mrf.mxu1 }
 0x3bb   : > { %v1545_v51 = vpop.f32.mrf.mxu2  ;;  %v1558_v52 = vpop.f32.mrf.mxu3 }
 0x3bc   : > { %v1562_v9 = vadd.f32 %v1545_v51, %v1499_v1  ;;  %v1563_v10 = vadd.f32 %v1558_v52, %v1512_v3  ;;  %v2288_v52 = vld [vmem:[%s3584_s10] sm:$0xff] }
 0x3be   : > { %v1684_v56 = vpop.f32.mrf.mxu0  ;;  %v1697_v57 = vpop.f32.mrf.mxu1  ;;  %v1611_v22 = vadd.f32 %v1594_v36, %v1562_v9  ;;  %v1612_v16 = vadd.f32 %v1607_v41, %v1563_v10 }
 0x3c3   : > { %v1547_v31 = vpop.f32.mrf.mxu2  ;;  %v1560_v53 = vpop.f32.mrf.mxu3 }
 0x3c6   : > { %v1686_v58 = vpop.f32.mrf.mxu0  ;;  %v1699_v24 = vpop.f32.mrf.mxu1 }
 0x3cb   : > { %v1635_v59 = vpop.f32.mrf.mxu2  ;;  %v1648_v60 = vpop.f32.mrf.mxu3 }
 0x3cc   : > { %v1652_v13 = vadd.f32 %v1635_v59, %v1611_v22  ;;  %v1653_v14 = vadd.f32 %v1648_v60, %v1612_v16 }
 0x3ce   : > { %v1782_v21 = vpop.f32.mrf.mxu0  ;;  %v1795_v28 = vpop.f32.mrf.mxu1  ;;  %v1701_v20 = vadd.f32 %v1684_v56, %v1652_v13  ;;  %v1702_v23 = vadd.f32 %v1697_v57, %v1653_v14 }
 0x3d3   : > { %v1637_v61 = vpop.f32.mrf.mxu2  ;;  %v1650_v26 = vpop.f32.mrf.mxu3 }
 0x3d6   : > { %v1784_v25 = vpop.f32.mrf.mxu0  ;;  %v1797_v4 = vpop.f32.mrf.mxu1 }
 0x3db   : > { %v1733_v11 = vpop.f32.mrf.mxu2  ;;  %v1746_v12 = vpop.f32.mrf.mxu3 }
 0x3dc   : > { %v1750_v0 = vadd.f32 %v1733_v11, %v1701_v20  ;;  %v1751_v30 = vadd.f32 %v1746_v12, %v1702_v23 }
 0x3de   : > { %v1799_v29 = vadd.f32 %v1782_v21, %v1750_v0  ;;  %v1800_v8 = vadd.f32 %v1795_v28, %v1751_v30  ;;  %v1868_v0 = vld [vmem:[%s3583_s9] sm:$0xf] }
 0x3e3   : > { %v1735_v15 = vpop.f32.mrf.mxu2  ;;  %v1748_v17 = vpop.f32.mrf.mxu3 }
 0x3eb   : > { %v1831_v33 = vpop.f32.mrf.mxu2  ;;  %v1844_v46 = vpop.f32.mrf.mxu3 }
 0x3ec   : > { %v1848_v27 = vadd.f32 %v1831_v33, %v1799_v29  ;;  %v1849_v32 = vadd.f32 %v1844_v46, %v1800_v8 }
 0x3ee   : > { %v1856_v35 = vadd.f32 %v1854_v34, %v1848_v27  ;;  %v1857_v47 = vadd.f32 %v1854_v34, %v1849_v32  ;;  %v2452_v27 = vld [vmem:[%s3583_s9 + $0x4] sm:$0xf] }
 0x3f0   : > { %v3416_v48 = vmax.f32 %v1856_v35, 0.0  ;;  %v3418_v36 = vmax.f32 %v1857_v47, 0.0 }
 0x3f2   : > { %v2630_v41 = vpack.i.bf16 %v3418_v36, %v3416_v48 }
 0x3f3   : > { %v1833_v50 = vpop.f32.mrf.mxu2  ;;  %v1846_v51 = vpop.f32.mrf.mxu3 }
 0x3f4   : > { %2631 = vrot.lane.b32.xlu2 %v2630_v41, %s2670_s24  ;;  %2626 = vrot.lane.b32.xlu1 %v2630_v41, %s2672_s26 }
 0x3f5   : > { %2621 = vrot.lane.b32.xlu0 %v2630_v41, %s2669_s23 }
 0x3fc   : > { %2646 = vrot.lane.b32.xlu2 %v2630_v41, %s2674_s28  ;;  %2641 = vrot.lane.b32.xlu1 %v2630_v41, %s2671_s25 }
 0x3fd   : > { %2636 = vrot.lane.b32.xlu0 %v2630_v41, %s2673_s27  ;;  %s386_s27 = scalar_lea.vmem %s3585_s11, %s2480_s19 }
 0x404   : > { %2291 = vperm.xlu2 %2539, %v2288_v52   ;;  %2656 = vrot.lane.b32.xlu1 %v2630_v41, %s2676_s30 }
 0x405   : > { %2651 = vrot.lane.b32.xlu0 %v2630_v41, %s2675_s29 }
 0x44e   : > { %v2632_v56 = vpop.permute.xlu2 %2631 }
 0x44f   : > { %v2634_v57 = vunpack.i.h.bf16 %v2632_v56  ;;  %v2633_v31 = vunpack.i.l.bf16 %v2632_v56 }
 0x451   : > { %v1957_v53 = vsel %vm3765_vm8, %v2633_v31, %v2634_v57  ;;  %v1958_v58 = vsel %vm3766_vm5, %v2634_v57, %v2633_v31  ;;  %vm3773_vm8 = vcmp.eq.s32.totalorder %v2859_v44, 1  ;;  %vm3774_vm5 = vcmp.eq.s32.totalorder %v2864_v49, 1 }
 0x452   : > { %v1959_v59 = vsel %vm3767_vm4, %v1958_v58, 0.0  ;;  %v1960_v60 = vsel %vm3768_vm0, %v1957_v53, 0.0  ;;  %vm3775_vm4 = vcmp.eq.s32.totalorder %v2850_v38, 1  ;;  %vm3776_vm0 = vcmp.eq.s32.totalorder %v2852_v39, 1 }
 0x453   : > { %v1963_v3 = vpack.c.bf16 %v1959_v59, %v1959_v59  ;;  %v1964_v9 = vpack.c.bf16 %v1960_v60, %v1960_v60  ;;  %v2053_v44 = vpack.c.bf16 %v3416_v48, %v3416_v48  ;;  %v2054_v49 = vpack.c.bf16 %v3418_v36, %v3418_v36 }
 0x456   : > { %v2647_v35 = vpop.permute.xlu2 %2646 }
 0x457   : > { %v2648_v59 = vunpack.i.l.bf16 %v2647_v35 }
 0x466   : > { %v2627_v24 = vpop.permute.xlu1 %2626 }
 0x467   : > { %v2629_v21 = vunpack.i.h.bf16 %v2627_v24  ;;  %v2628_v28 = vunpack.i.l.bf16 %v2627_v24  ;;  %v2622_v61 = vpop.permute.xlu0 %2621  ;;  %v2649_v24 = vunpack.i.h.bf16 %v2647_v35 }
 0x468   : > { %v2624_v26 = vunpack.i.h.bf16 %v2622_v61  ;;  %v2623_v25 = vunpack.i.l.bf16 %v2622_v61 }
 0x469   : > { %v1864_v4 = vsel %vm3769_vm13, %v2628_v28, %v2629_v21  ;;  %v1865_v1 = vsel %vm3770_vm3, %v2629_v21, %v2628_v28  ;;  %vm3777_vm13 = vcmask 1043456   ;;  %v2146_v55 = vsel %vm775_vm1, %v2649_v24, %v2648_v59 }
 0x46a   : > { %v1875_v42 = vsel %vm3771_vm14, %v2623_v25, %v2624_v26  ;;  %v1876_v43 = vsel %vm3772_vm6, %v2624_v26, %v2623_v25  ;;  %v1866_v10 = vsel %vm3773_vm8, %v1865_v1, 0.0  ;;  %v1867_v11 = vsel %vm3774_vm5, %v1864_v4, 0.0  ;;  %vm3778_vm3 = vmmov %vm3777_vm13 }
 0x46b   : > { %v1869_v12 = vpack.c.bf16 %v1866_v10, %v1866_v10  ;;  %v1870_v22 = vpack.c.bf16 %v1867_v11, %v1867_v11  ;;  %v1877_v16 = vsel %vm3775_vm4, %v1876_v43, 0.0  ;;  %v1878_v13 = vsel %vm3776_vm0, %v1875_v42, 0.0  ;;  %vm3779_vm14 = vmmov %vm3778_vm3  ;;  %v2460_v11 = vld [vmem:[%s3583_s9 + $0xc] sm:$0xf] }
 0x46c   : > { %v1881_v14 = vpack.c.bf16 %v1877_v16, %v1877_v16  ;;  %v1882_v15 = vpack.c.bf16 %v1878_v13, %v1878_v13  ;;  %vm3780_vm6 = vmmov %vm3778_vm3  ;;  %vm3783_vm4 = vcmask 64512   ;;  %v2062_v41 = vsel %vm3778_vm3, %v2054_v49, 0 }
 0x46d   : > { %v1922_v17 = vsel %vm3777_vm13, %v1869_v12, 0  ;;  %v1925_v20 = vsel %vm3778_vm3, %v1870_v22, 0  ;;  %vm3781_vm8 = vmmov %vm3778_vm3 }
 0x46e   : > { %v2642_v23 = vpop.permute.xlu1 %2641  ;;  %1934 = vmatpush.bf16.msra.mxu2 %v1922_v17  ;;  %1947 = vmatpush.bf16.msra.mxu3 %v1925_v20  ;;  %v1887_v38 = vsel %vm3779_vm14, %v1881_v14, 0  ;;  %v1890_v39 = vsel %vm3780_vm6, %v1882_v15, 0  ;;  %v1969_v33 = vsel %vm3781_vm8, %v1963_v3, 0  ;;  %vm3782_vm5 = vmmov %vm3778_vm3 }
 0x46f   : > { %v2644_v30 = vunpack.i.h.bf16 %v2642_v23  ;;  %v2643_v29 = vunpack.i.l.bf16 %v2642_v23  ;;  %v2637_v8 = vpop.permute.xlu0 %2636  ;;  %1899 = vmatpush.bf16.msra.mxu0 %v1887_v38  ;;  %1912 = vmatpush.bf16.msra.mxu1 %v1890_v39  ;;  %v1972_v46 = vsel %vm3782_vm5, %v1964_v9, 0  ;;  %vm3784_vm0 = vmmov %vm3783_vm4  ;;  %vm3794_vm5 = vcmp.eq.s32.totalorder %v3019_v19, 1  ;;  %v2466_v39 = vld [vmem:[%s3583_s9 + $0x14] sm:$0xf] }
 0x470   : > { %v2639_v32 = vunpack.i.h.bf16 %v2637_v8  ;;  %v2638_v34 = vunpack.i.l.bf16 %v2637_v8  ;;  %vm3785_vm13 = vmmov %vm3778_vm3  ;;  %v2148_v42 = vsel %vm3794_vm5, %v2146_v55, 0.0  ;;  %v2469_v8 = vld [vmem:[%s3583_s9 + $0x18] sm:$0xf] }
 0x471   : > { %v2096_v47 = vsel %vm718_vm12, %v2643_v29, %v2644_v30  ;;  %v2097_v48 = vsel %vm718_vm12, %v2644_v30, %v2643_v29  ;;  %2455 = vmatmul.msk.bf16.vlgmr.msra.gmra.mxu2 %vm3783_vm4, %v1868_v0  ;;  %2456 = vmatmul.msk.bf16.vlgmr.msra.gmra.mxu3 %vm3784_vm0, %v1868_v0  ;;  %v2059_v36 = vsel %vm3785_vm13, %v2053_v44, 0  ;;  %vm3786_vm14 = vmmov %vm3784_vm0  ;;  %vm3788_vm12 = vcmp.eq.s32.totalorder %v2871_v54, 1  ;;  %v2463_v29 = vld [vmem:[%s3583_s9 + $0x10] sm:$0xf] }
 0x472   : > { %v2006_v50 = vsel %vm617_vm9, %v2638_v34, %v2639_v32  ;;  %v2007_v51 = vsel %vm617_vm9, %v2639_v32, %v2638_v34  ;;  %2453 = vmatmul.msk.bf16.vlgmr.msra.gmra.mxu0 %vm3786_vm14, %v2452_v27  ;;  %vm3787_vm6 = vmmov %vm3784_vm0  ;;  %v2098_v52 = vsel %vm726_vm11, %v2096_v47, 0.0  ;;  %v2099_v56 = vsel %vm727_vm7, %v2097_v48, 0.0 }
 0x473   : > { %1981 = vmatpush.bf16.msrb.mxu0 %v1969_v33  ;;  %1994 = vmatpush.bf16.msrb.mxu1 %v1972_v46  ;;  %v2008_v57 = vsel %vm3788_vm12, %v2007_v51, 0.0  ;;  %v2009_v31 = vsel %vm626_vm15, %v2006_v50, 0.0  ;;  %v2102_v53 = vpack.c.bf16 %v2098_v52, %v2098_v52  ;;  %v2103_v58 = vpack.c.bf16 %v2099_v56, %v2099_v56  ;;  %vm3789_vm9 = vmmov %vm3778_vm3  ;;  %v2475_v33 = vld [vmem:[%s3583_s9 + $0x20] sm:$0xf] }
 0x474   : > { %2454 = vmatmul.msk.bf16.vlgmr.msra.gmra.mxu1 %vm3787_vm6, %v2452_v27  ;;  %v2012_v60 = vpack.c.bf16 %v2008_v57, %v2008_v57  ;;  %v2013_v21 = vpack.c.bf16 %v2009_v31, %v2009_v31  ;;  %vm3790_vm11 = vmmov %vm3778_vm3  ;;  %v2145_v54 = vsel %vm775_vm1, %v2648_v59, %v2649_v24  ;;  %vm3793_vm15 = vcmp.eq.s32.totalorder %v3017_v18, 1  ;;  %v2457_v18 = vld [vmem:[%s3583_s9 + $0x8] sm:$0xf] }
 0x475   : > { %v2108_v2 = vsel %vm3789_vm9, %v2102_v53, 0  ;;  %v2111_v28 = vsel %vm3790_vm11, %v2103_v58, 0  ;;  %vm3791_vm8 = vmmov %vm3778_vm3  ;;  %v2147_v9 = vsel %vm3793_vm15, %v2145_v54, 0.0  ;;  %vm3795_vm1 = vcmp.eq.s32.totalorder %v3042_v45, 1 }
 0x476   : > { %v2018_v6 = vsel %vm3791_vm8, %v2012_v60, 0  ;;  %vm3792_vm7 = vmmov %vm3778_vm3  ;;  %v2151_v12 = vpack.c.bf16 %v2147_v9, %v2147_v9  ;;  %v2152_v22 = vpack.c.bf16 %v2148_v42, %v2148_v42  ;;  %v2657_v19 = vpop.permute.xlu1 %2656  ;;  %vm3802_vm12 = vcmp.lt.s32.totalorder %v2848_v37, 111 }
 0x477   : > { %2071 = vmatpush.bf16.msra.mxu0 %v2059_v36  ;;  %2084 = vmatpush.bf16.msra.mxu1 %v2062_v41  ;;  %v2021_v61 = vsel %vm3792_vm7, %v2013_v21, 0  ;;  %v2652_v26 = vpop.permute.xlu0 %2651  ;;  %vm3797_vm4 = vmmov %vm3784_vm0  ;;  %v2659_v17 = vunpack.i.h.bf16 %v2657_v19  ;;  %v2658_v20 = vunpack.i.l.bf16 %v2657_v19  ;;  %vm3804_vm11 = vcmp.eq.s32.totalorder %v3071_v62, 1 }
 0x478   : > { %2030 = vmatpush.bf16.msrb.mxu2 %v2018_v6  ;;  %2043 = vmatpush.bf16.msrb.mxu3 %v2021_v61  ;;  %v2654_v25 = vunpack.i.h.bf16 %v2652_v26  ;;  %v2653_v4 = vunpack.i.l.bf16 %v2652_v26  ;;  %vm3799_vm13 = vmmov %vm3778_vm3  ;;  %v2160_v45 = vsel %vm3778_vm3, %v2152_v22, 0  ;;  %vm3805_vm8 = vcmp.eq.s32.totalorder %v3073_v63, 1  ;;  %v2472_v63 = vld [vmem:[%s3583_s9 + $0x1c] sm:$0xf] }
 0x479   : > { %v2157_v40 = vsel %vm3799_vm13, %v2151_v12, 0  ;;  %vm3800_vm14 = vmmov %vm3778_vm3  ;;  %v2243_v44 = vsel %vm3802_vm12, %v2658_v20, %v2659_v17 }
 0x47a   : > { %v2194_v1 = vsel %vm832_vm10, %v2653_v4, %v2654_v25  ;;  %v2195_v3 = vsel %vm832_vm10, %v2654_v25, %v2653_v4  ;;  %vm3796_vm10 = vmmov %vm3784_vm0  ;;  %v2245_v23 = vsel %vm3804_vm11, %v2243_v44, 0.0 }
 0x47b   : > { %v2196_v43 = vsel %vm840_vm2, %v2194_v1, 0.0  ;;  %v2197_v10 = vsel %vm3795_vm1, %v2195_v3, 0.0  ;;  %vm3798_vm2 = vmmov %vm3784_vm0  ;;  %v2249_v0 = vpack.c.bf16 %v2245_v23, %v2245_v23 }
 0x47c   : > { %2120 = vmatpush.bf16.msra.mxu2 %v2108_v2  ;;  %2133 = vmatpush.bf16.msra.mxu3 %v2111_v28  ;;  %v2200_v16 = vpack.c.bf16 %v2196_v43, %v2196_v43  ;;  %v2201_v13 = vpack.c.bf16 %v2197_v10, %v2197_v10  ;;  %vm3801_vm6 = vmmov %vm3778_vm3 }
 0x47d   : > { %vm3803_vm9 = vmmov %vm3802_vm12 }
 0x47e   : > { %v2206_v14 = vsel %vm3800_vm14, %v2200_v16, 0  ;;  %v2209_v15 = vsel %vm3801_vm6, %v2201_v13, 0  ;;  %v2244_v49 = vsel %vm3803_vm9, %v2659_v17, %v2658_v20  ;;  %vm3806_vm7 = vmmov %vm3784_vm0 }
 0x47f   : > { %v2246_v38 = vsel %vm3805_vm8, %v2244_v49, 0.0  ;;  %vm3807_vm15 = vmmov %vm3784_vm0  ;;  %v2292_v49 = vpop.permute.xlu2 %2291 }
 0x480   : > { %v2250_v30 = vpack.c.bf16 %v2246_v38, %v2246_v38  ;;  %vm3808_vm5 = vmmov %vm3784_vm0 }
 0x481   : > { %2461 = vmatmul.msk.bf16.vlgmr.msrb.gmra.mxu2 %vm3796_vm10, %v2460_v11  ;;  %2462 = vmatmul.msk.bf16.vlgmr.msrb.gmra.mxu3 %vm3797_vm4, %v2460_v11  ;;  %vm3809_vm1 = vmmov %vm3784_vm0 }
 0x482   : > { %2458 = vmatmul.msk.bf16.vlgmr.msrb.gmra.mxu0 %vm3798_vm2, %v2457_v18  ;;  %2218 = vmatpush.bf16.msrb.mxu2 %v2206_v14  ;;  %vm3810_vm10 = vmmov %vm3778_vm3 }
 0x483   : > { %2169 = vmatpush.bf16.msrb.mxu0 %v2157_v40  ;;  %2231 = vmatpush.bf16.msrb.mxu3 %v2209_v15  ;;  %v2255_v37 = vsel %vm3810_vm10, %v2249_v0, 0  ;;  %vm3811_vm4 = vmmov %vm3778_vm3 }
 0x484   : > { %2459 = vmatmul.msk.bf16.vlgmr.msrb.gmra.mxu1 %vm3784_vm0, %v2457_v18  ;;  %v2258_v62 = vsel %vm3811_vm4, %v2250_v30, 0  ;;  %vm3812_vm2 = vmmov %vm3784_vm0 }
 0x485   : > { %2182 = vmatpush.bf16.msrb.mxu1 %v2160_v45  ;;  %vm3813_vm13 = vmmov %vm3784_vm0 }
 0x486   : > { %vm3814_vm3 = vmmov %vm3784_vm0 }
 0x487   : > { %vm3815_vm14 = vmmov %vm3784_vm0 }
 0x488   : > { %vm3816_vm6 = vmmov %vm3784_vm0 }
 0x491   : > { %2467 = vmatmul.msk.bf16.vlgmr.msra.gmra.mxu2 %vm3806_vm7, %v2466_v39  ;;  %2468 = vmatmul.msk.bf16.vlgmr.msra.gmra.mxu3 %vm3807_vm15, %v2466_v39 }
 0x492   : > { %2464 = vmatmul.msk.bf16.vlgmr.msra.gmra.mxu0 %vm3808_vm5, %v2463_v29 }
 0x493   : > { %2267 = vmatpush.bf16.msra.mxu0 %v2255_v37 }
 0x494   : > { %2465 = vmatmul.msk.bf16.vlgmr.msra.gmra.mxu1 %vm3809_vm1, %v2463_v29 }
 0x495   : > { %2280 = vmatpush.bf16.msra.mxu1 %v2258_v62 }
 0x4a1   : > { %2473 = vmatmul.msk.bf16.vlgmr.msrb.gmra.mxu2 %vm3812_vm2, %v2472_v63  ;;  %2474 = vmatmul.msk.bf16.vlgmr.msrb.gmra.mxu3 %vm3784_vm0, %v2472_v63 }
 0x4a2   : > { %2470 = vmatmul.msk.bf16.vlgmr.msrb.gmra.mxu0 %vm3813_vm13, %v2469_v8 }
 0x4a4   : > { %2471 = vmatmul.msk.bf16.vlgmr.msrb.gmra.mxu1 %vm3814_vm3, %v2469_v8 }
 0x4b2   : > { %2476 = vmatmul.msk.bf16.vlgmr.msra.gmra.mxu0 %vm3815_vm14, %v2475_v33 }
 0x4b4   : > { %2477 = vmatmul.msk.bf16.vlgmr.msra.gmra.mxu1 %vm3816_vm6, %v2475_v33 }
 0x4ef   : > { %v1901_v46 = vpop.f32.mrf.mxu0 }
 0x4f1   : > { %v1914_v27 = vpop.f32.mrf.mxu1 }
 0x4f4   : > { %v1936_v32 = vpop.f32.mrf.mxu2  ;;  %v1949_v34 = vpop.f32.mrf.mxu3 }
 0x4f5   : > { %v1937_v54 = vadd.f32 %v1936_v32, %v1901_v46  ;;  %v1950_v55 = vadd.f32 %v1949_v34, %v1914_v27 }
 0x4f7   : > { %v1903_v35 = vpop.f32.mrf.mxu0 }
 0x4f9   : > { %v1916_v47 = vpop.f32.mrf.mxu1 }
 0x4fc   : > { %v1938_v48 = vpop.f32.mrf.mxu2  ;;  %v1951_v36 = vpop.f32.mrf.mxu3 }
 0x4ff   : > { %v1983_v41 = vpop.f32.mrf.mxu0 }
 0x500   : > { %v2000_v25 = vadd.f32 %v1983_v41, %v1937_v54 }
 0x501   : > { %v1996_v50 = vpop.f32.mrf.mxu1 }
 0x502   : > { %v2001_v4 = vadd.f32 %v1996_v50, %v1950_v55 }
 0x504   : > { %v2032_v51 = vpop.f32.mrf.mxu2  ;;  %v2045_v52 = vpop.f32.mrf.mxu3 }
 0x505   : > { %v2049_v9 = vadd.f32 %v2032_v51, %v2000_v25  ;;  %v2050_v42 = vadd.f32 %v2045_v52, %v2001_v4 }
 0x507   : > { %v1985_v56 = vpop.f32.mrf.mxu0 }
 0x509   : > { %v1998_v57 = vpop.f32.mrf.mxu1 }
 0x50c   : > { %v2034_v31 = vpop.f32.mrf.mxu2  ;;  %v2047_v53 = vpop.f32.mrf.mxu3 }
 0x50f   : > { %v2073_v58 = vpop.f32.mrf.mxu0 }
 0x510   : > { %v2090_v11 = vadd.f32 %v2073_v58, %v2049_v9 }
 0x511   : > { %v2086_v24 = vpop.f32.mrf.mxu1 }
 0x512   : > { %v2091_v12 = vadd.f32 %v2086_v24, %v2050_v42 }
 0x514   : > { %v2122_v59 = vpop.f32.mrf.mxu2  ;;  %v2135_v60 = vpop.f32.mrf.mxu3 }
 0x515   : > { %v2139_v22 = vadd.f32 %v2122_v59, %v2090_v11  ;;  %v2140_v18 = vadd.f32 %v2135_v60, %v2091_v12 }
 0x517   : > { %v2075_v21 = vpop.f32.mrf.mxu0 }
 0x519   : > { %v2088_v2 = vpop.f32.mrf.mxu1 }
 0x51c   : > { %v2124_v28 = vpop.f32.mrf.mxu2  ;;  %v2137_v6 = vpop.f32.mrf.mxu3 }
 0x51f   : > { %v2171_v61 = vpop.f32.mrf.mxu0 }
 0x520   : > { %v2188_v16 = vadd.f32 %v2171_v61, %v2139_v22 }
 0x521   : > { %v2184_v26 = vpop.f32.mrf.mxu1 }
 0x522   : > { %v2189_v13 = vadd.f32 %v2184_v26, %v2140_v18 }
 0x524   : > { %v2220_v1 = vpop.f32.mrf.mxu2  ;;  %v2233_v3 = vpop.f32.mrf.mxu3 }
 0x525   : > { %v2237_v45 = vadd.f32 %v2220_v1, %v2188_v16  ;;  %v2238_v14 = vadd.f32 %v2233_v3, %v2189_v13 }
 0x527   : > { %v2173_v43 = vpop.f32.mrf.mxu0 }
 0x529   : > { %v2186_v10 = vpop.f32.mrf.mxu1 }
 0x52c   : > { %v2222_v19 = vpop.f32.mrf.mxu2  ;;  %v2235_v40 = vpop.f32.mrf.mxu3 }
 0x52f   : > { %v2269_v15 = vpop.f32.mrf.mxu0 }
 0x530   : > { %v2286_v20 = vadd.f32 %v2269_v15, %v2237_v45 }
 0x531   : > { %v2282_v17 = vpop.f32.mrf.mxu1 }
 0x532   : > { %v2287_v44 = vadd.f32 %v2282_v17, %v2238_v14  ;;  %v2294_v23 = vadd.f32 %v2292_v49, %v2286_v20 }
 0x534   : > { %v2295_v38 = vadd.f32 %v2292_v49, %v2287_v44  ;;  %v2296_v39 = vadd.f32 %v2294_v23, %v3268_v5 }
 0x536   : > { %v2297_v0 = vadd.f32 %v2295_v38, %v3270_v7  ;;  %v2298_v30 = vmax.f32 %v2296_v39, 0.0 }
 0x537   : > { %v2271_v37 = vpop.f32.mrf.mxu0 }
 0x538   : > { %v2299_v29 = vmax.f32 %v2297_v0, 0.0 }
 0x539   : > { %v2284_v62 = vpop.f32.mrf.mxu1 }
 0x53a   : > { %v2300_v63 = vpack.c.bf16 %v2299_v29, %v2298_v30 }
 0x53c   : > { %2301 = vst [vmem:[%s386_s27] sm:$0xff] %v2300_v63 }
 0x53d PF: > { %s21_s17 = sadd.s32 1, %s2667_s17  }
 0x53e   : > { %p18_p4 = scmp.ge.s32.totalorder %s21_s17, 4  }
 0x540   :  { %20 = sbr.rel (!%p18_p4) target bundleno = 1 (0x1), region = 126 }

</bundles_post_ra>
